<compile_context>
chip_gen: v7x
topology: tpu7x:2x2x1
jax: 0.10.0
libtpu: 0.0.40
codegen_flags: <defaults>
</compile_context>

<pallas_src>
import numpy as np
import jax
import jax.numpy as jnp
from jax import lax
from jax.experimental import pallas as pl
from jax.experimental.pallas import tpu as pltpu

LN_EPS = 1e-5            # torch.nn.LayerNorm default eps
EPS = 1e-32              # module eps
LAMBDA_INIT = 1.0


# --------------------------------------------------------------------------------------
# tile pickers (N is assumed to be a multiple of 8, as in realistic MSA-Pairformer)
# --------------------------------------------------------------------------------------
def _pick_s_tile_a(S, N):
    # whole-S tile when small; otherwise a multiple-of-8 divisor of S
    if S * N <= 8192 or S % 8 != 0:
        return S
    for ts in (64, 32, 16, 8):
        if S % ts == 0:
            return ts
    return S


def _pick_s_tile_b(S):
    # the right-hidden block puts S on lanes -> tile must be a multiple of 128 (or = S)
    if S > 256 and S % 128 == 0:
        return 256 if S % 256 == 0 else 128
    return S


# --------------------------------------------------------------------------------------
# Kernel A: per (b, s-tile) LayerNorm + fused [left|right|k1|k2] projection
#           + masked differential q.k reduction.
# --------------------------------------------------------------------------------------
def msa_proj_kernel(msa_ref, fmf_ref, fmm_ref, q_ref, lng_ref, lnb_ref,
                    wfused_ref, kng_ref, knb_ref,
                    a_out_ref, b_out_ref, dots_ref):
    TS, N, D = msa_ref.shape[1], msa_ref.shape[2], msa_ref.shape[3]
    H = a_out_ref.shape[-1]
    DQK = kng_ref.shape[-1]

    # LayerNorm over features (f32 VPU math)
    x = msa_ref[0].reshape(TS * N, D)                           # (TS*N, D)
    mu = jnp.mean(x, axis=-1, keepdims=True)
    var = jnp.mean((x - mu) ** 2, axis=-1, keepdims=True)
    normed = (x - mu) * lax.rsqrt(var + LN_EPS)
    normed = normed * lng_ref[...] + lnb_ref[...]               # (TS*N, D) f32

    # ONE fused projection: columns = [left(H) | right(H) | k1(DQK) | k2(DQK)]
    proj = jnp.dot(normed.astype(jnp.bfloat16), wfused_ref[...],
                   preferred_element_type=jnp.float32)          # (TS*N, 2H+2DQK) f32

    fm = fmf_ref[0]                                             # (TS*N, 1) float mask
    a = proj[:, :H] * fm
    b = proj[:, H:2 * H] * fm
    a_out_ref[0] = a.reshape(TS, N, H).astype(a_out_ref.dtype)  # bf16 store
    b_out_ref[0] = b.reshape(TS, N, H).astype(b_out_ref.dtype)

    # differential attention keys (stats in f32)
    def qk_norm(v):
        m = jnp.mean(v, axis=-1, keepdims=True)
        s = jnp.mean((v - m) ** 2, axis=-1, keepdims=True)
        return (v - m) * lax.rsqrt(s + LN_EPS) * kng_ref[...] + knb_ref[...]

    k1 = qk_norm(proj[:, 2 * H:2 * H + DQK]).reshape(TS, N, DQK)
    k2 = qk_norm(proj[:, 2 * H + DQK:]).reshape(TS, N, DQK)
    q1 = q_ref[0, 0]                                            # (N, DQK) pre-normed
    q2 = q_ref[0, 1]

    fm2 = fmm_ref[0]                                            # (TS, N)
    t1 = jnp.sum(k1 * q1[None], axis=-1) * fm2                  # (TS, N)
    t2 = jnp.sum(k2 * q2[None], axis=-1) * fm2
    d1 = jnp.sum(t1, axis=-1, keepdims=True)                    # (TS, 1)
    d2 = jnp.sum(t2, axis=-1, keepdims=True)
    dots_ref[0] = jnp.concatenate([d1, d2], axis=-1)            # (TS, 2)


def msa_proj_call(msa, full_mask, qn, p):
    B, S, N, D = msa.shape
    H = p["wl"].shape[0]
    DQK = p["qn_g"].shape[0]
    CW = 2 * H + 2 * DQK
    TS = _pick_s_tile_a(S, N)
    f32 = jnp.float32

    wfused = jnp.concatenate([p["wl"].T, p["wr"].T, p["wk"].T],
                             axis=1).astype(jnp.bfloat16)       # (D, 2H+2DQK)
    fm_flat = full_mask.astype(f32).reshape(B, S * N, 1)
    fm_mat = full_mask.astype(f32)

    args = (msa, fm_flat, fm_mat, qn,
            p["ln_g"].reshape(1, D).astype(f32), p["ln_b"].reshape(1, D).astype(f32),
            wfused,
            p["kn_g"].reshape(1, DQK).astype(f32), p["kn_b"].reshape(1, DQK).astype(f32))

    in_specs = [
        pl.BlockSpec((1, TS, N, D), lambda b, s: (b, s, 0, 0)),
        pl.BlockSpec((1, TS * N, 1), lambda b, s: (b, s, 0)),
        pl.BlockSpec((1, TS, N), lambda b, s: (b, s, 0)),
        pl.BlockSpec((1, 2, N, DQK), lambda b, s: (b, 0, 0, 0)),
        pl.BlockSpec((1, D), lambda b, s: (0, 0)),
        pl.BlockSpec((1, D), lambda b, s: (0, 0)),
        pl.BlockSpec((D, CW), lambda b, s: (0, 0)),
        pl.BlockSpec((1, DQK), lambda b, s: (0, 0)),
        pl.BlockSpec((1, DQK), lambda b, s: (0, 0)),
    ]
    out_shape = (
        jax.ShapeDtypeStruct((B, S, N, H), jnp.bfloat16),
        jax.ShapeDtypeStruct((B, S, N, H), jnp.bfloat16),
        jax.ShapeDtypeStruct((B, S, 2), f32),
    )
    out_specs = (
        pl.BlockSpec((1, TS, N, H), lambda b, s: (b, s, 0, 0)),
        pl.BlockSpec((1, TS, N, H), lambda b, s: (b, s, 0, 0)),
        pl.BlockSpec((1, TS, 2), lambda b, s: (b, s, 0)),
    )

    flops = 2 * B * S * N * D * CW
    bytes_acc = msa.size * 4 + 2 * B * S * N * H * 2 + B * S * 2 * 4
    return pl.pallas_call(
        msa_proj_kernel,
        grid=(B, S // TS),
        in_specs=in_specs,
        out_specs=out_specs,
        out_shape=out_shape,
        compiler_params=pltpu.CompilerParams(
            dimension_semantics=("parallel", "parallel"),
            vmem_limit_bytes=48 * 1024 * 1024),
        cost_estimate=pl.CostEstimate(flops=int(flops),
                                      transcendentals=int(B * S * N),
                                      bytes_accessed=int(bytes_acc)),
    )(*args)


# --------------------------------------------------------------------------------------
# Kernel B: per (b, i) fused outer-product-mean + pairwise Linear + SwiGLU + mask,
#           with the sequence axis tiled as an innermost reduction grid axis.
#   b_ref layout: (1, H*N, TS) with row index = e*N + j   (e = right hidden channel)
#   wp_ref layout: (H*H, 2*DP) with wp_ref[e*H + c, p] = W_pair[p, c*H + e]
# --------------------------------------------------------------------------------------
def opm_kernel(w_ref, a_ref, b_ref, wp_ref, bp_ref, maskc_ref, out_ref, t_acc):
    i = pl.program_id(1)
    s_blk = pl.program_id(2)
    n_sblk = pl.num_programs(2)

    N = out_ref.shape[-2]
    H = a_ref.shape[-1]
    DP2 = wp_ref.shape[-1]

    @pl.when(s_blk == 0)
    def _init():
        t_acc[...] = jnp.zeros_like(t_acc)

    # fold the full (w + eps) weight into the left hidden (== sqrt * sqrt in the module)
    w = w_ref[0] + EPS                                          # (TS, 1) f32
    ai = (a_ref[0, 0].astype(jnp.float32) * w).astype(jnp.bfloat16)   # (TS, H)

    # t[j, e*H + c] += sum_s b[s, j, e] * w[s] * a[s, i, c]
    for e in range(H):                                          # static unroll
        wb_e = b_ref[0, e * N:(e + 1) * N, :]                   # (N, TS) bf16
        t_e = jnp.dot(wb_e, ai, preferred_element_type=jnp.float32)   # (N, H) f32
        t_acc[:, e * H:(e + 1) * H] += t_e

    @pl.when(s_blk == n_sblk - 1)
    def _finalize():
        # ONE wide projection (N, H*H) x (H*H, 2*DP)
        z = jnp.dot(t_acc[...].astype(jnp.bfloat16), wp_ref[...],
                    preferred_element_type=jnp.float32)         # (N, 2*DP)
        z = z + bp_ref[...]
        dp = DP2 // 2
        act = jax.nn.silu(z[:, dp:]) * z[:, :dp]                # SwiGLU
        m_i = maskc_ref[0, pl.ds(i, 1), :]                      # (1, 1)  mask[b, i]
        pm = maskc_ref[0] * m_i                                 # (N, 1)  pairwise mask row
        out_ref[0, 0] = (act * pm).astype(out_ref.dtype)


def opm_call(seq_w, mask, a_nsh, b_big, p):
    B, N, S, H = a_nsh.shape
    DP2 = p["wp"].shape[0]
    DP = DP2 // 2
    HH = H * H
    TS = _pick_s_tile_b(S)
    f32 = jnp.float32

    w_col = seq_w.astype(f32).reshape(B, S, 1)
    # wp_big[e*H + c, p] = Wp[p, c*H + e]
    wp_big = jnp.transpose(p["wp"].reshape(DP2, H, H), (2, 1, 0)) \
                .reshape(HH, DP2).astype(jnp.bfloat16)
    bp2 = p["bp"].reshape(1, DP2).astype(f32)
    mask_col = mask.astype(f32).reshape(B, N, 1)

    in_specs = [
        pl.BlockSpec((1, TS, 1), lambda b, i, s: (b, s, 0)),        # seq weights
        pl.BlockSpec((1, 1, TS, H), lambda b, i, s: (b, i, s, 0)),  # left hidden row i
        pl.BlockSpec((1, H * N, TS), lambda b, i, s: (b, 0, s)),    # right hidden (e,j rows)
        pl.BlockSpec((HH, DP2), lambda b, i, s: (0, 0)),            # pairwise weight
        pl.BlockSpec((1, DP2), lambda b, i, s: (0, 0)),             # pairwise bias
        pl.BlockSpec((1, N, 1), lambda b, i, s: (b, 0, 0)),         # residue mask
    ]
    out_spec = pl.BlockSpec((1, 1, N, DP), lambda b, i, s: (b, i, 0, 0))

    flops = 2 * B * N * N * H * H * (S + DP2)
    bytes_acc = b_big.size * 2 * N + a_nsh.size * 2 + B * N * N * DP * 4
    return pl.pallas_call(
        opm_kernel,
        grid=(B, N, S // TS),
        in_specs=in_specs,
        out_specs=out_spec,
        out_shape=jax.ShapeDtypeStruct((B, N, N, DP), f32),
        scratch_shapes=[pltpu.VMEM((N, HH), f32)],
        compiler_params=pltpu.CompilerParams(
            dimension_semantics=("parallel", "parallel", "arbitrary"),
            vmem_limit_bytes=48 * 1024 * 1024),
        cost_estimate=pl.CostEstimate(flops=int(flops),
                                      transcendentals=int(B * N * N * DP),
                                      bytes_accessed=int(bytes_acc)),
    )(w_col, a_nsh, b_big, wp_big, bp2, mask_col)


# --------------------------------------------------------------------------------------
# Glue (plain JAX): q-projection of the first MSA row, differential seq-weight softmax,
# layout plumbing between the two kernels.
# --------------------------------------------------------------------------------------
def _layer_norm(x, g, b):
    mu = jnp.mean(x, axis=-1, keepdims=True)
    var = jnp.mean((x - mu) ** 2, axis=-1, keepdims=True)
    return (x - mu) * lax.rsqrt(var + LN_EPS) * g + b


@jax.jit
def forward(msa, p):
    B, S, N, D = msa.shape
    H = p["wl"].shape[0]
    DQK = p["qn_g"].shape[0]
    f32 = jnp.float32

    full_mask = jnp.ones((B, S, N), f32)
    msa_mask = jnp.ones((B, S), bool)
    mask = jnp.ones((B, N), f32)

    # q = q_norm(q_proj(norm_msa[:, 0]))  -- only the first MSA row (glue)
    norm0 = _layer_norm(msa[:, 0], p["ln_g"], p["ln_b"])
    q = jnp.einsum("bnd,ed->bne", norm0, p["wq"])
    qn = jnp.stack([_layer_norm(q[..., :DQK], p["qn_g"], p["qn_b"]),
                    _layer_norm(q[..., DQK:], p["qn_g"], p["qn_b"])], axis=1)  # (B,2,N,DQK)

    a_act, b_act, dots = msa_proj_call(msa, full_mask, qn, p)   # bf16, bf16, (B,S,2) f32

    scaling = DQK ** (-0.5)
    norm_factor = jnp.sum(full_mask, axis=-1) + EPS             # (B, S)
    sred = dots * scaling / norm_factor[..., None]              # (B, S, 2)
    lam1 = jnp.exp(jnp.sum(p["lq1"] * p["lk1"]))
    lam2 = jnp.exp(jnp.sum(p["lq2"] * p["lk2"]))
    lam_full = lam1 - lam2 + LAMBDA_INIT
    logits = sred[..., 0] - lam_full * sred[..., 1]
    logits = jnp.where(msa_mask, logits, -1e9)
    seq_w = jax.nn.softmax(logits, axis=-1)                     # (B, S)

    # layout plumbing for kernel B (bf16 => half the f32 HBM traffic)
    # TODO(synk): fold these relayouts into kernel A's out_specs.
    a_nsh = jnp.transpose(a_act, (0, 2, 1, 3))                      # (B, N, S, H)
    b_big = jnp.transpose(b_act, (0, 3, 2, 1)).reshape(B, H * N, S)  # rows = (e, j)

    out = opm_call(seq_w, mask, a_nsh, b_big, p)
    return out, seq_w


# --------------------------------------------------------------------------------------
# Pure-JAX reference (mirrors the PyTorch forward) + deterministic params.
# --------------------------------------------------------------------------------------
def reference(msa, p):
    B, S, N, D = msa.shape
    H = p["wl"].shape[0]
    DQK = p["qn_g"].shape[0]
    DP2 = p["wp"].shape[0]
    DP = DP2 // 2
    full_mask = jnp.ones((B, S, N), jnp.float32)
    msa_mask = jnp.ones((B, S), bool)
    mask = jnp.ones((B, N), jnp.float32)

    norm = _layer_norm(msa, p["ln_g"], p["ln_b"])
    q = jnp.einsum("bnd,ed->bne", norm[:, 0], p["wq"])
    k = jnp.einsum("bsnd,ed->bsne", norm, p["wk"])
    q = q.reshape(B, N, 2, DQK).transpose(0, 2, 1, 3)
    k = k.reshape(B, S, N, 2, DQK).transpose(0, 3, 1, 2, 4)
    q = _layer_norm(q, p["qn_g"], p["qn_b"])
    k = _layer_norm(k, p["kn_g"], p["kn_b"])
    scores = jnp.einsum("btnd,btsnd->btsn", q, k) * (DQK ** -0.5)
    norm_factor = jnp.sum(full_mask, -1) + EPS
    scores = scores * full_mask[:, None]
    sred = jnp.sum(scores, -1) / norm_factor[:, None, :]        # (B, 2, S)
    lam1 = jnp.exp(jnp.sum(p["lq1"] * p["lk1"]))
    lam2 = jnp.exp(jnp.sum(p["lq2"] * p["lk2"]))
    lam_full = lam1 - lam2 + LAMBDA_INIT
    logits = sred[:, 0] - lam_full * sred[:, 1]
    logits = jnp.where(msa_mask, logits, -1e9)
    seq_w = jax.nn.softmax(logits, axis=-1)

    a = jnp.einsum("bsnd,hd->bsnh", norm, p["wl"]) * full_mask[..., None]
    b = jnp.einsum("bsnd,hd->bsnh", norm, p["wr"]) * full_mask[..., None]
    a = a.transpose(0, 2, 1, 3)
    b = b.transpose(0, 2, 1, 3)
    ssw = jnp.sqrt(seq_w + EPS)
    a = a * ssw[:, None, :, None]
    b = b * ssw[:, None, :, None]
    outer = jnp.einsum("bisc,bjse->bijce", a, b)
    outer = outer.reshape(B, N, N, H * H)
    z = jnp.einsum("bijk,pk->bijp", outer, p["wp"]) + p["bp"]
    act = jax.nn.silu(z[..., DP:]) * z[..., :DP]
    pm = mask[:, :, None] * mask[:, None, :]
    return act * pm[..., None], seq_w


def make_params(key, d_msa, d_hidden, d_pairwise, d_qk):
    ks = jax.random.split(key, 16)
    nrm = jax.random.normal
    p = {}
    p["ln_g"] = 1.0 + 0.1 * nrm(ks[0], (d_msa,), jnp.float32)
    p["ln_b"] = 0.1 * nrm(ks[1], (d_msa,), jnp.float32)
    p["wl"] = 0.05 * nrm(ks[2], (d_hidden, d_msa), jnp.float32)
    p["wr"] = 0.05 * nrm(ks[3], (d_hidden, d_msa), jnp.float32)
    p["wp"] = 0.05 * nrm(ks[4], (2 * d_pairwise, d_hidden * d_hidden), jnp.float32)
    p["bp"] = 0.02 * nrm(ks[5], (2 * d_pairwise,), jnp.float32)
    p["wq"] = 0.05 * nrm(ks[6], (2 * d_qk, d_msa), jnp.float32)
    p["wk"] = p["wq"] + 0.1 * nrm(ks[7], (2 * d_qk, d_msa), jnp.float32)  # k = q + 0.1*noise
    p["qn_g"] = 1.0 + 0.1 * nrm(ks[8], (d_qk,), jnp.float32)
    p["qn_b"] = 0.1 * nrm(ks[9], (d_qk,), jnp.float32)
    p["kn_g"] = 1.0 + 0.1 * nrm(ks[10], (d_qk,), jnp.float32)
    p["kn_b"] = 0.1 * nrm(ks[11], (d_qk,), jnp.float32)
    p["lq1"] = 0.1 * nrm(ks[12], (d_qk,), jnp.float32)
    p["lk1"] = 0.1 * nrm(ks[13], (d_qk,), jnp.float32)
    p["lq2"] = 0.1 * nrm(ks[14], (d_qk,), jnp.float32)
    p["lk2"] = 0.1 * nrm(ks[15], (d_qk,), jnp.float32)
    return p


if __name__ == "__main__":
    B, S, N = 2, 8, 16
    D_MSA, D_HID, D_PAIR, D_QK = 32, 8, 16, 8

    key = jax.random.PRNGKey(0)
    kp, kx = jax.random.split(key)
    params = make_params(kp, D_MSA, D_HID, D_PAIR, D_QK)
    msa = jax.random.normal(kx, (B, S, N, D_MSA), jnp.float32)

    out, seq_w = forward(msa, params)
    out = jax.block_until_ready(out)
    seq_w = jax.block_until_ready(seq_w)

    ref_out, ref_sw = reference(msa, params)
    assert out.shape == (B, N, N, D_PAIR)
    # bf16 MXU operands (default precision) on both paths -> bf16-class tolerances
    np.testing.assert_allclose(np.asarray(seq_w), np.asarray(ref_sw),
                               rtol=1e-2, atol=2e-3)
    np.testing.assert_allclose(np.asarray(out), np.asarray(ref_out),
                               rtol=2e-2, atol=2e-3)
    print("KERNEL_OK")
</pallas_src>

<mosaic_0001>
module attributes {stable_mosaic.version = 11 : i64} {
  func.func @msa_proj_kernel(%arg0: i32, %arg1: i32, %arg2: memref<1x8x16x32xf32, #tpu.memory_space<vmem>>, %arg3: memref<1x128x1xf32, #tpu.memory_space<vmem>>, %arg4: memref<1x8x16xf32, #tpu.memory_space<vmem>>, %arg5: memref<1x2x16x8xf32, #tpu.memory_space<vmem>>, %arg6: memref<1x32xf32, #tpu.memory_space<vmem>>, %arg7: memref<1x32xf32, #tpu.memory_space<vmem>>, %arg8: memref<32x32xbf16, #tpu.memory_space<vmem>>, %arg9: memref<1x8xf32, #tpu.memory_space<vmem>>, %arg10: memref<1x8xf32, #tpu.memory_space<vmem>>, %arg11: memref<1x8x16x8xbf16, #tpu.memory_space<vmem>>, %arg12: memref<1x8x16x8xbf16, #tpu.memory_space<vmem>>, %arg13: memref<1x8x2xf32, #tpu.memory_space<vmem>>) attributes {dimension_semantics = [#tpu.dimension_semantics<parallel>, #tpu.dimension_semantics<parallel>], iteration_bounds = array<i64: 2, 1>, scalar_prefetch = 0 : i64, scratch_operands = 0 : i64, tpu.core_type = #tpu.core_type<tc>, window_params = [{transform_indices = @transform_0, window_bounds = array<i64: 1, 8, 16, 32>}, {transform_indices = @transform_1, window_bounds = array<i64: 1, 128, 1>}, {transform_indices = @transform_2, window_bounds = array<i64: 1, 8, 16>}, {transform_indices = @transform_3, window_bounds = array<i64: 1, 2, 16, 8>}, {pipeline_mode = #tpu.pipeline_mode<synchronous>, transform_indices = @transform_4, window_bounds = array<i64: 1, 32>}, {pipeline_mode = #tpu.pipeline_mode<synchronous>, transform_indices = @transform_5, window_bounds = array<i64: 1, 32>}, {pipeline_mode = #tpu.pipeline_mode<synchronous>, transform_indices = @transform_6, window_bounds = array<i64: 32, 32>}, {pipeline_mode = #tpu.pipeline_mode<synchronous>, transform_indices = @transform_7, window_bounds = array<i64: 1, 8>}, {pipeline_mode = #tpu.pipeline_mode<synchronous>, transform_indices = @transform_8, window_bounds = array<i64: 1, 8>}, {transform_indices = @transform_9, window_bounds = array<i64: 1, 8, 16, 8>}, {transform_indices = @transform_10, window_bounds = array<i64: 1, 8, 16, 8>}, {transform_indices = @transform_11, window_bounds = array<i64: 1, 8, 2>}]} {
    %c0 = arith.constant 0 : index
    %c0_0 = arith.constant 0 : index
    %c0_1 = arith.constant 0 : index
    %c0_2 = arith.constant 0 : index
    %0 = vector.load %arg2[%c0, %c0_0, %c0_1, %c0_2] : memref<1x8x16x32xf32, #tpu.memory_space<vmem>>, vector<1x8x16x32xf32>
    %1 = vector.shape_cast %0 : vector<1x8x16x32xf32> to vector<8x16x32xf32>
    %2 = vector.shape_cast %1 : vector<8x16x32xf32> to vector<128x32xf32>
    %cst = arith.constant dense<0.000000e+00> : vector<128xf32>
    %3 = vector.multi_reduction <add>, %2, %cst [1] : vector<128x32xf32> to vector<128xf32>
    %4 = vector.shape_cast %3 : vector<128xf32> to vector<128x1xf32>
    %cst_3 = arith.constant 3.200000e+01 : f32
    %5 = vector.broadcast %cst_3 : f32 to vector<128x1xf32>
    %6 = arith.divf %4, %5 : vector<128x1xf32>
    %7 = vector.broadcast %6 : vector<128x1xf32> to vector<128x32xf32>
    %8 = arith.subf %2, %7 : vector<128x32xf32>
    %9 = arith.mulf %8, %8 : vector<128x32xf32>
    %cst_4 = arith.constant dense<0.000000e+00> : vector<128xf32>
    %10 = vector.multi_reduction <add>, %9, %cst_4 [1] : vector<128x32xf32> to vector<128xf32>
    %11 = vector.shape_cast %10 : vector<128xf32> to vector<128x1xf32>
    %cst_5 = arith.constant 3.200000e+01 : f32
    %12 = vector.broadcast %cst_5 : f32 to vector<128x1xf32>
    %13 = arith.divf %11, %12 : vector<128x1xf32>
    %14 = vector.broadcast %6 : vector<128x1xf32> to vector<128x32xf32>
    %15 = arith.subf %2, %14 : vector<128x32xf32>
    %cst_6 = arith.constant 9.99999974E-6 : f32
    %16 = vector.broadcast %cst_6 : f32 to vector<128x1xf32>
    %17 = arith.addf %13, %16 : vector<128x1xf32>
    %18 = math.rsqrt %17 : vector<128x1xf32>
    %19 = vector.broadcast %18 : vector<128x1xf32> to vector<128x32xf32>
    %20 = arith.mulf %15, %19 : vector<128x32xf32>
    %c0_7 = arith.constant 0 : index
    %c0_8 = arith.constant 0 : index
    %21 = vector.load %arg6[%c0_7, %c0_8] : memref<1x32xf32, #tpu.memory_space<vmem>>, vector<1x32xf32>
    %22 = vector.broadcast %21 : vector<1x32xf32> to vector<128x32xf32>
    %23 = arith.mulf %20, %22 : vector<128x32xf32>
    %c0_9 = arith.constant 0 : index
    %c0_10 = arith.constant 0 : index
    %24 = vector.load %arg7[%c0_9, %c0_10] : memref<1x32xf32, #tpu.memory_space<vmem>>, vector<1x32xf32>
    %25 = vector.broadcast %24 : vector<1x32xf32> to vector<128x32xf32>
    %26 = arith.addf %23, %25 : vector<128x32xf32>
    %27 = arith.truncf %26 : vector<128x32xf32> to vector<128x32xbf16>
    %c0_11 = arith.constant 0 : index
    %c0_12 = arith.constant 0 : index
    %28 = vector.load %arg8[%c0_11, %c0_12] : memref<32x32xbf16, #tpu.memory_space<vmem>>, vector<32x32xbf16>
    %cst_13 = arith.constant dense<0.000000e+00> : vector<128x32xf32>
    %29 = tpu.matmul %27, %28, %cst_13 {dimension_numbers = #tpu.dot_dimension_numbers<[1], [0], [0], [1], [0, 0, 1, 1], [], []>} : vector<128x32xbf16>, vector<32x32xbf16>, vector<128x32xf32> -> vector<128x32xf32>
    %c0_14 = arith.constant 0 : index
    %c0_15 = arith.constant 0 : index
    %c0_16 = arith.constant 0 : index
    %30 = vector.load %arg3[%c0_14, %c0_15, %c0_16] : memref<1x128x1xf32, #tpu.memory_space<vmem>>, vector<1x128x1xf32>
    %31 = vector.shape_cast %30 : vector<1x128x1xf32> to vector<128x1xf32>
    %32 = vector.extract_strided_slice %29 {offsets = [0, 0], sizes = [128, 8], strides = [1, 1]} : vector<128x32xf32> to vector<128x8xf32>
    %33 = vector.broadcast %31 : vector<128x1xf32> to vector<128x8xf32>
    %34 = arith.mulf %32, %33 : vector<128x8xf32>
    %35 = vector.extract_strided_slice %29 {offsets = [0, 8], sizes = [128, 8], strides = [1, 1]} : vector<128x32xf32> to vector<128x8xf32>
    %36 = vector.broadcast %31 : vector<128x1xf32> to vector<128x8xf32>
    %37 = arith.mulf %35, %36 : vector<128x8xf32>
    %38 = vector.shape_cast %34 : vector<128x8xf32> to vector<8x16x8xf32>
    %39 = arith.truncf %38 : vector<8x16x8xf32> to vector<8x16x8xbf16>
    %c0_17 = arith.constant 0 : index
    %c0_18 = arith.constant 0 : index
    %c0_19 = arith.constant 0 : index
    %c0_20 = arith.constant 0 : index
    %40 = vector.load %arg11[%c0_17, %c0_18, %c0_19, %c0_20] : memref<1x8x16x8xbf16, #tpu.memory_space<vmem>>, vector<1x8x16x8xbf16>
    %41 = vector.shape_cast %40 : vector<1x8x16x8xbf16> to vector<8x16x8xbf16>
    %42 = vector.shape_cast %39 : vector<8x16x8xbf16> to vector<1x8x16x8xbf16>
    tpu.vector_store %arg11[%c0_17, %c0_18, %c0_19, %c0_20], %42 {strides = array<i32>} : memref<1x8x16x8xbf16, #tpu.memory_space<vmem>>, vector<1x8x16x8xbf16>,
    %43 = vector.shape_cast %37 : vector<128x8xf32> to vector<8x16x8xf32>
    %44 = arith.truncf %43 : vector<8x16x8xf32> to vector<8x16x8xbf16>
    %c0_21 = arith.constant 0 : index
    %c0_22 = arith.constant 0 : index
    %c0_23 = arith.constant 0 : index
    %c0_24 = arith.constant 0 : index
    %45 = vector.load %arg12[%c0_21, %c0_22, %c0_23, %c0_24] : memref<1x8x16x8xbf16, #tpu.memory_space<vmem>>, vector<1x8x16x8xbf16>
    %46 = vector.shape_cast %45 : vector<1x8x16x8xbf16> to vector<8x16x8xbf16>
    %47 = vector.shape_cast %44 : vector<8x16x8xbf16> to vector<1x8x16x8xbf16>
    tpu.vector_store %arg12[%c0_21, %c0_22, %c0_23, %c0_24], %47 {strides = array<i32>} : memref<1x8x16x8xbf16, #tpu.memory_space<vmem>>, vector<1x8x16x8xbf16>,
    %48 = vector.extract_strided_slice %29 {offsets = [0, 16], sizes = [128, 8], strides = [1, 1]} : vector<128x32xf32> to vector<128x8xf32>
    %cst_25 = arith.constant dense<0.000000e+00> : vector<128xf32>
    %49 = vector.multi_reduction <add>, %48, %cst_25 [1] : vector<128x8xf32> to vector<128xf32>
    %50 = vector.shape_cast %49 : vector<128xf32> to vector<128x1xf32>
    %cst_26 = arith.constant 8.000000e+00 : f32
    %51 = vector.broadcast %cst_26 : f32 to vector<128x1xf32>
    %52 = arith.divf %50, %51 : vector<128x1xf32>
    %53 = vector.broadcast %52 : vector<128x1xf32> to vector<128x8xf32>
    %54 = arith.subf %48, %53 : vector<128x8xf32>
    %55 = arith.mulf %54, %54 : vector<128x8xf32>
    %cst_27 = arith.constant dense<0.000000e+00> : vector<128xf32>
    %56 = vector.multi_reduction <add>, %55, %cst_27 [1] : vector<128x8xf32> to vector<128xf32>
    %57 = vector.shape_cast %56 : vector<128xf32> to vector<128x1xf32>
    %cst_28 = arith.constant 8.000000e+00 : f32
    %58 = vector.broadcast %cst_28 : f32 to vector<128x1xf32>
    %59 = arith.divf %57, %58 : vector<128x1xf32>
    %60 = vector.broadcast %52 : vector<128x1xf32> to vector<128x8xf32>
    %61 = arith.subf %48, %60 : vector<128x8xf32>
    %cst_29 = arith.constant 9.99999974E-6 : f32
    %62 = vector.broadcast %cst_29 : f32 to vector<128x1xf32>
    %63 = arith.addf %59, %62 : vector<128x1xf32>
    %64 = math.rsqrt %63 : vector<128x1xf32>
    %65 = vector.broadcast %64 : vector<128x1xf32> to vector<128x8xf32>
    %66 = arith.mulf %61, %65 : vector<128x8xf32>
    %c0_30 = arith.constant 0 : index
    %c0_31 = arith.constant 0 : index
    %67 = vector.load %arg9[%c0_30, %c0_31] : memref<1x8xf32, #tpu.memory_space<vmem>>, vector<1x8xf32>
    %68 = vector.broadcast %67 : vector<1x8xf32> to vector<128x8xf32>
    %69 = arith.mulf %66, %68 : vector<128x8xf32>
    %c0_32 = arith.constant 0 : index
    %c0_33 = arith.constant 0 : index
    %70 = vector.load %arg10[%c0_32, %c0_33] : memref<1x8xf32, #tpu.memory_space<vmem>>, vector<1x8xf32>
    %71 = vector.broadcast %70 : vector<1x8xf32> to vector<128x8xf32>
    %72 = arith.addf %69, %71 : vector<128x8xf32>
    %73 = vector.shape_cast %72 : vector<128x8xf32> to vector<8x16x8xf32>
    %74 = vector.extract_strided_slice %29 {offsets = [0, 24], sizes = [128, 8], strides = [1, 1]} : vector<128x32xf32> to vector<128x8xf32>
    %cst_34 = arith.constant dense<0.000000e+00> : vector<128xf32>
    %75 = vector.multi_reduction <add>, %74, %cst_34 [1] : vector<128x8xf32> to vector<128xf32>
    %76 = vector.shape_cast %75 : vector<128xf32> to vector<128x1xf32>
    %cst_35 = arith.constant 8.000000e+00 : f32
    %77 = vector.broadcast %cst_35 : f32 to vector<128x1xf32>
    %78 = arith.divf %76, %77 : vector<128x1xf32>
    %79 = vector.broadcast %78 : vector<128x1xf32> to vector<128x8xf32>
    %80 = arith.subf %74, %79 : vector<128x8xf32>
    %81 = arith.mulf %80, %80 : vector<128x8xf32>
    %cst_36 = arith.constant dense<0.000000e+00> : vector<128xf32>
    %82 = vector.multi_reduction <add>, %81, %cst_36 [1] : vector<128x8xf32> to vector<128xf32>
    %83 = vector.shape_cast %82 : vector<128xf32> to vector<128x1xf32>
    %cst_37 = arith.constant 8.000000e+00 : f32
    %84 = vector.broadcast %cst_37 : f32 to vector<128x1xf32>
    %85 = arith.divf %83, %84 : vector<128x1xf32>
    %86 = vector.broadcast %78 : vector<128x1xf32> to vector<128x8xf32>
    %87 = arith.subf %74, %86 : vector<128x8xf32>
    %cst_38 = arith.constant 9.99999974E-6 : f32
    %88 = vector.broadcast %cst_38 : f32 to vector<128x1xf32>
    %89 = arith.addf %85, %88 : vector<128x1xf32>
    %90 = math.rsqrt %89 : vector<128x1xf32>
    %91 = vector.broadcast %90 : vector<128x1xf32> to vector<128x8xf32>
    %92 = arith.mulf %87, %91 : vector<128x8xf32>
    %c0_39 = arith.constant 0 : index
    %c0_40 = arith.constant 0 : index
    %93 = vector.load %arg9[%c0_39, %c0_40] : memref<1x8xf32, #tpu.memory_space<vmem>>, vector<1x8xf32>
    %94 = vector.broadcast %93 : vector<1x8xf32> to vector<128x8xf32>
    %95 = arith.mulf %92, %94 : vector<128x8xf32>
    %c0_41 = arith.constant 0 : index
    %c0_42 = arith.constant 0 : index
    %96 = vector.load %arg10[%c0_41, %c0_42] : memref<1x8xf32, #tpu.memory_space<vmem>>, vector<1x8xf32>
    %97 = vector.broadcast %96 : vector<1x8xf32> to vector<128x8xf32>
    %98 = arith.addf %95, %97 : vector<128x8xf32>
    %99 = vector.shape_cast %98 : vector<128x8xf32> to vector<8x16x8xf32>
    %c0_43 = arith.constant 0 : index
    %c0_44 = arith.constant 0 : index
    %c0_45 = arith.constant 0 : index
    %c0_46 = arith.constant 0 : index
    %100 = vector.load %arg5[%c0_43, %c0_44, %c0_45, %c0_46] : memref<1x2x16x8xf32, #tpu.memory_space<vmem>>, vector<1x1x16x8xf32>
    %101 = vector.shape_cast %100 : vector<1x1x16x8xf32> to vector<16x8xf32>
    %c0_47 = arith.constant 0 : index
    %c1 = arith.constant 1 : index
    %c0_48 = arith.constant 0 : index
    %c0_49 = arith.constant 0 : index
    %102 = vector.load %arg5[%c0_47, %c1, %c0_48, %c0_49] : memref<1x2x16x8xf32, #tpu.memory_space<vmem>>, vector<1x1x16x8xf32>
    %103 = vector.shape_cast %102 : vector<1x1x16x8xf32> to vector<16x8xf32>
    %c0_50 = arith.constant 0 : index
    %c0_51 = arith.constant 0 : index
    %c0_52 = arith.constant 0 : index
    %104 = vector.load %arg4[%c0_50, %c0_51, %c0_52] : memref<1x8x16xf32, #tpu.memory_space<vmem>>, vector<1x8x16xf32>
    %105 = vector.shape_cast %104 : vector<1x8x16xf32> to vector<8x16xf32>
    %106 = vector.shape_cast %101 : vector<16x8xf32> to vector<1x16x8xf32>
    %107 = vector.broadcast %106 : vector<1x16x8xf32> to vector<8x16x8xf32>
    %108 = arith.mulf %73, %107 : vector<8x16x8xf32>
    %cst_53 = arith.constant dense<0.000000e+00> : vector<8x16xf32>
    %109 = vector.multi_reduction <add>, %108, %cst_53 [2] : vector<8x16x8xf32> to vector<8x16xf32>
    %110 = arith.mulf %109, %105 : vector<8x16xf32>
    %111 = vector.shape_cast %103 : vector<16x8xf32> to vector<1x16x8xf32>
    %112 = vector.broadcast %111 : vector<1x16x8xf32> to vector<8x16x8xf32>
    %113 = arith.mulf %99, %112 : vector<8x16x8xf32>
    %cst_54 = arith.constant dense<0.000000e+00> : vector<8x16xf32>
    %114 = vector.multi_reduction <add>, %113, %cst_54 [2] : vector<8x16x8xf32> to vector<8x16xf32>
    %115 = arith.mulf %114, %105 : vector<8x16xf32>
    %cst_55 = arith.constant dense<0.000000e+00> : vector<8xf32>
    %116 = vector.multi_reduction <add>, %110, %cst_55 [1] : vector<8x16xf32> to vector<8xf32>
    %117 = vector.shape_cast %116 : vector<8xf32> to vector<8x1xf32>
    %cst_56 = arith.constant dense<0.000000e+00> : vector<8xf32>
    %118 = vector.multi_reduction <add>, %115, %cst_56 [1] : vector<8x16xf32> to vector<8xf32>
    %119 = vector.shape_cast %118 : vector<8xf32> to vector<8x1xf32>
    %120 = tpu.concatenate %117, %119 in 1 : vector<8x1xf32>, vector<8x1xf32> -> vector<8x2xf32>
    %c0_57 = arith.constant 0 : index
    %c0_58 = arith.constant 0 : index
    %c0_59 = arith.constant 0 : index
    %121 = vector.load %arg13[%c0_57, %c0_58, %c0_59] : memref<1x8x2xf32, #tpu.memory_space<vmem>>, vector<1x8x2xf32>
    %122 = vector.shape_cast %121 : vector<1x8x2xf32> to vector<8x2xf32>
    %123 = vector.shape_cast %120 : vector<8x2xf32> to vector<1x8x2xf32>
    tpu.vector_store %arg13[%c0_57, %c0_58, %c0_59], %123 {strides = array<i32>} : memref<1x8x2xf32, #tpu.memory_space<vmem>>, vector<1x8x2xf32>,
    return
  }
  func.func @transform_0(%arg0: i32, %arg1: i32) -> (i32, i32, i32, i32) {
    %c0_i32 = arith.constant 0 : i32
    %c0_i32_0 = arith.constant 0 : i32
    %c0_i32_1 = arith.constant 0 : i32
    return %arg0, %arg1, %c0_i32, %c0_i32_0 : i32, i32, i32, i32
  }
  func.func @transform_1(%arg0: i32, %arg1: i32) -> (i32, i32, i32) {
    %c0_i32 = arith.constant 0 : i32
    %c0_i32_0 = arith.constant 0 : i32
    return %arg0, %arg1, %c0_i32 : i32, i32, i32
  }
  func.func @transform_2(%arg0: i32, %arg1: i32) -> (i32, i32, i32) {
    %c0_i32 = arith.constant 0 : i32
    %c0_i32_0 = arith.constant 0 : i32
    return %arg0, %arg1, %c0_i32 : i32, i32, i32
  }
  func.func @transform_3(%arg0: i32, %arg1: i32) -> (i32, i32, i32, i32) {
    %c0_i32 = arith.constant 0 : i32
    %c0_i32_0 = arith.constant 0 : i32
    %c0_i32_1 = arith.constant 0 : i32
    %c0_i32_2 = arith.constant 0 : i32
    return %arg0, %c0_i32, %c0_i32_0, %c0_i32_1 : i32, i32, i32, i32
  }
  func.func @transform_4(%arg0: i32, %arg1: i32) -> (i32, i32) {
    %c0_i32 = arith.constant 0 : i32
    %c0_i32_0 = arith.constant 0 : i32
    %c0_i32_1 = arith.constant 0 : i32
    return %c0_i32, %c0_i32_0 : i32, i32
  }
  func.func @transform_5(%arg0: i32, %arg1: i32) -> (i32, i32) {
    %c0_i32 = arith.constant 0 : i32
    %c0_i32_0 = arith.constant 0 : i32
    %c0_i32_1 = arith.constant 0 : i32
    return %c0_i32, %c0_i32_0 : i32, i32
  }
  func.func @transform_6(%arg0: i32, %arg1: i32) -> (i32, i32) {
    %c0_i32 = arith.constant 0 : i32
    %c0_i32_0 = arith.constant 0 : i32
    %c0_i32_1 = arith.constant 0 : i32
    return %c0_i32, %c0_i32_0 : i32, i32
  }
  func.func @transform_7(%arg0: i32, %arg1: i32) -> (i32, i32) {
    %c0_i32 = arith.constant 0 : i32
    %c0_i32_0 = arith.constant 0 : i32
    %c0_i32_1 = arith.constant 0 : i32
    return %c0_i32, %c0_i32_0 : i32, i32
  }
  func.func @transform_8(%arg0: i32, %arg1: i32) -> (i32, i32) {
    %c0_i32 = arith.constant 0 : i32
    %c0_i32_0 = arith.constant 0 : i32
    %c0_i32_1 = arith.constant 0 : i32
    return %c0_i32, %c0_i32_0 : i32, i32
  }
  func.func @transform_9(%arg0: i32, %arg1: i32) -> (i32, i32, i32, i32) {
    %c0_i32 = arith.constant 0 : i32
    %c0_i32_0 = arith.constant 0 : i32
    %c0_i32_1 = arith.constant 0 : i32
    return %arg0, %arg1, %c0_i32, %c0_i32_0 : i32, i32, i32, i32
  }
  func.func @transform_10(%arg0: i32, %arg1: i32) -> (i32, i32, i32, i32) {
    %c0_i32 = arith.constant 0 : i32
    %c0_i32_0 = arith.constant 0 : i32
    %c0_i32_1 = arith.constant 0 : i32
    return %arg0, %arg1, %c0_i32, %c0_i32_0 : i32, i32, i32, i32
  }
  func.func @transform_11(%arg0: i32, %arg1: i32) -> (i32, i32, i32) {
    %c0_i32 = arith.constant 0 : i32
    %c0_i32_0 = arith.constant 0 : i32
    return %arg0, %arg1, %c0_i32 : i32, i32, i32
  }
}

module attributes {stable_mosaic.version = 11 : i64} {
  func.func @opm_kernel(%arg0: i32, %arg1: i32, %arg2: i32, %arg3: memref<1x8x1xf32, #tpu.memory_space<vmem>>, %arg4: memref<1x1x8x8xbf16, #tpu.memory_space<vmem>>, %arg5: memref<1x128x8xbf16, #tpu.memory_space<vmem>>, %arg6: memref<64x32xbf16, #tpu.memory_space<vmem>>, %arg7: memref<1x32xf32, #tpu.memory_space<vmem>>, %arg8: memref<1x16x1xf32, #tpu.memory_space<vmem>>, %arg9: memref<1x1x16x16xf32, #tpu.memory_space<vmem>>, %arg10: memref<16x64xf32, #tpu.memory_space<vmem>>) attributes {dimension_semantics = [#tpu.dimension_semantics<parallel>, #tpu.dimension_semantics<parallel>, #tpu.dimension_semantics<arbitrary>], iteration_bounds = array<i64: 2, 16, 1>, scalar_prefetch = 0 : i64, scratch_operands = 1 : i64, tpu.core_type = #tpu.core_type<tc>, window_params = [{transform_indices = @transform_0, window_bounds = array<i64: 1, 8, 1>}, {transform_indices = @transform_1, window_bounds = array<i64: 1, 1, 8, 8>}, {transform_indices = @transform_2, window_bounds = array<i64: 1, 128, 8>}, {pipeline_mode = #tpu.pipeline_mode<synchronous>, transform_indices = @transform_3, window_bounds = array<i64: 64, 32>}, {pipeline_mode = #tpu.pipeline_mode<synchronous>, transform_indices = @transform_4, window_bounds = array<i64: 1, 32>}, {transform_indices = @transform_5, window_bounds = array<i64: 1, 16, 1>}, {transform_indices = @transform_6, window_bounds = array<i64: 1, 1, 16, 16>}]} {
    %c0_i32 = arith.constant 0 : i32
    %0 = arith.cmpi eq, %arg2, %c0_i32 : i32
    %1 = arith.extui %0 : i1 to i32
    %c0_i32_0 = arith.constant 0 : i32
    %2 = arith.cmpi ne, %1, %c0_i32_0 : i32
    scf.if %2 {
      %cst_62 = arith.constant 0.000000e+00 : f32
      %64 = vector.broadcast %cst_62 : f32 to vector<16x64xf32>
      %c0_63 = arith.constant 0 : index
      %c0_64 = arith.constant 0 : index
      %65 = vector.load %arg10[%c0_63, %c0_64] : memref<16x64xf32, #tpu.memory_space<vmem>>, vector<16x64xf32>
      tpu.vector_store %arg10[%c0_63, %c0_64], %64 {strides = array<i32>} : memref<16x64xf32, #tpu.memory_space<vmem>>, vector<16x64xf32>,
    } else {
    }
    %c0 = arith.constant 0 : index
    %c0_1 = arith.constant 0 : index
    %c0_2 = arith.constant 0 : index
    %3 = vector.load %arg3[%c0, %c0_1, %c0_2] : memref<1x8x1xf32, #tpu.memory_space<vmem>>, vector<1x8x1xf32>
    %4 = vector.shape_cast %3 : vector<1x8x1xf32> to vector<8x1xf32>
    %cst = arith.constant 1.000000e-32 : f32
    %5 = vector.broadcast %cst : f32 to vector<8x1xf32>
    %6 = arith.addf %4, %5 : vector<8x1xf32>
    %c0_3 = arith.constant 0 : index
    %c0_4 = arith.constant 0 : index
    %c0_5 = arith.constant 0 : index
    %c0_6 = arith.constant 0 : index
    %7 = vector.load %arg4[%c0_3, %c0_4, %c0_5, %c0_6] : memref<1x1x8x8xbf16, #tpu.memory_space<vmem>>, vector<1x1x8x8xbf16>
    %8 = vector.shape_cast %7 : vector<1x1x8x8xbf16> to vector<8x8xbf16>
    %9 = arith.extf %8 : vector<8x8xbf16> to vector<8x8xf32>
    %10 = vector.broadcast %6 : vector<8x1xf32> to vector<8x8xf32>
    %11 = arith.mulf %9, %10 : vector<8x8xf32>
    %12 = arith.truncf %11 : vector<8x8xf32> to vector<8x8xbf16>
    %c0_7 = arith.constant 0 : index
    %c0_8 = arith.constant 0 : index
    %c0_9 = arith.constant 0 : index
    %13 = vector.load %arg5[%c0_7, %c0_8, %c0_9] : memref<1x128x8xbf16, #tpu.memory_space<vmem>>, vector<1x16x8xbf16>
    %14 = vector.shape_cast %13 : vector<1x16x8xbf16> to vector<16x8xbf16>
    %cst_10 = arith.constant dense<0.000000e+00> : vector<16x8xf32>
    %15 = tpu.matmul %14, %12, %cst_10 {dimension_numbers = #tpu.dot_dimension_numbers<[1], [0], [0], [1], [0, 0, 1, 1], [], []>} : vector<16x8xbf16>, vector<8x8xbf16>, vector<16x8xf32> -> vector<16x8xf32>
    %c0_11 = arith.constant 0 : index
    %c0_12 = arith.constant 0 : index
    %16 = vector.load %arg10[%c0_11, %c0_12] : memref<16x64xf32, #tpu.memory_space<vmem>>, vector<16x8xf32>
    %17 = arith.addf %16, %15 : vector<16x8xf32>
    %c0_13 = arith.constant 0 : index
    %c0_14 = arith.constant 0 : index
    %18 = vector.load %arg10[%c0_13, %c0_14] : memref<16x64xf32, #tpu.memory_space<vmem>>, vector<16x8xf32>
    tpu.vector_store %arg10[%c0_13, %c0_14], %17 {strides = array<i32>} : memref<16x64xf32, #tpu.memory_space<vmem>>, vector<16x8xf32>,
    %c0_15 = arith.constant 0 : index
    %c16 = arith.constant 16 : index
    %c0_16 = arith.constant 0 : index
    %19 = vector.load %arg5[%c0_15, %c16, %c0_16] : memref<1x128x8xbf16, #tpu.memory_space<vmem>>, vector<1x16x8xbf16>
    %20 = vector.shape_cast %19 : vector<1x16x8xbf16> to vector<16x8xbf16>
    %cst_17 = arith.constant dense<0.000000e+00> : vector<16x8xf32>
    %21 = tpu.matmul %20, %12, %cst_17 {dimension_numbers = #tpu.dot_dimension_numbers<[1], [0], [0], [1], [0, 0, 1, 1], [], []>} : vector<16x8xbf16>, vector<8x8xbf16>, vector<16x8xf32> -> vector<16x8xf32>
    %c0_18 = arith.constant 0 : index
    %c8 = arith.constant 8 : index
    %22 = vector.load %arg10[%c0_18, %c8] : memref<16x64xf32, #tpu.memory_space<vmem>>, vector<16x8xf32>
    %23 = arith.addf %22, %21 : vector<16x8xf32>
    %c0_19 = arith.constant 0 : index
    %c8_20 = arith.constant 8 : index
    %24 = vector.load %arg10[%c0_19, %c8_20] : memref<16x64xf32, #tpu.memory_space<vmem>>, vector<16x8xf32>
    tpu.vector_store %arg10[%c0_19, %c8_20], %23 {strides = array<i32>} : memref<16x64xf32, #tpu.memory_space<vmem>>, vector<16x8xf32>,
    %c0_21 = arith.constant 0 : index
    %c32 = arith.constant 32 : index
    %c0_22 = arith.constant 0 : index
    %25 = vector.load %arg5[%c0_21, %c32, %c0_22] : memref<1x128x8xbf16, #tpu.memory_space<vmem>>, vector<1x16x8xbf16>
    %26 = vector.shape_cast %25 : vector<1x16x8xbf16> to vector<16x8xbf16>
    %cst_23 = arith.constant dense<0.000000e+00> : vector<16x8xf32>
    %27 = tpu.matmul %26, %12, %cst_23 {dimension_numbers = #tpu.dot_dimension_numbers<[1], [0], [0], [1], [0, 0, 1, 1], [], []>} : vector<16x8xbf16>, vector<8x8xbf16>, vector<16x8xf32> -> vector<16x8xf32>
    %c0_24 = arith.constant 0 : index
    %c16_25 = arith.constant 16 : index
    %28 = vector.load %arg10[%c0_24, %c16_25] : memref<16x64xf32, #tpu.memory_space<vmem>>, vector<16x8xf32>
    %29 = arith.addf %28, %27 : vector<16x8xf32>
    %c0_26 = arith.constant 0 : index
    %c16_27 = arith.constant 16 : index
    %30 = vector.load %arg10[%c0_26, %c16_27] : memref<16x64xf32, #tpu.memory_space<vmem>>, vector<16x8xf32>
    tpu.vector_store %arg10[%c0_26, %c16_27], %29 {strides = array<i32>} : memref<16x64xf32, #tpu.memory_space<vmem>>, vector<16x8xf32>,
    %c0_28 = arith.constant 0 : index
    %c48 = arith.constant 48 : index
    %c0_29 = arith.constant 0 : index
    %31 = vector.load %arg5[%c0_28, %c48, %c0_29] : memref<1x128x8xbf16, #tpu.memory_space<vmem>>, vector<1x16x8xbf16>
    %32 = vector.shape_cast %31 : vector<1x16x8xbf16> to vector<16x8xbf16>
    %cst_30 = arith.constant dense<0.000000e+00> : vector<16x8xf32>
    %33 = tpu.matmul %32, %12, %cst_30 {dimension_numbers = #tpu.dot_dimension_numbers<[1], [0], [0], [1], [0, 0, 1, 1], [], []>} : vector<16x8xbf16>, vector<8x8xbf16>, vector<16x8xf32> -> vector<16x8xf32>
    %c0_31 = arith.constant 0 : index
    %c24 = arith.constant 24 : index
    %34 = vector.load %arg10[%c0_31, %c24] : memref<16x64xf32, #tpu.memory_space<vmem>>, vector<16x8xf32>
    %35 = arith.addf %34, %33 : vector<16x8xf32>
    %c0_32 = arith.constant 0 : index
    %c24_33 = arith.constant 24 : index
    %36 = vector.load %arg10[%c0_32, %c24_33] : memref<16x64xf32, #tpu.memory_space<vmem>>, vector<16x8xf32>
    tpu.vector_store %arg10[%c0_32, %c24_33], %35 {strides = array<i32>} : memref<16x64xf32, #tpu.memory_space<vmem>>, vector<16x8xf32>,
    %c0_34 = arith.constant 0 : index
    %c64 = arith.constant 64 : index
    %c0_35 = arith.constant 0 : index
    %37 = vector.load %arg5[%c0_34, %c64, %c0_35] : memref<1x128x8xbf16, #tpu.memory_space<vmem>>, vector<1x16x8xbf16>
    %38 = vector.shape_cast %37 : vector<1x16x8xbf16> to vector<16x8xbf16>
    %cst_36 = arith.constant dense<0.000000e+00> : vector<16x8xf32>
    %39 = tpu.matmul %38, %12, %cst_36 {dimension_numbers = #tpu.dot_dimension_numbers<[1], [0], [0], [1], [0, 0, 1, 1], [], []>} : vector<16x8xbf16>, vector<8x8xbf16>, vector<16x8xf32> -> vector<16x8xf32>
    %c0_37 = arith.constant 0 : index
    %c32_38 = arith.constant 32 : index
    %40 = vector.load %arg10[%c0_37, %c32_38] : memref<16x64xf32, #tpu.memory_space<vmem>>, vector<16x8xf32>
    %41 = arith.addf %40, %39 : vector<16x8xf32>
    %c0_39 = arith.constant 0 : index
    %c32_40 = arith.constant 32 : index
    %42 = vector.load %arg10[%c0_39, %c32_40] : memref<16x64xf32, #tpu.memory_space<vmem>>, vector<16x8xf32>
    tpu.vector_store %arg10[%c0_39, %c32_40], %41 {strides = array<i32>} : memref<16x64xf32, #tpu.memory_space<vmem>>, vector<16x8xf32>,
    %c0_41 = arith.constant 0 : index
    %c80 = arith.constant 80 : index
    %c0_42 = arith.constant 0 : index
    %43 = vector.load %arg5[%c0_41, %c80, %c0_42] : memref<1x128x8xbf16, #tpu.memory_space<vmem>>, vector<1x16x8xbf16>
    %44 = vector.shape_cast %43 : vector<1x16x8xbf16> to vector<16x8xbf16>
    %cst_43 = arith.constant dense<0.000000e+00> : vector<16x8xf32>
    %45 = tpu.matmul %44, %12, %cst_43 {dimension_numbers = #tpu.dot_dimension_numbers<[1], [0], [0], [1], [0, 0, 1, 1], [], []>} : vector<16x8xbf16>, vector<8x8xbf16>, vector<16x8xf32> -> vector<16x8xf32>
    %c0_44 = arith.constant 0 : index
    %c40 = arith.constant 40 : index
    %46 = vector.load %arg10[%c0_44, %c40] : memref<16x64xf32, #tpu.memory_space<vmem>>, vector<16x8xf32>
    %47 = arith.addf %46, %45 : vector<16x8xf32>
    %c0_45 = arith.constant 0 : index
    %c40_46 = arith.constant 40 : index
    %48 = vector.load %arg10[%c0_45, %c40_46] : memref<16x64xf32, #tpu.memory_space<vmem>>, vector<16x8xf32>
    tpu.vector_store %arg10[%c0_45, %c40_46], %47 {strides = array<i32>} : memref<16x64xf32, #tpu.memory_space<vmem>>, vector<16x8xf32>,
    %c0_47 = arith.constant 0 : index
    %c96 = arith.constant 96 : index
    %c0_48 = arith.constant 0 : index
    %49 = vector.load %arg5[%c0_47, %c96, %c0_48] : memref<1x128x8xbf16, #tpu.memory_space<vmem>>, vector<1x16x8xbf16>
    %50 = vector.shape_cast %49 : vector<1x16x8xbf16> to vector<16x8xbf16>
    %cst_49 = arith.constant dense<0.000000e+00> : vector<16x8xf32>
    %51 = tpu.matmul %50, %12, %cst_49 {dimension_numbers = #tpu.dot_dimension_numbers<[1], [0], [0], [1], [0, 0, 1, 1], [], []>} : vector<16x8xbf16>, vector<8x8xbf16>, vector<16x8xf32> -> vector<16x8xf32>
    %c0_50 = arith.constant 0 : index
    %c48_51 = arith.constant 48 : index
    %52 = vector.load %arg10[%c0_50, %c48_51] : memref<16x64xf32, #tpu.memory_space<vmem>>, vector<16x8xf32>
    %53 = arith.addf %52, %51 : vector<16x8xf32>
    %c0_52 = arith.constant 0 : index
    %c48_53 = arith.constant 48 : index
    %54 = vector.load %arg10[%c0_52, %c48_53] : memref<16x64xf32, #tpu.memory_space<vmem>>, vector<16x8xf32>
    tpu.vector_store %arg10[%c0_52, %c48_53], %53 {strides = array<i32>} : memref<16x64xf32, #tpu.memory_space<vmem>>, vector<16x8xf32>,
    %c0_54 = arith.constant 0 : index
    %c112 = arith.constant 112 : index
    %c0_55 = arith.constant 0 : index
    %55 = vector.load %arg5[%c0_54, %c112, %c0_55] : memref<1x128x8xbf16, #tpu.memory_space<vmem>>, vector<1x16x8xbf16>
    %56 = vector.shape_cast %55 : vector<1x16x8xbf16> to vector<16x8xbf16>
    %cst_56 = arith.constant dense<0.000000e+00> : vector<16x8xf32>
    %57 = tpu.matmul %56, %12, %cst_56 {dimension_numbers = #tpu.dot_dimension_numbers<[1], [0], [0], [1], [0, 0, 1, 1], [], []>} : vector<16x8xbf16>, vector<8x8xbf16>, vector<16x8xf32> -> vector<16x8xf32>
    %c0_57 = arith.constant 0 : index
    %c56 = arith.constant 56 : index
    %58 = vector.load %arg10[%c0_57, %c56] : memref<16x64xf32, #tpu.memory_space<vmem>>, vector<16x8xf32>
    %59 = arith.addf %58, %57 : vector<16x8xf32>
    %c0_58 = arith.constant 0 : index
    %c56_59 = arith.constant 56 : index
    %60 = vector.load %arg10[%c0_58, %c56_59] : memref<16x64xf32, #tpu.memory_space<vmem>>, vector<16x8xf32>
    tpu.vector_store %arg10[%c0_58, %c56_59], %59 {strides = array<i32>} : memref<16x64xf32, #tpu.memory_space<vmem>>, vector<16x8xf32>,
    %c0_i32_60 = arith.constant 0 : i32
    %61 = arith.cmpi eq, %arg2, %c0_i32_60 : i32
    %62 = arith.extui %61 : i1 to i32
    %c0_i32_61 = arith.constant 0 : i32
    %63 = arith.cmpi ne, %62, %c0_i32_61 : i32
    scf.if %63 {
      %c0_62 = arith.constant 0 : index
      %c0_63 = arith.constant 0 : index
      %64 = vector.load %arg10[%c0_62, %c0_63] : memref<16x64xf32, #tpu.memory_space<vmem>>, vector<16x64xf32>
      %65 = arith.truncf %64 : vector<16x64xf32> to vector<16x64xbf16>
      %c0_64 = arith.constant 0 : index
      %c0_65 = arith.constant 0 : index
      %66 = vector.load %arg6[%c0_64, %c0_65] : memref<64x32xbf16, #tpu.memory_space<vmem>>, vector<64x32xbf16>
      %cst_66 = arith.constant dense<0.000000e+00> : vector<16x32xf32>
      %67 = tpu.matmul %65, %66, %cst_66 {dimension_numbers = #tpu.dot_dimension_numbers<[1], [0], [0], [1], [0, 0, 1, 1], [], []>} : vector<16x64xbf16>, vector<64x32xbf16>, vector<16x32xf32> -> vector<16x32xf32>
      %c0_67 = arith.constant 0 : index
      %c0_68 = arith.constant 0 : index
      %68 = vector.load %arg7[%c0_67, %c0_68] : memref<1x32xf32, #tpu.memory_space<vmem>>, vector<1x32xf32>
      %69 = vector.broadcast %68 : vector<1x32xf32> to vector<16x32xf32>
      %70 = arith.addf %67, %69 : vector<16x32xf32>
      %71 = vector.extract_strided_slice %70 {offsets = [0, 16], sizes = [16, 16], strides = [1, 1]} : vector<16x32xf32> to vector<16x16xf32>
      %72 = arith.negf %71 : vector<16x16xf32>
      %73 = math.exp %72 : vector<16x16xf32>
      %cst_69 = arith.constant 1.000000e+00 : f32
      %74 = vector.broadcast %cst_69 : f32 to vector<16x16xf32>
      %75 = arith.addf %74, %73 : vector<16x16xf32>
      %76 = arith.divf %74, %75 : vector<16x16xf32>
      %77 = arith.mulf %71, %76 : vector<16x16xf32>
      %78 = vector.extract_strided_slice %70 {offsets = [0, 0], sizes = [16, 16], strides = [1, 1]} : vector<16x32xf32> to vector<16x16xf32>
      %79 = arith.mulf %77, %78 : vector<16x16xf32>
      %c0_70 = arith.constant 0 : index
      %80 = arith.index_cast %arg1 : i32 to index
      %c0_71 = arith.constant 0 : index
      %81 = vector.load %arg8[%c0_70, %80, %c0_71] : memref<1x16x1xf32, #tpu.memory_space<vmem>>, vector<1x1x1xf32>
      %82 = vector.shape_cast %81 : vector<1x1x1xf32> to vector<1x1xf32>
      %c0_72 = arith.constant 0 : index
      %c0_73 = arith.constant 0 : index
      %c0_74 = arith.constant 0 : index
      %83 = vector.load %arg8[%c0_72, %c0_73, %c0_74] : memref<1x16x1xf32, #tpu.memory_space<vmem>>, vector<1x16x1xf32>
      %84 = vector.shape_cast %83 : vector<1x16x1xf32> to vector<16x1xf32>
      %85 = vector.broadcast %82 : vector<1x1xf32> to vector<16x1xf32>
      %86 = arith.mulf %84, %85 : vector<16x1xf32>
      %87 = vector.broadcast %86 : vector<16x1xf32> to vector<16x16xf32>
      %88 = arith.mulf %79, %87 : vector<16x16xf32>
      %c0_75 = arith.constant 0 : index
      %c0_76 = arith.constant 0 : index
      %c0_77 = arith.constant 0 : index
      %c0_78 = arith.constant 0 : index
      %89 = vector.load %arg9[%c0_75, %c0_76, %c0_77, %c0_78] : memref<1x1x16x16xf32, #tpu.memory_space<vmem>>, vector<1x1x16x16xf32>
      %90 = vector.shape_cast %89 : vector<1x1x16x16xf32> to vector<16x16xf32>
      %91 = vector.shape_cast %88 : vector<16x16xf32> to vector<1x1x16x16xf32>
      tpu.vector_store %arg9[%c0_75, %c0_76, %c0_77, %c0_78], %91 {strides = array<i32>} : memref<1x1x16x16xf32, #tpu.memory_space<vmem>>, vector<1x1x16x16xf32>,
    } else {
    }
    return
  }
  func.func @transform_0(%arg0: i32, %arg1: i32, %arg2: i32) -> (i32, i32, i32) {
    %c0_i32 = arith.constant 0 : i32
    %c0_i32_0 = arith.constant 0 : i32
    return %arg0, %arg2, %c0_i32 : i32, i32, i32
  }
  func.func @transform_1(%arg0: i32, %arg1: i32, %arg2: i32) -> (i32, i32, i32, i32) {
    %c0_i32 = arith.constant 0 : i32
    %c0_i32_0 = arith.constant 0 : i32
    return %arg0, %arg1, %arg2, %c0_i32 : i32, i32, i32, i32
  }
  func.func @transform_2(%arg0: i32, %arg1: i32, %arg2: i32) -> (i32, i32, i32) {
    %c0_i32 = arith.constant 0 : i32
    %c0_i32_0 = arith.constant 0 : i32
    return %arg0, %c0_i32, %arg2 : i32, i32, i32
  }
  func.func @transform_3(%arg0: i32, %arg1: i32, %arg2: i32) -> (i32, i32) {
    %c0_i32 = arith.constant 0 : i32
    %c0_i32_0 = arith.constant 0 : i32
    %c0_i32_1 = arith.constant 0 : i32
    return %c0_i32, %c0_i32_0 : i32, i32
  }
  func.func @transform_4(%arg0: i32, %arg1: i32, %arg2: i32) -> (i32, i32) {
    %c0_i32 = arith.constant 0 : i32
    %c0_i32_0 = arith.constant 0 : i32
    %c0_i32_1 = arith.constant 0 : i32
    return %c0_i32, %c0_i32_0 : i32, i32
  }
  func.func @transform_5(%arg0: i32, %arg1: i32, %arg2: i32) -> (i32, i32, i32) {
    %c0_i32 = arith.constant 0 : i32
    %c0_i32_0 = arith.constant 0 : i32
    %c0_i32_1 = arith.constant 0 : i32
    return %arg0, %c0_i32, %c0_i32_0 : i32, i32, i32
  }
  func.func @transform_6(%arg0: i32, %arg1: i32, %arg2: i32) -> (i32, i32, i32, i32) {
    %c0_i32 = arith.constant 0 : i32
    %c0_i32_0 = arith.constant 0 : i32
    %c0_i32_1 = arith.constant 0 : i32
    return %arg0, %arg1, %c0_i32, %c0_i32_0 : i32, i32, i32, i32
  }
}

</mosaic_0001>

<bundles_post_ra>
// kernel: forward.3
= control target key start
LH: loop header
LB: loop body
LE: loop exit
PB: predicated region body
PF: predicated region fallthrough
CT: control target
= control target key end

     0   :  { %11 = vsyncpa [#allocation4], 0  ;;  %s1829_s0 = inlined_call_operand.vmem [shape: f32[2,8,1], index: 0, kind: input, shape index: {}]   ;;  %s1830_s1 = inlined_call_operand.vmem [shape: bf16[2,16,8,8], index: 1, kind: input, shape index: {}]   ;;  %s1831_s2 = inlined_call_operand.vmem [shape: bf16[2,128,8], index: 2, kind: input, shape index: {}]   ;;  %s1832_s3 = inlined_call_operand.vmem [shape: bf16[64,32], index: 3, kind: input, shape index: {}]   ;;  %s1833_s4 = inlined_call_operand.vmem [shape: f32[1,32], index: 4, kind: input, shape index: {}]   ;;  %s1834_s5 = inlined_call_operand.vmem [shape: f32[2,16,1], index: 5, kind: input, shape index: {}]   ;;  %s1835_s6 = inlined_call_operand.hbm [shape: f32[2,16,16,16], index: 6, kind: output, shape index: {}]  }
   0x1   :  { %13 = vsyncpa [#allocation4 + $0x1], 0  ;;  %s1588_s21 = smov 0   ;;  %s1590_s22 = smov 0  }
   0x2   :  { %s1592_s23 = smov 0   ;;  %s1594_s24 = smov 0  }
   0x3   :  { %s1596_s25 = smov 0   ;;  %s1598_s26 = smov 0  }
   0x4   :  { %s1600_s27 = smov 0   ;;  %s1602_s28 = smov 0  }
   0x5 LB: > { %s1212_s29 = sadd.s32 4294967295, %s1538_s28   ;;  %s1213_s30 = sadd.s32 4294967294, %s1538_s28   ;;  %s1538_s28 = sphi %s1602_s28, %s19_s28   ;;  %s1534_s27 = sphi %s1600_s27, %s1846_s27   ;;  %s1530_s26 = sphi %s1598_s26, %s1845_s26   ;;  %s1526_s25 = sphi %s1596_s25, %s1844_s25   ;;  %s1522_s24 = sphi %s1594_s24, %s1843_s24   ;;  %s1518_s23 = sphi %s1592_s23, %s1842_s23   ;;  %s1514_s22 = sphi %s1590_s22, %s1841_s22   ;;  %s1510_s21 = sphi %s1588_s21, %s1840_s21  }
   0x6   : > { %s34_s7 = sadd.s32 1, %s1530_s26  ;;  %s38_s8 = sadd.s32 1, %s1534_s27 }
   0x7   : > { %p36_p0 = scmp.ge.s32.totalorder %s34_s7, 16  ;;  %p211_p1 = scmp.ne.s32.totalorder %s1518_s23, %s1514_s22 }
   0x8   : > { %p212_p2 = scmp.eq.s32.totalorder %s1212_s29, 31  ;;  %p217_p5 = scmp.ne.s32.totalorder %s1514_s22, %s1510_s21 }
   0x9   : > { %s1848_s7 = smov (%p36_p0, %s34_s7), 0  ;;  %s1850_s8 = smov (!%p36_p0, %s38_s8), %s1534_s27 }
   0xa   : > { %s197_s9 = ssub.s32 %s1530_s26, %s1848_s7  ;;  %p1639_p3 = por %p212_p2, %p211_p1 }
   0xb   : > { %p40_p4 = scmp.ge.s32.totalorder %s1850_s8, 2  ;;  %p218_p6 = scmp.eq.s32.totalorder %s1213_s30, 31 }
   0xc   : > { %p1216_p7 = scmp.ge.s32.totalorder %s1538_s28, 1  ;;  %p285_p9 = scmp.lt.s32.totalorder %s1538_s28, 33 }
   0xd   : > { %s1852_s8 = smov (%p40_p4, %s1850_s8), 0  ;;  %p1648_p8 = por %p218_p6, %p217_p5 }
   0xe   : > { %s196_s12 = ssub.s32 %s1534_s27, %s1852_s8  ;;  %s201_s13 = sadd.s32 1, %s1518_s23 }
   0xf   : > { %s198_s14 = sor.u32 %s197_s9, %s196_s12  ;;  %p286_p10 = pnand %p1216_p7, %p285_p9 }
  0x10   : > { %p199_p11 = scmp.eq.s32.totalorder %s198_s14, 0  ;;  %p341_p12 = scmp.lt.s32.totalorder (!%p286_p10), %s1526_s25, 1  ;;  %v1540_v0 = vmov (!%p286_p10), 0   ;;  %v1541_v3 = vmov (!%p286_p10), 0.0   ;;  %vm1542_vm0 = vmmov (!%p286_p10), 0   ;;  %vm377_vm1 = vcmask (!%p286_p10), 523264  }
  0x11   : > { %289 = sbr.rel (%p286_p10) target bundleno = 1041 (0x411), region = 44  ;;  %1422 = vset.pattern.permute.xlu0 (!%p286_p10), %v1540_v0  ;;  %1423 = vset.pattern.permute.xlu1 (!%p286_p10), %v1540_v0  ;;  %378 = vst.msk [vmem:[#allocation2] sm:$0xff] (!%p286_p10), %vm377_vm1, %v1541_v3  ;;  %379 = vst.msk [vmem:[#allocation2 + $0x8] sm:$0xff] (!%p286_p10), %vm377_vm1, %v1541_v3  ;;  %p350_p13 = scmp.lt.s32.totalorder (!%p286_p10), %s1522_s24, 15  ;;  %vm402_vm2 = vcmask (!%p286_p10), 1043456   ;;  %vm398_vm3 = vcmask (!%p286_p10), 64512  }
  0x12   : > { %s1657_s15 = scalar_select %p199_p11, %s1518_s23, %s201_s13  }
  0x13   : > { %1279 = vmatprep.subr.bf16.mxu1 (!%p286_p10), %v1541_v3  ;;  %1291 = vmatprep.subr.bf16.mxu0 (!%p286_p10), %v1541_v3  ;;  %s1836_s30 = smov (!%p286_p10), 8   ;;  %s1544_s9 = smov (!%p286_p10), 16   ;;  %v1432_v57 = vld [vmem:[%s1832_s3] sm:$0xff] (!%p286_p10)   ;;  %v1433_v58 = vld [vmem:[%s1832_s3 + $0x8] sm:$0xff] (!%p286_p10)   ;;  %v1434_v59 = vld [vmem:[%s1832_s3 + $0x10] sm:$0xff] (!%p286_p10)   ;;  %vm516_vm4 = vcmask (!%p286_p10), 130112  }
  0x14   : > { %1281 = vmatprep.mubr.msk.bf16.mxu1 (!%p286_p10), %vm1542_vm0, %v1541_v3  ;;  %1293 = vmatprep.mubr.msk.bf16.mxu0 (!%p286_p10), %vm1542_vm0, %v1541_v3  ;;  %s1547_s20 = smov (!%p286_p10), 40   ;;  %v1435_v60 = vld [vmem:[%s1832_s3 + $0x18] sm:$0xff] (!%p286_p10)   ;;  %vm582_vm5 = vcmask (!%p286_p10), 195712   ;;  %vm648_vm6 = vcmask (!%p286_p10), 261312   ;;  %vm714_vm7 = vcmask (!%p286_p10), 326912   ;;  %vm780_vm8 = vcmask (!%p286_p10), 392512  }
  0x15   : > { %vm846_vm9 = vcmask (!%p286_p10), 458112   ;;  %vm912_vm10 = vcmask (!%p286_p10), 523712   ;;  %vm1059_vm11 = vcmask (!%p286_p10), 130048  }
  0x18   : > { %s1661_s16 = scalar_select %p341_p12, %s1526_s25, 1  ;;  %v447_v18 = vld [vmem:[#allocation2] sm:$0xff]  ;;  %v448_v20 = vld [vmem:[#allocation2 + $0x8] sm:$0xff] }
  0x19   : > { %s351_s13 = scalar_select %p350_p13, %s1522_s24, 15 }
  0x1a   : > { %s1218_s17 = sshll.u32 %s1661_s16, 3  ;;  %s1256_s18 = sshll.u32 %s1661_s16, 6 }
  0x1b   : > { %s347_s29 = scalar_lea.vmem %s1829_s0, %s1218_s17  ;;  %s1671_s12 = scalar_lea.vmem %s1831_s2, %s1256_s18 }
  0x1c   : > { %v380_v1 = vld [vmem:[%s347_s29] sm:$0xff]  ;;  %s1219_s14 = sshll.u32 %s1661_s16, 4  ;;  %v1425_v11 = vld [vmem:[%s1671_s12 + $0x10] sm:$0xff]   ;;  %v1426_v12 = vld [vmem:[%s1671_s12 + $0x8] sm:$0xff]   ;;  %s1549_s16 = smov 56  }
  0x1d   : > { %v381_v2 = vadd.f32 1e-32, %v380_v1  ;;  %s356_s17 = sadd.s32 %s1219_s14, %s351_s13  ;;  %v1424_v10 = vld [vmem:[%s1671_s12] sm:$0xff]   ;;  %v1428_v14 = vld [vmem:[%s1671_s12 + $0x18] sm:$0xff]   ;;  %v1430_v15 = vld [vmem:[%s1671_s12 + $0x30] sm:$0xff]   ;;  %s1546_s13 = smov 32  }
  0x1e   : > { %s1220_s18 = sshll.u32 %s356_s17, 2  ;;  %v1427_v13 = vld [vmem:[%s1671_s12 + $0x20] sm:$0xff]   ;;  %v1429_v16 = vld [vmem:[%s1671_s12 + $0x28] sm:$0xff]   ;;  %v1431_v17 = vld [vmem:[%s1671_s12 + $0x38] sm:$0xff]   ;;  %s1545_s12 = smov 24  }
  0x1f   : > { %386 = vperm.xlu0 %1422, %v381_v2   ;;  %s358_s29 = scalar_lea.vmem %s1830_s1, %s1220_s18  ;;  %s1739_s19 = scalar_lea.vmem %s1834_s5, %s1219_s14 }
  0x20   : > { %v382_v4 = vld [vmem:[%s358_s29] sm:$0xf]  ;;  %s1029_s29 = scalar_lea.vmem %s1739_s19, %s1522_s24  ;;  %v1032_v52 = vld [vmem:[%s1739_s19 + $0x8] sm:$0xff]  ;;  %s1251_s18 = sshll.u32 %s1522_s24, 1 }
  0x21   : > { %v383_v5 = vunpack.c.l.bf16 %v382_v4  ;;  %v1249_v51 = vld [vmem:[%s1029_s29] ss:$0 sm:$0xff] }
  0x22   : > { %v1038_v55 = vmul.f32 %v1249_v51, %v1032_v52  ;;  %v1031_v61 = vld [vmem:[%s1739_s19] sm:$0xff] }
  0x23   : > { %v1037_v62 = vmul.f32 %v1249_v51, %v1031_v61 }
  0x9e   : > { %v387_v6 = vpop.permute.xlu0 %386 }
  0x9f   : > { %v389_v7 = vmul.f32 %v387_v6, %v383_v5 }
  0xa1   : > { %v390_v8 = vpack.c.bf16 %v389_v7, %v389_v7 }
  0xa3   : > { %v404_v9 = vsel %vm402_vm2, %v390_v8, 0 }
  0xa4   : > { %1280 = vmatpush3.bf16.msra.mxu1 %v404_v9  ;;  %1292 = vmatpush3.bf16.msra.mxu0 %v404_v9 }
  0xa5   : > { %1285 = vmatprep.subr.bf16.mxu1 %v1541_v3  ;;  %1303 = vmatprep.subr.bf16.mxu0 %v1541_v3 }
  0xa7   : > { %1282 = vmatmul.mubr.msk.bf16.vlgmr.msra.gmra.mrb[0].mxu1 %vm398_vm3, %v1424_v10  ;;  %1294 = vmatmul.mubr.msk.bf16.vlgmr.msra.gmra.mrb[0].mxu0 %vm398_vm3, %v1425_v11 }
  0xa8   : > { %1286 = vmatpush3.bf16.msra.mxu1 %v404_v9  ;;  %1304 = vmatpush3.bf16.msra.mxu0 %v404_v9 }
  0xa9   : > { %1287 = vmatprep.mubr.msk.bf16.mxu1 %vm1542_vm0, %v1541_v3  ;;  %1297 = vmatprep.subr.bf16.mxu1 %v1541_v3 }
  0xaa   : > { %1305 = vmatprep.mubr.msk.bf16.mxu0 %vm1542_vm0, %v1541_v3  ;;  %1315 = vmatprep.subr.bf16.mxu0 %v1541_v3 }
  0xaf   : > { %1288 = vmatmul.mubr.msk.bf16.vlgmr.msra.gmra.mrb[4].mxu1 %vm398_vm3, %v1426_v12  ;;  %1306 = vmatmul.mubr.msk.bf16.vlgmr.msra.gmra.mrb[4].mxu0 %vm398_vm3, %v1427_v13 }
  0xb0   : > { %1298 = vmatpush3.bf16.msra.mxu1 %v404_v9  ;;  %1316 = vmatpush3.bf16.msra.mxu0 %v404_v9 }
  0xb1   : > { %1299 = vmatprep.mubr.msk.bf16.mxu1 %vm1542_vm0, %v1541_v3  ;;  %1309 = vmatprep.subr.bf16.mxu1 %v1541_v3 }
  0xb2   : > { %1317 = vmatprep.mubr.msk.bf16.mxu0 %vm1542_vm0, %v1541_v3  ;;  %1327 = vmatprep.subr.bf16.mxu0 %v1541_v3 }
  0xb7   : > { %1300 = vmatmul.mubr.msk.bf16.vlgmr.msra.gmra.mrb[8].mxu1 %vm398_vm3, %v1428_v14  ;;  %1318 = vmatmul.mubr.msk.bf16.vlgmr.msra.gmra.mrb[8].mxu0 %vm398_vm3, %v1430_v15 }
  0xb8   : > { %1310 = vmatpush3.bf16.msra.mxu1 %v404_v9  ;;  %1311 = vmatprep.mubr.msk.bf16.mxu1 %vm1542_vm0, %v1541_v3 }
  0xb9   : > { %1321 = vmatprep.subr.bf16.mxu1 %v1541_v3  ;;  %1335 = vmatprep.mubr.msk.bf16.mxu0 %vm1542_vm0, %v1541_v3 }
  0xba   : > { %1328 = vmatpush3.bf16.msra.mxu0 %v1432_v57 }
  0xbb   : > { %1329 = vmatprep.subr.bf16.mxu0 %v1541_v3 }
  0xbe   : > { %1330 = vmatpush3.bf16.msra.mxu0 %v1433_v58 }
  0xbf   : > { %1312 = vmatmul.mubr.msk.bf16.vlgmr.msra.gmra.mrb[12].mxu1 %vm398_vm3, %v1429_v16  ;;  %1331 = vmatprep.subr.bf16.mxu0 %v1541_v3 }
  0xc0   : > { %1322 = vmatpush3.bf16.msra.mxu1 %v404_v9  ;;  %1323 = vmatprep.mubr.msk.bf16.mxu1 %vm1542_vm0, %v1541_v3 }
  0xc2   : > { %1332 = vmatpush3.bf16.msra.mxu0 %v1434_v59 }
  0xc3   : > { %1333 = vmatprep.subr.bf16.mxu0 %v1541_v3 }
  0xc6   : > { %1334 = vmatpush3.bf16.msra.mxu0 %v1435_v60 }
  0xc7   : > { %1324 = vmatmul.mubr.msk.bf16.vlgmr.msra.gmra.mrb[16].mxu1 %vm398_vm3, %v1431_v17 }
 0x17a   : > { %v440_v19 = vpop.f32.mrb[0].mxu1  ;;  %v563_v21 = vpop.f32.mrb[0].mxu0 }
 0x17b   : > { %v449_v22 = vadd.f32 %v447_v18, %v440_v19  ;;  %v1283_v23 = vpop.f32.mrb[1].mxu1  ;;  %v1295_v24 = vpop.f32.mrb[1].mxu0 }
 0x17c   : > { %v443_v25 = vpop.f32.mrb[2].mxu1  ;;  %v566_v26 = vpop.f32.mrb[2].mxu0 }
 0x17d   : > { %451 = vst.msk [vmem:[#allocation2] sm:$0xff] %vm398_vm3, %v449_v22  ;;  %v450_v27 = vadd.f32 %v448_v20, %v443_v25  ;;  %v1284_v28 = vpop.f32.mrb[3].mxu1  ;;  %v1296_v29 = vpop.f32.mrb[3].mxu0 }
 0x17f   : > { %452 = vst.msk [vmem:[#allocation2 + $0x8] sm:$0xff] %vm398_vm3, %v450_v27 }
 0x182   : > { %v497_v30 = vpop.f32.mrb[4].mxu1  ;;  %v695_v31 = vpop.f32.mrb[4].mxu0 }
 0x183   : > { %508 = vrot.lane.b32.xlu0 %v497_v30, %s1836_s30  ;;  %v1289_v32 = vpop.f32.mrb[5].mxu1  ;;  %v1307_v33 = vpop.f32.mrb[5].mxu0 }
 0x184   : > { %v500_v34 = vpop.f32.mrb[6].mxu1  ;;  %v698_v35 = vpop.f32.mrb[6].mxu0  ;;  %v504_v63 = vld [vmem:[#allocation2] sm:$0xff] }
 0x185   : > { %510 = vrot.lane.b32.xlu1 %v500_v34, %s1836_s30  ;;  %v1290_v36 = vpop.f32.mrb[7].mxu1  ;;  %v1308_v37 = vpop.f32.mrb[7].mxu0 }
 0x186   : > { %v505_v2 = vld [vmem:[#allocation2 + $0x8] sm:$0xff] }
 0x187   : > { %576 = vrot.lane.b32.xlu0 %v566_v26, %s1544_s9 }
 0x189   : > { %574 = vrot.lane.b32.xlu1 %v563_v21, %s1544_s9 }
 0x18a   : > { %v629_v38 = vpop.f32.mrb[8].mxu1  ;;  %v827_v39 = vpop.f32.mrb[8].mxu0 }
 0x18b   : > { %v1301_v40 = vpop.f32.mrb[9].mxu1  ;;  %v1319_v41 = vpop.f32.mrb[9].mxu0 }
 0x18c   : > { %v632_v42 = vpop.f32.mrb[10].mxu1  ;;  %v830_v43 = vpop.f32.mrb[10].mxu0 }
 0x18d   : > { %642 = vrot.lane.b32.xlu0 %v632_v42, %s1545_s12  ;;  %v1302_v44 = vpop.f32.mrb[11].mxu1  ;;  %640 = vrot.lane.b32.xlu1 %v629_v38, %s1545_s12  ;;  %v1320_v45 = vpop.f32.mrb[11].mxu0  ;;  %s1548_s12 = smov 48  }
 0x18e   : > { %v1241_v44 = vld [vmem:[%s1833_s4] ss:$0 sm:$0xff] }
 0x191   : > { %708 = vrot.lane.b32.xlu0 %v698_v35, %s1546_s13  ;;  %706 = vrot.lane.b32.xlu1 %v695_v31, %s1546_s13  ;;  %s338_s13 = sand.u32 1, %s1514_s22  }
 0x192   : > { %v761_v46 = vpop.f32.mrb[12].mxu1  ;;  %s1217_s17 = sshll.u32 %s338_s13, 4  ;;  %s1776_s24 = scalar_lea.sflag [#allocation4], %s338_s13 }
 0x193   : > { %v1313_v47 = vpop.f32.mrb[13].mxu1 }
 0x194   : > { %v764_v48 = vpop.f32.mrb[14].mxu1 }
 0x195   : > { %774 = vrot.lane.b32.xlu0 %v764_v48, %s1547_s20  ;;  %v1314_v49 = vpop.f32.mrb[15].mxu1  ;;  %772 = vrot.lane.b32.xlu1 %v761_v46, %s1547_s20  ;;  %s1252_s20 = sshll.u32 %s1526_s25, 5 }
 0x196   : > { %s1075_s29 = sadd.s32 %s1252_s20, %s1251_s18 }
 0x197   : > { %s1253_s19 = sshll.u32 %s1075_s29, 7 }
 0x199   : > { %840 = vrot.lane.b32.xlu0 %v830_v43, %s1548_s12  ;;  %838 = vrot.lane.b32.xlu1 %v827_v39, %s1548_s12  ;;  %s340_s12 = scalar_lea.vmem [#allocation3], %s1217_s17  ;;  %s1551_s17 = smov [#allocation3]  }
 0x19a   : > { %v893_v50 = vpop.f32.mrb[16].mxu1  ;;  %s1448_s18 = sshll.u32 %s1551_s17, 4  ;;  %s1449_s18 = int_to_ptr.vmem [resolvable:$false] %s1448_s18 }
 0x19b   : > { %v1325_v53 = vpop.f32.mrb[17].mxu1  ;;  %s1450_s20 = scalar_lea.vmem %s1449_s18, 512 }
 0x19c   : > { %v896_v54 = vpop.f32.mrb[18].mxu1 }
 0x19d   : > { %906 = vrot.lane.b32.xlu0 %v896_v54, %s1549_s16  ;;  %904 = vrot.lane.b32.xlu1 %v893_v50, %s1549_s16  ;;  %v1326_v56 = vpop.f32.mrb[19].mxu1  ;;  %s1078_s16 = sshll.u32 %s340_s12, 4  ;;  %s1769_s16 = int_to_ptr.vmem [resolvable:$true] %s1078_s16 }
 0x19e   : > { %s1444_s25 = scalar_lea.vmem %s1769_s16, 256  ;;  %p1451_p4 = scmp.lt.s32.totalorder %s1769_s16, %s1449_s18 }
 0x19f   : > { %p1445_p0 = scmp.ne.s32.totalorder %s1769_s16, %s1444_s25  ;;  %p1452_p5 = scmp.lt.s32.totalorder %s1450_s20, %s1444_s25 }
 0x1a1   : > { %1046 = vperm.xlu0 %1422, %v1038_v55   ;;  %1041 = vperm.xlu1 %1423, %v1037_v62   ;;  %p1446_p1 = pnand %p1445_p0, %p1639_p3  ;;  %p1453_p6 = por %p1452_p5, %p1451_p4 }
 0x1a3   : > { %p1447_p2 = pneg %p1446_p1 }
 0x1a5   : > { %p1454_p7 = pnand %p1453_p6, %p1447_p2 }
 0x1f5   : > { %v509_v0 = vpop.permute.xlu0 %508 }
 0x1f6   : > { %v514_v1 = vadd.f32 %v509_v0, %v504_v63 }
 0x1f7   : > { %v511_v4 = vpop.permute.xlu1 %510 }
 0x1f8   : > { %517 = vst.msk [vmem:[#allocation2] sm:$0xff] %vm516_vm4, %v514_v1  ;;  %v515_v5 = vadd.f32 %v511_v4, %v505_v2 }
 0x1f9   : > { %v577_v9 = vpop.permute.xlu0 %576 }
 0x1fa   : > { %518 = vst.msk [vmem:[#allocation2 + $0x8] sm:$0xff] %vm516_vm4, %v515_v5 }
 0x1fb   : > { %v575_v6 = vpop.permute.xlu1 %574 }
 0x1ff   : > { %v570_v7 = vld [vmem:[#allocation2] sm:$0xff]  ;;  %v641_v11 = vpop.permute.xlu1 %640  ;;  %v643_v15 = vpop.permute.xlu0 %642 }
 0x200   : > { %v580_v8 = vadd.f32 %v575_v6, %v570_v7 }
 0x201   : > { %v571_v10 = vld [vmem:[#allocation2 + $0x8] sm:$0xff] }
 0x202   : > { %583 = vst.msk [vmem:[#allocation2] sm:$0xff] %vm582_vm5, %v580_v8  ;;  %v581_v3 = vadd.f32 %v577_v9, %v571_v10 }
 0x203   : > { %v707_v17 = vpop.permute.xlu1 %706  ;;  %v709_v21 = vpop.permute.xlu0 %708 }
 0x204   : > { %584 = vst.msk [vmem:[#allocation2 + $0x8] sm:$0xff] %vm582_vm5, %v581_v3 }
 0x207   : > { %v773_v23 = vpop.permute.xlu1 %772  ;;  %v775_v27 = vpop.permute.xlu0 %774 }
 0x209   : > { %v636_v12 = vld [vmem:[#allocation2] sm:$0xff] }
 0x20a   : > { %v646_v13 = vadd.f32 %v641_v11, %v636_v12 }
 0x20b   : > { %v637_v14 = vld [vmem:[#allocation2 + $0x8] sm:$0xff]  ;;  %v839_v29 = vpop.permute.xlu1 %838  ;;  %v841_v33 = vpop.permute.xlu0 %840 }
 0x20c   : > { %649 = vst.msk [vmem:[#allocation2] sm:$0xff] %vm648_vm6, %v646_v13  ;;  %v647_v16 = vadd.f32 %v643_v15, %v637_v14 }
 0x20e   : > { %650 = vst.msk [vmem:[#allocation2 + $0x8] sm:$0xff] %vm648_vm6, %v647_v16 }
 0x20f   : > { %v905_v35 = vpop.permute.xlu1 %904  ;;  %v907_v39 = vpop.permute.xlu0 %906 }
 0x213   : > { %v702_v18 = vld [vmem:[#allocation2] sm:$0xff] }
 0x214   : > { %v712_v19 = vadd.f32 %v707_v17, %v702_v18 }
 0x215   : > { %v703_v20 = vld [vmem:[#allocation2 + $0x8] sm:$0xff] }
 0x216   : > { %v713_v22 = vadd.f32 %v709_v21, %v703_v20  ;;  %715 = vst.msk [vmem:[#allocation2] sm:$0xff] %vm714_vm7, %v712_v19 }
 0x218   : > { %716 = vst.msk [vmem:[#allocation2 + $0x8] sm:$0xff] %vm714_vm7, %v713_v22 }
 0x21d   : > { %v768_v24 = vld [vmem:[#allocation2] sm:$0xff] }
 0x21e   : > { %v778_v25 = vadd.f32 %v773_v23, %v768_v24 }
 0x21f   : > { %v769_v26 = vld [vmem:[#allocation2 + $0x8] sm:$0xff] }
 0x220   : > { %v779_v28 = vadd.f32 %v775_v27, %v769_v26  ;;  %781 = vst.msk [vmem:[#allocation2] sm:$0xff] %vm780_vm8, %v778_v25  ;;  %v1042_v57 = vpop.permute.xlu1 %1041  ;;  %v1047_v60 = vpop.permute.xlu0 %1046 }
 0x222   : > { %782 = vst.msk [vmem:[#allocation2 + $0x8] sm:$0xff] %vm780_vm8, %v779_v28 }
 0x227   : > { %v834_v30 = vld [vmem:[#allocation2] sm:$0xff] }
 0x228   : > { %v844_v31 = vadd.f32 %v839_v29, %v834_v30 }
 0x229   : > { %v835_v32 = vld [vmem:[#allocation2 + $0x8] sm:$0xff] }
 0x22a   : > { %v845_v34 = vadd.f32 %v841_v33, %v835_v32  ;;  %847 = vst.msk [vmem:[#allocation2] sm:$0xff] %vm846_vm9, %v844_v31 }
 0x22c   : > { %848 = vst.msk [vmem:[#allocation2 + $0x8] sm:$0xff] %vm846_vm9, %v845_v34 }
 0x231   : > { %v900_v36 = vld [vmem:[#allocation2] sm:$0xff] }
 0x232   : > { %v910_v37 = vadd.f32 %v905_v35, %v900_v36 }
 0x233   : > { %v901_v38 = vld [vmem:[#allocation2 + $0x8] sm:$0xff] }
 0x234   : > { %v911_v40 = vadd.f32 %v907_v39, %v901_v38  ;;  %913 = vst.msk [vmem:[#allocation2] sm:$0xff] %vm912_vm10, %v910_v37 }
 0x236   : > { %914 = vst.msk [vmem:[#allocation2 + $0x8] sm:$0xff] %vm912_vm10, %v911_v40 }
 0x23b   : > { %v918_v41 = vld [vmem:[#allocation2] sm:$0xff] }
 0x23d   : > { %v919_v42 = vld [vmem:[#allocation2 + $0x8] sm:$0xff] }
 0x23e   : > { %v920_v43 = vpack.c.bf16 %v919_v42, %v918_v41 }
 0x240   : > { %1336 = vmatmul.mubr.msk.bf16.vlgmr.msra.gmra.mrb[12].mxu0 %vm377_vm1, %v920_v43 }
 0x313   : > { %v998_v45 = vpop.f32.mrb[12].mxu0 }
 0x314   : > { %v999_v46 = vadd.f32 %v1241_v44, %v998_v45  ;;  %v1337_v47 = vpop.f32.mrb[13].mxu0 }
 0x315   : > { %v1001_v48 = vpop.f32.mrb[14].mxu0 }
 0x316   : > { %v1002_v49 = vadd.f32 %v1241_v44, %v1001_v48  ;;  %1021 = vrot.lane.b32.xlu1 %v999_v46, %s1544_s9  ;;  %v1338_v50 = vpop.f32.mrb[15].mxu0  ;;  %v1247_v51 = vmul.f32 -1.442695, %v999_v46 }
 0x318   : > { %1023 = vrot.lane.b32.xlu0 %v1002_v49, %s1544_s9  ;;  %v1248_v52 = vmul.f32 -1.442695, %v1002_v49  ;;  %1436 = vpow2.f32 %v1247_v51  ;;  %s1550_s9 = smov 112  }
 0x31a   : > { %1438 = vpow2.f32 %v1248_v52 }
 0x322   : > { %v1437_v53 = vpop.eup %1436 }
 0x323   : > { %v1011_v55 = vadd.f32 1.0, %v1437_v53 }
 0x324   : > { %v1439_v54 = vpop.eup %1438 }
 0x325   : > { %v1012_v56 = vadd.f32 1.0, %v1439_v54  ;;  %1440 = vrcp.f32 %v1011_v55 }
 0x327   : > { %1442 = vrcp.f32 %v1012_v56 }
 0x32f   : > { %v1441_v58 = vpop.eup %1440 }
 0x330   : > { %v1017_v61 = vmul.f32 %v1441_v58, %v999_v46 }
 0x331   : > { %v1443_v59 = vpop.eup %1442 }
 0x332   : > { %v1018_v0 = vmul.f32 %v1443_v59, %v1002_v49 }
 0x388   : > { %v1022_v62 = vpop.permute.xlu1 %1021 }
 0x389   : > { %v1027_v63 = vmul.f32 %v1022_v62, %v1017_v61 }
 0x38a   : > { %v1024_v1 = vpop.permute.xlu0 %1023 }
 0x38b   : > { %v1049_v2 = vmul.f32 %v1042_v57, %v1027_v63  ;;  %v1028_v4 = vmul.f32 %v1024_v1, %v1018_v0 }
 0x38d   : > { %v1050_v5 = vmul.f32 %v1047_v60, %v1028_v4  ;;  %1053 = vrot.lane.b32.xlu1 %v1049_v2, %s1550_s9 }
 0x38f   : > { %1055 = vrot.lane.b32.xlu0 %v1050_v5, %s1550_s9  ;;  %s1774_s9 = scalar_lea.hbm %s1835_s6, %s1253_s19 }
 0x3ff   : > { %v1054_v6 = vpop.permute.xlu1 %1053 }
 0x400   : > { %1060 = vst.msk [vmem:[%s340_s12] sm:$0xff] %vm1059_vm11, %v1054_v6 }
 0x401   : > { %v1056_v7 = vpop.permute.xlu0 %1055 }
 0x402   : > { %1061 = vst.msk [vmem:[%s340_s12 + $0x8] sm:$0xff] %vm1059_vm11, %v1056_v7 }
 0x403   : > { %1457 = shalt.err (!%p1454_p7)
}
 0x404   : > { %s1458_s30 = scalar_lea.hbm %s1774_s9, 256  ;;  %s1462_s12 = scalar_lea.hbm %s1835_s6, 8192 }
 0x405   : > { %p1459_p9 = scmp.ne.s32.totalorder %s1774_s9, %s1458_s30  ;;  %p1463_p12 = scmp.lt.u32.totalorder %s1774_s9, %s1835_s6 }
 0x406   : > { %p1464_p13 = scmp.lt.u32.totalorder %s1462_s12, %s1458_s30  ;;  %p1466_p1 = scmp.lt.u32.totalorder %s1458_s30, %s1774_s9 }
 0x407   : > { %p1460_p10 = pnand %p1459_p9, %p1639_p3 }
 0x408   : > { %p1465_p0 = por %p1464_p13, %p1463_p12 }
 0x409   : > { %p1461_p11 = pneg %p1460_p10 }
 0x40a   : > { %p1467_p2 = por %p1466_p1, %p1465_p0 }
 0x40c   : > { %p1468_p4 = pnand %p1467_p2, %p1461_p11 }
 0x40e   : > { %1471 = shalt.err (!%p1468_p4)
}
 0x40f   : > { %s1552_s25 = smov 128   ;;  %s1839_s17 = smov 8  }
 0x410   : > { %1339 = dma.vmem_to_hbm [thread:$0]  (%p1639_p3), %s1769_s16, 256, %s1774_s9, %s1776_s24, %s1552_s25, %s1552_s25, %s1839_s17  }
 0x411 PF: > { %p1345_p5 = scmp.ge.s32.totalorder %s1538_s28, 2  ;;  %s1093_s18 = sand.u32 1, %s1510_s21  }
 0x412   : > { %s1094_s20 = scalar_lea.sflag [#allocation4], %s1093_s18 }
 0x413   : > { %p1342_p6 = pnand %p1345_p5, %p1648_p8 }
 0x415   : > { %1505 = dma.done.wait (!%p1342_p6), %s1094_s20, 256  }
 0x416   : > { %1507 = vsyncadd (!%p1342_p6), %s1094_s20, 4294967040  ;;  %s19_s28 = sadd.s32 1, %s1538_s28   ;;  %s1840_s21 = smov %s1514_s22 }
 0x417   : > { %p16_p7 = scmp.ge.s32.totalorder %s19_s28, 34   ;;  %s1841_s22 = smov %s1518_s23 }
 0x418   : > { %s1842_s23 = smov %s1657_s15  ;;  %s1843_s24 = smov %s1530_s26 }
 0x419   : > { %s1844_s25 = smov %s1534_s27  ;;  %s1845_s26 = smov %s1848_s7 }
 0x41a   : > { %s1846_s27 = smov %s1852_s8  ;;  %18 = sbr.rel (!%p16_p7) target bundleno = 5 (0x5), region = 97 }
 0x421   :  { %1099 = vsyncpa [#allocation4], 1 }
 0x422   :  { %1101 = vsyncpa [#allocation4 + $0x1], 1 }

// kernel: forward.2
= control target key start
LH: loop header
LB: loop body
LE: loop exit
PB: predicated region body
PF: predicated region fallthrough
CT: control target
= control target key end

     0   :  { %s3269_s17 = smov 0   ;;  %s3271_s18 = smov 0   ;;  %s4477_s0 = inlined_call_operand.vmem [shape: f32[2,8,16,32], index: 0, kind: input, shape index: {}]   ;;  %s4478_s1 = inlined_call_operand.vmem [shape: f32[2,128,1], index: 1, kind: input, shape index: {}]   ;;  %s4479_s2 = inlined_call_operand.vmem [shape: f32[2,8,16], index: 2, kind: input, shape index: {}]   ;;  %s4480_s3 = inlined_call_operand.vmem [shape: f32[2,2,16,8], index: 3, kind: input, shape index: {}]   ;;  %s4481_s4 = inlined_call_operand.vmem [shape: f32[1,32], index: 4, kind: input, shape index: {}]   ;;  %s4482_s5 = inlined_call_operand.vmem [shape: f32[1,32], index: 5, kind: input, shape index: {}]   ;;  %s4483_s6 = inlined_call_operand.vmem [shape: bf16[32,32], index: 6, kind: input, shape index: {}]   ;;  %s4484_s7 = inlined_call_operand.vmem [shape: f32[1,8], index: 7, kind: input, shape index: {}]   ;;  %s4485_s8 = inlined_call_operand.vmem [shape: f32[1,8], index: 8, kind: input, shape index: {}]   ;;  %s4486_s9 = inlined_call_operand.vmem [shape: bf16[2,8,16,8], index: 9, kind: output, shape index: {0}]   ;;  %s4487_s10 = inlined_call_operand.vmem [shape: bf16[2,8,16,8], index: 10, kind: output, shape index: {1}]   ;;  %s4488_s11 = inlined_call_operand.vmem [shape: f32[2,8,2], index: 11, kind: output, shape index: {2}]  }
   0x1   :  { %s3273_s19 = smov 0  }
   0x2 LB: > { %s34_s20 = sadd.s32 1, %s3197_s18  ;;  %p2947_p0 = scmp.ge.s32.totalorder %s3201_s19, 1  ;;  %s3201_s19 = sphi %s3273_s19, %s22_s19   ;;  %s3197_s18 = sphi %s3271_s18, %s4529_s18   ;;  %s3193_s17 = sphi %s3269_s17, %s4528_s17  }
   0x3   : > { %p36_p1 = scmp.ge.s32.totalorder %s34_s20, 2  ;;  %p409_p2 = scmp.lt.s32.totalorder %s3201_s19, 3 }
   0x5   : > { %s4531_s20 = smov (%p36_p1, %s34_s20), 0  ;;  %p410_p3 = pnand %p2947_p0, %p409_p2 }
   0x7   : > { %413 = sbr.rel (%p410_p3) target bundleno = 1778 (0x6f2), region = 56 }
   0xe   : > { %p498_p4 = scmp.lt.s32.totalorder %s3193_s17, 1  ;;  %vm576_vm0 = vcmask 261120   ;;  %v3203_v32 = vmov 0   ;;  %s3204_s15 = smov 16   ;;  %vm1153_vm1 = vcmask 60416   ;;  %vm1298_vm2 = vcmask 64512  }
   0xf   : > { %3080 = vset.pattern.permute.xlu1 %v3203_v32  ;;  %3079 = vset.pattern.permute.xlu0 %v3203_v32  ;;  %s3207_s26 = smov 104   ;;  %s3208_s27 = smov 120   ;;  %vm2470_vm3 = vcmask 130112   ;;  %vm2535_vm4 = vcmask 1041409   ;;  %vm2537_vm5 = vcmask 1042434   ;;  %vm2539_vm6 = vcmask 1043459  }
  0x10   : > { %s4533_s17 = smov (!%p498_p4, %s3193_s17), 1  ;;  %vm2541_vm7 = vcmask 1044484   ;;  %vm2543_vm8 = vcmask 1045509   ;;  %vm2545_vm9 = vcmask 1046534   ;;  %vm2547_vm10 = vcmask 1047559  }
  0x11   : > { %s2994_s21 = sshll.u32 %s4533_s17, 7  ;;  %s2996_s16 = sshll.u32 %s4533_s17, 5  ;;  %vm2550_vm11 = vcmask 130048   ;;  %vm2701_vm12 = vcmask 7168   ;;  %vm2703_vm13 = vcmask 15360  }
  0x12   : > { %s3295_s24 = scalar_lea.vmem %s4477_s0, %s2994_s21  ;;  %s3462_s12 = scalar_lea.vmem %s4478_s1, %s2994_s21 }
  0x13   : > { %v562_v0 = vld [vmem:[%s3295_s24 + $0x10] sm:$0xff]  ;;  %v560_v1 = vld [vmem:[%s3295_s24] sm:$0xff]  ;;  %v563_v2 = vld [vmem:[%s3295_s24 + $0x18] sm:$0xff]  ;;  %s3501_s23 = scalar_lea.vmem %s4480_s3, %s2996_s16  ;;  %s2952_s25 = sshll.u32 %s4533_s17, 3 }
  0x14   : > { %v583_v3 = vsel %vm576_vm0, %v562_v0, 0.0  ;;  %v577_v4 = vsel %vm576_vm0, %v560_v1, 0.0  ;;  %v561_v5 = vld [vmem:[%s3295_s24 + $0x8] sm:$0xff]  ;;  %v586_v6 = vsel %vm576_vm0, %v563_v2, 0.0  ;;  %v3309_v9 = vld [vmem:[%s3295_s24 + $0x40] sm:$0xff]  ;;  %v3316_v12 = vld [vmem:[%s3295_s24 + $0x58] sm:$0xff]  ;;  %s524_s28 = scalar_lea.vmem %s4479_s2, %s2952_s25  ;;  %s558_s14 = scalar_lea.vmem %s4488_s11, %s2952_s25 }
  0x15   : > { %584 = vadd.xlane.f32.xlu1 %v583_v3  ;;  %578 = vadd.xlane.f32.xlu0 %v577_v4  ;;  %v580_v7 = vsel %vm576_vm0, %v561_v5, 0.0  ;;  %v3306_v8 = vld [vmem:[%s3295_s24 + $0x48] sm:$0xff]  ;;  %v601_v11 = vsel %vm576_vm0, %v3309_v9, 0.0  ;;  %v3319_v13 = vld [vmem:[%s3295_s24 + $0x50] sm:$0xff]  ;;  %v610_v14 = vsel %vm576_vm0, %v3316_v12, 0.0  ;;  %v3329_v17 = vld [vmem:[%s3295_s24 + $0x20] sm:$0xff] }
  0x16   : > { %v604_v10 = vsel %vm576_vm0, %v3306_v8, 0.0  ;;  %v607_v15 = vsel %vm576_vm0, %v3319_v13, 0.0  ;;  %v3326_v16 = vld [vmem:[%s3295_s24 + $0x28] sm:$0xff]  ;;  %v589_v19 = vsel %vm576_vm0, %v3329_v17, 0.0  ;;  %v3336_v20 = vld [vmem:[%s3295_s24 + $0x38] sm:$0xff]  ;;  %v3339_v21 = vld [vmem:[%s3295_s24 + $0x30] sm:$0xff] }
  0x17   : > { %v592_v18 = vsel %vm576_vm0, %v3326_v16, 0.0  ;;  %v598_v22 = vsel %vm576_vm0, %v3336_v20, 0.0  ;;  %v595_v23 = vsel %vm576_vm0, %v3339_v21, 0.0  ;;  %v3346_v24 = vld [vmem:[%s3295_s24 + $0x68] sm:$0xff]  ;;  %v3349_v25 = vld [vmem:[%s3295_s24 + $0x60] sm:$0xff]  ;;  %v3356_v28 = vld [vmem:[%s3295_s24 + $0x70] sm:$0xff] }
  0x18   : > { %v616_v26 = vsel %vm576_vm0, %v3346_v24, 0.0  ;;  %v613_v27 = vsel %vm576_vm0, %v3349_v25, 0.0  ;;  %v3359_v29 = vld [vmem:[%s3295_s24 + $0x78] sm:$0xff]  ;;  %v619_v30 = vsel %vm576_vm0, %v3356_v28, 0.0  ;;  %s3205_s24 = smov 24   ;;  %s3206_s21 = smov 112  }
  0x19   : > { %587 = vadd.xlane.f32.xlu1 %v586_v6  ;;  %581 = vadd.xlane.f32.xlu0 %v580_v7  ;;  %v622_v31 = vsel %vm576_vm0, %v3359_v29, 0.0 }
  0x1d   : > { %605 = vadd.xlane.f32.xlu1 %v604_v10  ;;  %602 = vadd.xlane.f32.xlu0 %v601_v11 }
  0x21   : > { %611 = vadd.xlane.f32.xlu1 %v610_v14  ;;  %608 = vadd.xlane.f32.xlu0 %v607_v15 }
  0x25   : > { %593 = vadd.xlane.f32.xlu1 %v592_v18  ;;  %590 = vadd.xlane.f32.xlu0 %v589_v19 }
  0x29   : > { %599 = vadd.xlane.f32.xlu1 %v598_v22  ;;  %596 = vadd.xlane.f32.xlu0 %v595_v23 }
  0x2d   : > { %617 = vadd.xlane.f32.xlu1 %v616_v26  ;;  %614 = vadd.xlane.f32.xlu0 %v613_v27 }
  0x31   : > { %620 = vadd.xlane.f32.xlu0 %v619_v30  ;;  %623 = vadd.xlane.f32.xlu1 %v622_v31 }
  0xa2   : > { %v585_v33 = vpop.xlane.xlu1 %584  ;;  %v579_v34 = vpop.xlane.xlu0 %578 }
  0xa3   : > { %v628_v35 = vmul.f32 0.03125, %v585_v33  ;;  %v626_v36 = vmul.f32 0.03125, %v579_v34 }
  0xa5   : > { %v3365_v37 = vsub.f32 %v562_v0, %v628_v35  ;;  %v3367_v38 = vsub.f32 %v560_v1, %v626_v36 }
  0xa6   : > { %v588_v39 = vpop.xlane.xlu1 %587  ;;  %v582_v40 = vpop.xlane.xlu0 %581 }
  0xa7   : > { %v629_v41 = vmul.f32 0.03125, %v588_v39  ;;  %v627_v42 = vmul.f32 0.03125, %v582_v40  ;;  %v658_v43 = vmul.f32 %v3367_v38, %v3367_v38  ;;  %v660_v47 = vmul.f32 %v3365_v37, %v3365_v37 }
  0xa9   : > { %v3371_v44 = vsub.f32 %v563_v2, %v629_v41  ;;  %v3373_v45 = vsub.f32 %v561_v5, %v627_v42  ;;  %v674_v46 = vsel %vm576_vm0, %v658_v43, 0.0  ;;  %v680_v51 = vsel %vm576_vm0, %v660_v47, 0.0 }
  0xaa   : > { %v606_v48 = vpop.xlane.xlu1 %605  ;;  %675 = vadd.xlane.f32.xlu0 %v674_v46  ;;  %v603_v49 = vpop.xlane.xlu0 %602 }
  0xab   : > { %v659_v50 = vmul.f32 %v3373_v45, %v3373_v45  ;;  %v661_v53 = vmul.f32 %v3371_v44, %v3371_v44  ;;  %v635_v61 = vmul.f32 0.03125, %v606_v48  ;;  %v634_v62 = vmul.f32 0.03125, %v603_v49  ;;  %v3081_v49 = vld [vmem:[%s4483_s6] sm:$0xff]  }
  0xac   : > { %3025 = vmatprep.subr.bf16.mxu0 %v3081_v49  ;;  %3045 = vmatprep.subr.bf16.mxu1 %v3081_v49 }
  0xad   : > { %v677_v52 = vsel %vm576_vm0, %v659_v50, 0.0  ;;  %v683_v56 = vsel %vm576_vm0, %v661_v53, 0.0  ;;  %v3396_v7 = vsub.f32 %v3306_v8, %v635_v61  ;;  %v3399_v10 = vsub.f32 %v3309_v9, %v634_v62  ;;  %3026 = vmatpush3.bf16.msra.mxu0 %v3081_v49  ;;  %3047 = vmatpush3.bf16.msra.mxu1 %v3081_v49  ;;  %v3082_v50 = vld [vmem:[%s4483_s6 + $0x8] sm:$0xff]   ;;  %v984_v61 = vld [vmem:[%s3462_s12 + $0x38] sm:$0xff]  ;;  %v985_v62 = vld [vmem:[%s3462_s12 + $0x40] sm:$0xff] }
  0xae   : > { %v612_v54 = vpop.xlane.xlu1 %611  ;;  %681 = vadd.xlane.f32.xlu0 %v680_v51  ;;  %678 = vadd.xlane.f32.xlu1 %v677_v52  ;;  %v609_v55 = vpop.xlane.xlu0 %608  ;;  %v978_v51 = vld [vmem:[%s3462_s12 + $0x8] sm:$0xff] }
  0xaf   : > { %v637_v11 = vmul.f32 0.03125, %v612_v54  ;;  %v636_v14 = vmul.f32 0.03125, %v609_v55  ;;  %v666_v26 = vmul.f32 %v3399_v10, %v3399_v10  ;;  %3027 = vmatprep.subr.bf16.mxu0 %v3082_v50  ;;  %3046 = vmatprep.subr.bf16.mxu1 %v3082_v50 }
  0xb1   : > { %v3418_v27 = vsub.f32 %v3316_v12, %v637_v11  ;;  %v3421_v30 = vsub.f32 %v3319_v13, %v636_v14  ;;  %v698_v39 = vsel %vm576_vm0, %v666_v26, 0.0  ;;  %3028 = vmatpush3.bf16.msra.mxu0 %v3082_v50  ;;  %3048 = vmatpush3.bf16.msra.mxu1 %v3082_v50  ;;  %v2989_v11 = vld [vmem:[%s4485_s8] ss:$0 sm:$0xff]  ;;  %v988_v14 = vld [vmem:[%s3462_s12 + $0x58] sm:$0xff] }
  0xb2   : > { %v594_v57 = vpop.xlane.xlu1 %593  ;;  %684 = vadd.xlane.f32.xlu1 %v683_v56  ;;  %v591_v58 = vpop.xlane.xlu0 %590 }
  0xb3   : > { %v631_v59 = vmul.f32 0.03125, %v594_v57  ;;  %v630_v60 = vmul.f32 0.03125, %v591_v58  ;;  %v669_v13 = vmul.f32 %v3418_v27, %v3418_v27  ;;  %v668_v40 = vmul.f32 %v3421_v30, %v3421_v30  ;;  %v979_v57 = vld [vmem:[%s3462_s12 + $0x10] sm:$0xff]  ;;  %v980_v58 = vld [vmem:[%s3462_s12 + $0x18] sm:$0xff] }
  0xb5   : > { %v3386_v63 = vsub.f32 %v3326_v16, %v631_v59  ;;  %v3389_v0 = vsub.f32 %v3329_v17, %v630_v60  ;;  %v707_v42 = vsel %vm576_vm0, %v669_v13, 0.0  ;;  %v704_v43 = vsel %vm576_vm0, %v668_v40, 0.0  ;;  %v981_v59 = vld [vmem:[%s3462_s12 + $0x20] sm:$0xff]  ;;  %v982_v60 = vld [vmem:[%s3462_s12 + $0x28] sm:$0xff]  ;;  %v992_v13 = vld [vmem:[%s3462_s12 + $0x78] sm:$0xff] }
  0xb6   : > { %v600_v1 = vpop.xlane.xlu1 %599  ;;  %v597_v2 = vpop.xlane.xlu0 %596 }
  0xb7   : > { %v633_v3 = vmul.f32 0.03125, %v600_v1  ;;  %v632_v4 = vmul.f32 0.03125, %v597_v2  ;;  %v663_v5 = vmul.f32 %v3386_v63, %v3386_v63  ;;  %v662_v6 = vmul.f32 %v3389_v0, %v3389_v0  ;;  %v987_v1 = vld [vmem:[%s3462_s12 + $0x50] sm:$0xff]  ;;  %v977_v2 = vld [vmem:[%s3462_s12] sm:$0xff] }
  0xb9   : > { %v3402_v15 = vsub.f32 %v3336_v20, %v633_v3  ;;  %v3405_v16 = vsub.f32 %v3339_v21, %v632_v4  ;;  %v689_v17 = vsel %vm576_vm0, %v663_v5, 0.0  ;;  %v686_v18 = vsel %vm576_vm0, %v662_v6, 0.0  ;;  %v989_v3 = vld [vmem:[%s3462_s12 + $0x60] sm:$0xff]  ;;  %v991_v4 = vld [vmem:[%s3462_s12 + $0x70] sm:$0xff]  ;;  %v986_v5 = vld [vmem:[%s3462_s12 + $0x48] sm:$0xff] }
  0xba   : > { %690 = vadd.xlane.f32.xlu1 %v689_v17  ;;  %687 = vadd.xlane.f32.xlu0 %v686_v18  ;;  %v618_v19 = vpop.xlane.xlu1 %617  ;;  %v615_v8 = vpop.xlane.xlu0 %614  ;;  %v667_v21 = vmul.f32 %v3396_v7, %v3396_v7  ;;  %v2123_v6 = vlaneseq }
  0xbb   : > { %v665_v9 = vmul.f32 %v3402_v15, %v3402_v15  ;;  %v664_v22 = vmul.f32 %v3405_v16, %v3405_v16  ;;  %v639_v23 = vmul.f32 0.03125, %v618_v19  ;;  %v638_v20 = vmul.f32 0.03125, %v615_v8 }
  0xbc   : > { %v701_v12 = vsel %vm576_vm0, %v667_v21, 0.0  ;;  %v3487_v17 = vshrl.u32 %v2123_v6, 7  ;;  %v2460_v18 = vand.u32 127, %v2123_v6 }
  0xbd   : > { %v695_v31 = vsel %vm576_vm0, %v665_v9, 0.0  ;;  %v692_v32 = vsel %vm576_vm0, %v664_v22, 0.0  ;;  %v3426_v34 = vsub.f32 %v3346_v24, %v639_v23  ;;  %v3429_v35 = vsub.f32 %v3349_v25, %v638_v20  ;;  %v990_v20 = vld [vmem:[%s3462_s12 + $0x68] sm:$0xff] }
  0xbe   : > { %696 = vadd.xlane.f32.xlu1 %v695_v31  ;;  %693 = vadd.xlane.f32.xlu0 %v692_v32  ;;  %v621_v33 = vpop.xlane.xlu0 %620  ;;  %v624_v52 = vpop.xlane.xlu1 %623  ;;  %v3491_v9 = vsub.s32 %v2460_v18, %v3487_v17  ;;  %v2465_v22 = vadd.s32 4294967288, %v2460_v18 }
  0xbf   : > { %v640_v36 = vmul.f32 0.03125, %v621_v33  ;;  %v671_v24 = vmul.f32 %v3426_v34, %v3426_v34  ;;  %v670_v25 = vmul.f32 %v3429_v35, %v3429_v35  ;;  %v641_v53 = vmul.f32 0.03125, %v624_v52 }
  0xc0   : > { %4502 = vst [vmem:[#allocation2_spill] sm:$0xff] %v3491_v9  ;;  %v3496_v21 = vsub.s32 %v2465_v22, %v3487_v17 }
  0xc1   : > { %v3438_v41 = vsub.f32 %v3356_v28, %v640_v36  ;;  %v713_v46 = vsel %vm576_vm0, %v671_v24, 0.0  ;;  %v710_v47 = vsel %vm576_vm0, %v670_v25, 0.0  ;;  %v3466_v54 = vsub.f32 %v3359_v29, %v641_v53  ;;  %v983_v29 = vld [vmem:[%s3462_s12 + $0x30] sm:$0xff]  ;;  %v1980_v36 = vld [vmem:[%s3501_s23] sm:$0xff] }
  0xc2   : > { %702 = vadd.xlane.f32.xlu1 %v701_v12  ;;  %699 = vadd.xlane.f32.xlu0 %v698_v39  ;;  %4503 = vst [vmem:[#allocation3_spill] sm:$0xff] %v3496_v21  ;;  %v2136_v25 = vsub.s32 1, %v3487_v17  ;;  %v2158_v53 = vsub.s32 3, %v3487_v17 }
  0xc3   : > { %v672_v28 = vmul.f32 %v3438_v41, %v3438_v41  ;;  %v673_v55 = vmul.f32 %v3466_v54, %v3466_v54 }
  0xc5   : > { %v716_v48 = vsel %vm576_vm0, %v672_v28, 0.0  ;;  %v719_v56 = vsel %vm576_vm0, %v673_v55, 0.0 }
  0xc6   : > { %708 = vadd.xlane.f32.xlu1 %v707_v42  ;;  %705 = vadd.xlane.f32.xlu0 %v704_v43  ;;  %v2990_v42 = vld [vmem:[%s3501_s23 + $0x10] sm:$0xff] }
  0xca   : > { %714 = vadd.xlane.f32.xlu1 %v713_v46  ;;  %711 = vadd.xlane.f32.xlu0 %v710_v47  ;;  %v2988_v46 = vld [vmem:[%s4484_s7] ss:$0 sm:$0xff] }
  0xcb   : > { %v3518_v47 = vld [vmem:[%s524_s28] sm:$0xff] }
  0xcc   : > { %v3522_v28 = vrot.slane %v3518_v47, %v2136_v25 }
  0xce   : > { %717 = vadd.xlane.f32.xlu0 %v716_v48  ;;  %v2147_v48 = vsub.s32 2, %v3487_v17 }
  0xdb   : > { %1000 = vperm.xlu1 %3080, %v978_v51  }
  0xe4   : > { %995 = vperm.xlu0 %3079, %v977_v2  }
  0xe8   : > { %1040 = vperm.xlu0 %3079, %v986_v5   ;;  %v2169_v5 = vsub.s32 4, %v3487_v17 }
  0xec   : > { %1050 = vperm.xlu0 %3079, %v988_v14   ;;  %v3548_v14 = vld [vmem:[%s4482_s5] ss:$0 sm:$0xff] }
  0xf0   : > { %1060 = vperm.xlu0 %3079, %v990_v20   ;;  %v2991_v20 = vld [vmem:[%s3501_s23 + $0x18] sm:$0xff] }
  0xf4   : > { %1070 = vperm.xlu0 %3079, %v992_v13  }
  0xf8   : > { %1578 = vrot.lane.b32.xlu0 %v2988_v46, %s3204_s15 }
  0xfc   : > { %1942 = vrot.lane.b32.xlu0 %v2988_v46, %s3205_s24 }
  0xff   : > { %720 = vadd.xlane.f32.xlu1 %v719_v56 }
 0x110   : > { %1005 = vperm.xlu1 %3080, %v979_v57   ;;  %v3531_v57 = vld [vmem:[%s4481_s4] ss:$0 sm:$0xff] }
 0x114   : > { %1010 = vperm.xlu1 %3080, %v980_v58   ;;  %v3535_v58 = vrot.slane %v3518_v47, %v2147_v48 }
 0x118   : > { %1015 = vperm.xlu1 %3080, %v981_v59  }
 0x11c   : > { %1020 = vperm.xlu1 %3080, %v982_v60  }
 0x120   : > { %1025 = vperm.xlu1 %3080, %v983_v29  }
 0x124   : > { %1030 = vperm.xlu1 %3080, %v984_v61  }
 0x128   : > { %1035 = vperm.xlu1 %3080, %v985_v62  }
 0x12c   : > { %1045 = vperm.xlu1 %3080, %v987_v1  }
 0x130   : > { %1055 = vperm.xlu1 %3080, %v989_v3  }
 0x134   : > { %1065 = vperm.xlu1 %3080, %v991_v4   ;;  %v3542_v4 = vrot.slane %v3518_v47, %v2158_v53 }
 0x137   : > { %v676_v19 = vpop.xlane.xlu0 %675 }
 0x138   : > { %v722_v8 = vmul.f32 0.03125, %v676_v19  ;;  %1603 = vrot.lane.b32.xlu1 %v2989_v11, %s3204_s15  ;;  %v2125_v19 = vsub.s32 0, %v3487_v17 }
 0x13a   : > { %v738_v23 = vadd.f32 1e-05, %v722_v8 }
 0x13b   : > { %v679_v26 = vpop.xlane.xlu1 %678  ;;  %v682_v31 = vpop.xlane.xlu0 %681 }
 0x13c   : > { %3083 = vrsqrt.f32 %v738_v23  ;;  %v723_v32 = vmul.f32 0.03125, %v679_v26  ;;  %v724_v33 = vmul.f32 0.03125, %v682_v31  ;;  %1961 = vrot.lane.b32.xlu1 %v2989_v11, %s3205_s24  ;;  %v2180_v26 = vsub.s32 5, %v3487_v17 }
 0x13e   : > { %v739_v12 = vadd.f32 1e-05, %v723_v32  ;;  %v740_v39 = vadd.f32 1e-05, %v724_v33 }
 0x13f   : > { %v685_v40 = vpop.xlane.xlu1 %684 }
 0x140   : > { %3085 = vrsqrt.f32 %v739_v12  ;;  %v725_v24 = vmul.f32 0.03125, %v685_v40  ;;  %1988 = vrot.lane.b32.xlu1 %v1980_v36, %s3204_s15  ;;  %v3563_v40 = vrot.slane %v3518_v47, %v2169_v5 }
 0x141   : > { %3087 = vrsqrt.f32 %v740_v39 }
 0x142   : > { %v741_v43 = vadd.f32 1e-05, %v725_v24 }
 0x144   : > { %3089 = vrsqrt.f32 %v741_v43  ;;  %2245 = vrot.lane.b32.xlu1 %v2990_v42, %s3205_s24  ;;  %v2126_v42 = vrot.slane %v3518_v47, %v2125_v19 }
 0x146   : > { %v3084_v49 = vpop.eup %3083 }
 0x147   : > { %v691_v50 = vpop.xlane.xlu1 %690  ;;  %v688_v51 = vpop.xlane.xlu0 %687  ;;  %v770_v52 = vmul.f32 %v3084_v49, %v3367_v38  ;;  %v1981_v38 = vld [vmem:[%s3501_s23 + $0x8] sm:$0xff] }
 0x148   : > { %v727_v55 = vmul.f32 0.03125, %v691_v50  ;;  %v726_v56 = vmul.f32 0.03125, %v688_v51  ;;  %2139 = vbcast.lane.b32.xlu1 %v3522_v28, 256  ;;  %1990 = vrot.lane.b32.xlu0 %v1981_v38, %s3204_s15  ;;  %v2191_v51 = vsub.s32 6, %v3487_v17  ;;  %s2997_s15 = sshll.u32 %s4533_s17, 6 }
 0x149   : > { %v793_v3 = vmul.f32 %v3531_v57, %v770_v52  ;;  %s3887_s30 = scalar_lea.vmem %s4487_s10, %s2997_s15 }
 0x14a   : > { %v3086_v59 = vpop.eup %3085  ;;  %v743_v60 = vadd.f32 1e-05, %v727_v55  ;;  %v742_v29 = vadd.f32 1e-05, %v726_v56  ;;  %v3574_v55 = vrot.slane %v3518_v47, %v2180_v26 }
 0x14b   : > { %v3088_v61 = vpop.eup %3087  ;;  %v697_v62 = vpop.xlane.xlu1 %696  ;;  %v771_v2 = vmul.f32 %v3086_v59, %v3373_v45  ;;  %v816_v33 = vadd.f32 %v3548_v14, %v793_v3  ;;  %v2202_v3 = vsub.s32 7, %v3487_v17 }
 0x14c   : > { %v694_v1 = vpop.xlane.xlu0 %693  ;;  %3091 = vrsqrt.f32 %v743_v60  ;;  %v729_v6 = vmul.f32 0.03125, %v697_v62  ;;  %v772_v18 = vmul.f32 %v3088_v61, %v3365_v37  ;;  %2150 = vbcast.lane.b32.xlu1 %v3535_v58, 256  ;;  %2247 = vrot.lane.b32.xlu0 %v2991_v20, %s3205_s24  ;;  %s3645_s24 = scalar_lea.vmem %s4486_s9, %s2997_s15 }
 0x14d   : > { %v728_v11 = vmul.f32 0.03125, %v694_v1  ;;  %3093 = vrsqrt.f32 %v742_v29  ;;  %v794_v45 = vmul.f32 %v3531_v57, %v771_v2  ;;  %v3579_v2 = vrot.slane %v3518_v47, %v2191_v51 }
 0x14e   : > { %v3090_v8 = vpop.eup %3089  ;;  %v745_v22 = vadd.f32 1e-05, %v729_v6  ;;  %v795_v12 = vmul.f32 %v3531_v57, %v772_v18  ;;  %v2203_v26 = vrot.slane %v3518_v47, %v2202_v3 }
 0x14f   : > { %v744_v23 = vadd.f32 1e-05, %v728_v11  ;;  %v703_v31 = vpop.xlane.xlu1 %702  ;;  %v817_v37 = vadd.f32 %v3548_v14, %v794_v45  ;;  %v773_v36 = vmul.f32 %v3090_v8, %v3371_v44 }
 0x150   : > { %v700_v32 = vpop.xlane.xlu0 %699  ;;  %3095 = vrsqrt.f32 %v745_v22  ;;  %v731_v39 = vmul.f32 0.03125, %v703_v31  ;;  %2161 = vbcast.lane.b32.xlu1 %v3542_v4, 256  ;;  %v818_v49 = vadd.f32 %v3548_v14, %v795_v12  ;;  %2128 = vbcast.lane.b32.xlu0 %v2126_v42, 256 }
 0x151   : > { %v730_v13 = vmul.f32 0.03125, %v700_v32  ;;  %3097 = vrsqrt.f32 %v744_v23  ;;  %v832_v24 = vpack.c.bf16 %v817_v37, %v816_v33  ;;  %v796_v25 = vmul.f32 %v3531_v57, %v773_v36 }
 0x152   : > { %v747_v43 = vadd.f32 1e-05, %v731_v39 }
 0x153   : > { %v746_v44 = vadd.f32 1e-05, %v730_v13  ;;  %v709_v46 = vpop.xlane.xlu1 %708  ;;  %3029 = vmatprep.mubr.msk.bf16.mxu0 %vm576_vm0, %v832_v24  ;;  %v819_v50 = vadd.f32 %v3548_v14, %v796_v25 }
 0x154   : > { %v706_v48 = vpop.xlane.xlu0 %705  ;;  %3099 = vrsqrt.f32 %v747_v43  ;;  %v733_v52 = vmul.f32 0.03125, %v709_v46  ;;  %2172 = vbcast.lane.b32.xlu1 %v3563_v40, 256  ;;  %2132 = vbcast.lane.b32.xlu0 %v2126_v42, 264 }
 0x155   : > { %v732_v53 = vmul.f32 0.03125, %v706_v48  ;;  %3101 = vrsqrt.f32 %v746_v44  ;;  %v833_v56 = vpack.c.bf16 %v819_v50, %v818_v49 }
 0x156   : > { %v3092_v59 = vpop.eup %3091  ;;  %v749_v60 = vadd.f32 1e-05, %v733_v52 }
 0x157   : > { %v748_v29 = vadd.f32 1e-05, %v732_v53  ;;  %v3094_v38 = vpop.eup %3093  ;;  %v715_v61 = vpop.xlane.xlu1 %714  ;;  %3030 = vmatmul.mubr.msk.bf16.vlgmr.msra.gmra.mrb[0].mxu0 %vm576_vm0, %v833_v56  ;;  %v775_v1 = vmul.f32 %v3092_v59, %v3386_v63 }
 0x158   : > { %v712_v62 = vpop.xlane.xlu0 %711  ;;  %3103 = vrsqrt.f32 %v749_v60  ;;  %v735_v5 = vmul.f32 0.03125, %v715_v61  ;;  %v774_v11 = vmul.f32 %v3094_v38, %v3389_v0  ;;  %2183 = vbcast.lane.b32.xlu1 %v3574_v55, 256  ;;  %2143 = vbcast.lane.b32.xlu0 %v3522_v28, 264 }
 0x159   : > { %v734_v6 = vmul.f32 0.03125, %v712_v62  ;;  %3105 = vrsqrt.f32 %v748_v29  ;;  %v798_v18 = vmul.f32 %v3531_v57, %v775_v1 }
 0x15a   : > { %v3096_v45 = vpop.eup %3095  ;;  %v751_v19 = vadd.f32 1e-05, %v735_v5  ;;  %v797_v63 = vmul.f32 %v3531_v57, %v774_v11 }
 0x15b   : > { %v750_v8 = vadd.f32 1e-05, %v734_v6  ;;  %v3098_v22 = vpop.eup %3097  ;;  %v821_v23 = vadd.f32 %v3548_v14, %v798_v18  ;;  %v777_v17 = vmul.f32 %v3096_v45, %v3402_v15  ;;  %v1001_v29 = vpop.permute.xlu1 %1000 }
 0x15c   : > { %3107 = vrsqrt.f32 %v751_v19  ;;  %v820_v20 = vadd.f32 %v3548_v14, %v797_v63  ;;  %v776_v0 = vmul.f32 %v3098_v22, %v3405_v16  ;;  %2194 = vbcast.lane.b32.xlu1 %v3579_v2, 256  ;;  %2154 = vbcast.lane.b32.xlu0 %v3535_v58, 264 }
 0x15d   : > { %3109 = vrsqrt.f32 %v750_v8  ;;  %v800_v31 = vmul.f32 %v3531_v57, %v777_v17 }
 0x15e   : > { %v3100_v32 = vpop.eup %3099  ;;  %v834_v33 = vpack.c.bf16 %v821_v23, %v820_v20  ;;  %v799_v37 = vmul.f32 %v3531_v57, %v776_v0 }
 0x15f   : > { %v3102_v36 = vpop.eup %3101  ;;  %v823_v15 = vadd.f32 %v3548_v14, %v800_v31  ;;  %v779_v12 = vmul.f32 %v3100_v32, %v3396_v7 }
 0x160   : > { %3033 = vmatprep.mubr.msk.bf16.mxu0 %vm576_vm0, %v834_v33  ;;  %v822_v16 = vadd.f32 %v3548_v14, %v799_v37  ;;  %v778_v47 = vmul.f32 %v3102_v36, %v3399_v10  ;;  %2209 = vbcast.lane.b32.xlu1 %v2203_v26, 264 }
 0x161   : > { %v802_v39 = vmul.f32 %v3531_v57, %v779_v12  ;;  %2165 = vbcast.lane.b32.xlu0 %v3542_v4, 264 }
 0x162   : > { %v3104_v28 = vpop.eup %3103  ;;  %v835_v13 = vpack.c.bf16 %v823_v15, %v822_v16  ;;  %v801_v24 = vmul.f32 %v3531_v57, %v778_v47 }
 0x163   : > { %v3106_v25 = vpop.eup %3105  ;;  %v825_v42 = vadd.f32 %v3548_v14, %v802_v39  ;;  %v781_v7 = vmul.f32 %v3104_v28, %v3418_v27 }
 0x164   : > { %3034 = vmatmul.mubr.msk.bf16.gmra.mrb[4].mxu0 %vm576_vm0, %v835_v13  ;;  %v824_v43 = vadd.f32 %v3548_v14, %v801_v24  ;;  %v780_v10 = vmul.f32 %v3106_v25, %v3421_v30 }
 0x165   : > { %v804_v44 = vmul.f32 %v3531_v57, %v781_v7  ;;  %2176 = vbcast.lane.b32.xlu0 %v3563_v40, 264 }
 0x166   : > { %v3108_v58 = vpop.eup %3107  ;;  %v836_v46 = vpack.c.bf16 %v825_v42, %v824_v43  ;;  %v803_v48 = vmul.f32 %v3531_v57, %v780_v10 }
 0x167   : > { %v3110_v49 = vpop.eup %3109  ;;  %v827_v50 = vadd.f32 %v3548_v14, %v804_v44  ;;  %v783_v51 = vmul.f32 %v3108_v58, %v3426_v34 }
 0x168   : > { %3037 = vmatprep.mubr.msk.bf16.mxu1 %vm576_vm0, %v836_v46  ;;  %v826_v27 = vadd.f32 %v3548_v14, %v803_v48  ;;  %v782_v52 = vmul.f32 %v3110_v49, %v3429_v35  ;;  %v718_v35 = vpop.xlane.xlu0 %717 }
 0x169   : > { %v806_v30 = vmul.f32 %v3531_v57, %v783_v51  ;;  %2187 = vbcast.lane.b32.xlu0 %v3574_v55, 264  ;;  %v736_v60 = vmul.f32 0.03125, %v718_v35 }
 0x16a   : > { %v837_v4 = vpack.c.bf16 %v827_v50, %v826_v27  ;;  %v805_v53 = vmul.f32 %v3531_v57, %v782_v52 }
 0x16b   : > { %v829_v56 = vadd.f32 %v3548_v14, %v806_v30  ;;  %v752_v40 = vadd.f32 1e-05, %v736_v60 }
 0x16c   : > { %3038 = vmatmul.mubr.msk.bf16.vlgmr.msra.gmra.mrb[0].mxu1 %vm576_vm0, %v837_v4  ;;  %v828_v59 = vadd.f32 %v3548_v14, %v805_v53 }
 0x16d   : > { %2198 = vbcast.lane.b32.xlu0 %v3579_v2, 264  ;;  %3111 = vrsqrt.f32 %v752_v40 }
 0x16e   : > { %v838_v34 = vpack.c.bf16 %v829_v56, %v828_v59 }
 0x170   : > { %3041 = vmatprep.mubr.msk.bf16.mxu1 %vm576_vm0, %v838_v34 }
 0x171   : > { %2205 = vbcast.lane.b32.xlu0 %v2203_v26, 256 }
 0x177   : > { %v3112_v1 = vpop.eup %3111 }
 0x178   : > { %v784_v3 = vmul.f32 %v3112_v1, %v3438_v41  ;;  %v996_v41 = vpop.permute.xlu0 %995 }
 0x17a   : > { %v807_v6 = vmul.f32 %v3531_v57, %v784_v3 }
 0x17c   : > { %v830_v11 = vadd.f32 %v3548_v14, %v807_v6  ;;  %v1041_v13 = vpop.permute.xlu0 %1040 }
 0x180   : > { %v1051_v49 = vpop.permute.xlu0 %1050 }
 0x184   : > { %v1061_v60 = vpop.permute.xlu0 %1060 }
 0x188   : > { %v1071_v40 = vpop.permute.xlu0 %1070 }
 0x18c   : > { %v721_v38 = vpop.xlane.xlu1 %720 }
 0x18d   : > { %v737_v61 = vmul.f32 0.03125, %v721_v38  ;;  %v3758_v38 = vpop.permute.xlu0 %1578 }
 0x18f   : > { %v753_v62 = vadd.f32 1e-05, %v737_v61 }
 0x190   : > { %v1006_v19 = vpop.permute.xlu1 %1005 }
 0x191   : > { %3113 = vrsqrt.f32 %v753_v62  ;;  %v3765_v62 = vpop.permute.xlu0 %1942 }
 0x194   : > { %v1011_v8 = vpop.permute.xlu1 %1010 }
 0x198   : > { %v1016_v63 = vpop.permute.xlu1 %1015 }
 0x19b   : > { %v3114_v55 = vpop.eup %3113 }
 0x19c   : > { %v785_v5 = vmul.f32 %v3114_v55, %v3466_v54  ;;  %v1021_v22 = vpop.permute.xlu1 %1020 }
 0x19e   : > { %v808_v2 = vmul.f32 %v3531_v57, %v785_v5 }
 0x1a0   : > { %v831_v18 = vadd.f32 %v3548_v14, %v808_v2  ;;  %v1026_v14 = vpop.permute.xlu1 %1025 }
 0x1a2   : > { %v839_v45 = vpack.c.bf16 %v831_v18, %v830_v11 }
 0x1a4   : > { %3042 = vmatmul.mubr.msk.bf16.gmra.mrb[4].mxu1 %vm576_vm0, %v839_v45  ;;  %v1031_v15 = vpop.permute.xlu1 %1030 }
 0x1a8   : > { %v1036_v16 = vpop.permute.xlu1 %1035 }
 0x1ac   : > { %v1046_v46 = vpop.permute.xlu1 %1045 }
 0x1ba   : > { %v3774_v3 = vpop.permute.xlu0 %1990 }
 0x1be   : > { %v3778_v5 = vpop.permute.xlu0 %2247 }
 0x22a   : > { %v3633_v23 = vpop.f32.mrb[0].mxu0 }
 0x22b   : > { %1254 = vrot.lane.b32.xlu1 %v3633_v23, %s3206_s21  ;;  %v3637_v54 = vpop.f32.mrb[1].mxu0  ;;  %v1075_v57 = vmul.f32 %v3633_v23, %v1006_v19 }
 0x22c   : > { %v1073_v17 = vmul.f32 %v996_v41, %v3637_v54  ;;  %v3648_v20 = vpop.f32.mrb[2].mxu0 }
 0x22d   : > { %1256 = vrot.lane.b32.xlu0 %v3648_v20, %s3206_s21  ;;  %v3652_v0 = vpop.f32.mrb[3].mxu0  ;;  %v3654_v26 = vpack.c.bf16 %v1075_v57, %v1075_v57  ;;  %v1076_v31 = vmul.f32 %v3648_v20, %v1011_v8 }
 0x22e   : > { %v3657_v32 = vpack.c.bf16 %v1073_v17, %v1073_v17  ;;  %v1074_v33 = vmul.f32 %v1001_v29, %v3652_v0  ;;  %v1056_v29 = vpop.permute.xlu1 %1055 }
 0x22f   : > { %1156 = vst.msk [vmem:[%s3645_s24 + $0x8] sm:$0xf] %vm1153_vm1, %v3654_v26  ;;  %v3002_v37 = vpack.c.bf16 %v1076_v31, %v1076_v31 }
 0x230   : > { %1154 = vst.msk [vmem:[%s3645_s24] sm:$0xf] %vm1153_vm1, %v3657_v32  ;;  %v3666_v36 = vpack.c.bf16 %v1074_v33, %v1074_v33 }
 0x231   : > { %1157 = vst.msk [vmem:[%s3645_s24 + $0xc] sm:$0xf] %vm1153_vm1, %v3002_v37 }
 0x232   : > { %1155 = vst.msk [vmem:[%s3645_s24 + $0x4] sm:$0xf] %vm1153_vm1, %v3666_v36  ;;  %v1066_v61 = vpop.permute.xlu1 %1065 }
 0x236   : > { %v3770_v1 = vpop.permute.xlu1 %1603 }
 0x237   : > { %v3673_v12 = vpop.f32.mrb[4].mxu0 }
 0x238   : > { %v3675_v47 = vpop.f32.mrb[5].mxu0  ;;  %v1079_v39 = vmul.f32 %v3673_v12, %v1026_v14 }
 0x239   : > { %v3678_v28 = vpop.f32.mrb[6].mxu0  ;;  %v1077_v24 = vmul.f32 %v1016_v63, %v3675_v47  ;;  %v3796_v63 = vpop.permute.xlu0 %2128 }
 0x23a   : > { %v3681_v25 = vpop.f32.mrb[7].mxu0  ;;  %v3683_v42 = vpack.c.bf16 %v1079_v39, %v1079_v39  ;;  %v1080_v7 = vmul.f32 %v3678_v28, %v1031_v15  ;;  %v3776_v55 = vpop.permute.xlu1 %1961 }
 0x23b   : > { %v1078_v43 = vmul.f32 %v1021_v22, %v3681_v25  ;;  %v3687_v10 = vpack.c.bf16 %v1077_v24, %v1077_v24 }
 0x23c   : > { %1160 = vst.msk [vmem:[%s3645_s24 + $0x18] sm:$0xf] %vm1153_vm1, %v3683_v42  ;;  %v3692_v44 = vpack.c.bf16 %v1080_v7, %v1080_v7 }
 0x23d   : > { %v3694_v58 = vpack.c.bf16 %v1078_v43, %v1078_v43  ;;  %1158 = vst.msk [vmem:[%s3645_s24 + $0x10] sm:$0xf] %vm1153_vm1, %v3687_v10 }
 0x23e   : > { %1161 = vst.msk [vmem:[%s3645_s24 + $0x1c] sm:$0xf] %vm1153_vm1, %v3692_v44  ;;  %v3786_v11 = vpop.permute.xlu1 %1988 }
 0x23f   : > { %1159 = vst.msk [vmem:[%s3645_s24 + $0x14] sm:$0xf] %vm1153_vm1, %v3694_v58  ;;  %v3705_v48 = vpop.f32.mrb[0].mxu1 }
 0x240   : > { %1270 = vrot.lane.b32.xlu1 %v3705_v48, %s3206_s21  ;;  %v3709_v50 = vpop.f32.mrb[1].mxu1  ;;  %v1083_v51 = vmul.f32 %v3705_v48, %v1046_v46 }
 0x241   : > { %v3712_v27 = vpop.f32.mrb[2].mxu1  ;;  %v1081_v52 = vmul.f32 %v1036_v16, %v3709_v50 }
 0x242   : > { %v1084_v30 = vmul.f32 %v3712_v27, %v1051_v49  ;;  %1272 = vrot.lane.b32.xlu0 %v3712_v27, %s3206_s21  ;;  %v3718_v4 = vpop.f32.mrb[3].mxu1  ;;  %v3009_v53 = vpack.c.bf16 %v1083_v51, %v1083_v51  ;;  %v3806_v31 = vpop.permute.xlu1 %2245 }
 0x243   : > { %v3007_v56 = vpack.c.bf16 %v1081_v52, %v1081_v52  ;;  %v1082_v59 = vmul.f32 %v1041_v13, %v3718_v4 }
 0x244   : > { %v3010_v34 = vpack.c.bf16 %v1084_v30, %v1084_v30  ;;  %1626 = vrot.lane.b32.xlu1 %v3633_v23, %s3207_s26  ;;  %1164 = vst.msk [vmem:[%s3645_s24 + $0x28] sm:$0xf] %vm1153_vm1, %v3009_v53 }
 0x245   : > { %1162 = vst.msk [vmem:[%s3645_s24 + $0x20] sm:$0xf] %vm1153_vm1, %v3007_v56  ;;  %v3008_v35 = vpack.c.bf16 %v1082_v59, %v1082_v59 }
 0x246   : > { %1165 = vst.msk [vmem:[%s3645_s24 + $0x2c] sm:$0xf] %vm1153_vm1, %v3010_v34  ;;  %1628 = vrot.lane.b32.xlu0 %v3648_v20, %s3207_s26  ;;  %v3820_v33 = vpop.permute.xlu1 %2139 }
 0x247   : > { %1163 = vst.msk [vmem:[%s3645_s24 + $0x24] sm:$0xf] %vm1153_vm1, %v3008_v35 }
 0x248   : > { %1642 = vrot.lane.b32.xlu1 %v3705_v48, %s3207_s26 }
 0x24a   : > { %1644 = vrot.lane.b32.xlu0 %v3712_v27, %s3207_s26 }
 0x24c   : > { %1250 = vrot.lane.b32.xlu1 %v3637_v54, %s3206_s21 }
 0x24e   : > { %1252 = vrot.lane.b32.xlu0 %v3652_v0, %s3206_s21 }
 0x250   : > { %1266 = vrot.lane.b32.xlu1 %v3709_v50, %s3206_s21 }
 0x252   : > { %1268 = vrot.lane.b32.xlu0 %v3718_v4, %s3206_s21 }
 0x254   : > { %1622 = vrot.lane.b32.xlu1 %v3637_v54, %s3207_s26 }
 0x256   : > { %1624 = vrot.lane.b32.xlu0 %v3652_v0, %s3207_s26 }
 0x258   : > { %1638 = vrot.lane.b32.xlu1 %v3709_v50, %s3207_s26 }
 0x25a   : > { %1640 = vrot.lane.b32.xlu0 %v3718_v4, %s3207_s26 }
 0x25c   : > { %1174 = vrot.lane.b32.xlu1 %v3654_v26, %s3208_s27 }
 0x25e   : > { %1176 = vrot.lane.b32.xlu0 %v3002_v37, %s3208_s27 }
 0x260   : > { %1190 = vrot.lane.b32.xlu1 %v3009_v53, %s3208_s27 }
 0x262   : > { %1192 = vrot.lane.b32.xlu0 %v3010_v34, %s3208_s27 }
 0x264   : > { %1170 = vrot.lane.b32.xlu1 %v3657_v32, %s3208_s27  ;;  %v3814_v32 = vpop.permute.xlu0 %2132 }
 0x265   : > { %4504 = vst [vmem:[#allocation4_spill] sm:$0xff] %v3814_v32 }
 0x266   : > { %1172 = vrot.lane.b32.xlu0 %v3666_v36, %s3208_s27  ;;  %v3830_v36 = vpop.permute.xlu1 %2150 }
 0x267   : > { %4505 = vst [vmem:[#allocation5_spill] sm:$0xff] %v3830_v36 }
 0x268   : > { %1186 = vrot.lane.b32.xlu1 %v3007_v56, %s3208_s27  ;;  %v3824_v37 = vpop.permute.xlu0 %2143 }
 0x26a   : > { %1188 = vrot.lane.b32.xlu0 %v3008_v35, %s3208_s27  ;;  %v3840_v16 = vpop.permute.xlu1 %2161 }
 0x26b   : > { %4507 = vst [vmem:[#allocation7_spill] sm:$0xff] %v3840_v16 }
 0x26c   : > { %1262 = vrot.lane.b32.xlu1 %v3673_v12, %s3206_s21  ;;  %v3834_v15 = vpop.permute.xlu0 %2154 }
 0x26d   : > { %4506 = vst [vmem:[#allocation6_spill] sm:$0xff] %v3834_v15 }
 0x26e   : > { %1264 = vrot.lane.b32.xlu0 %v3678_v28, %s3206_s21  ;;  %v3850_v13 = vpop.permute.xlu1 %2172 }
 0x270   : > { %v3844_v39 = vpop.permute.xlu0 %2165 }
 0x271   : > { %4508 = vst [vmem:[#allocation8_spill] sm:$0xff] %v3844_v39 }
 0x272   : > { %v3858_v7 = vpop.permute.xlu1 %2183 }
 0x274   : > { %v3854_v24 = vpop.permute.xlu0 %2176 }
 0x275   : > { %4509 = vst [vmem:[#allocation9_spill] sm:$0xff] %v3854_v24 }
 0x277   : > { %v3780_v6 = vpop.f32.mrb[4].mxu1 }
 0x278   : > { %v3782_v2 = vpop.f32.mrb[5].mxu1  ;;  %1278 = vrot.lane.b32.xlu1 %v3780_v6, %s3206_s21  ;;  %v1087_v18 = vmul.f32 %v3780_v6, %v1066_v61  ;;  %v3862_v43 = vpop.permute.xlu0 %2187 }
 0x279   : > { %v3789_v45 = vpop.f32.mrb[6].mxu1  ;;  %v1085_v19 = vmul.f32 %v1056_v29, %v3782_v2  ;;  %4510 = vst [vmem:[#allocation10_spill] sm:$0xff] %v3862_v43 }
 0x27a   : > { %v3792_v8 = vpop.f32.mrb[7].mxu1  ;;  %1280 = vrot.lane.b32.xlu0 %v3789_v45, %s3206_s21  ;;  %v3013_v22 = vpack.c.bf16 %v1087_v18, %v1087_v18  ;;  %v1088_v41 = vmul.f32 %v3789_v45, %v1071_v40 }
 0x27b   : > { %v1086_v57 = vmul.f32 %v1061_v60, %v3792_v8  ;;  %v3011_v14 = vpack.c.bf16 %v1085_v19, %v1085_v19 }
 0x27c   : > { %1634 = vrot.lane.b32.xlu1 %v3673_v12, %s3207_s26  ;;  %1168 = vst.msk [vmem:[%s3645_s24 + $0x38] sm:$0xf] %vm1153_vm1, %v3013_v22  ;;  %v3014_v17 = vpack.c.bf16 %v1088_v41, %v1088_v41 }
 0x27d   : > { %v3012_v26 = vpack.c.bf16 %v1086_v57, %v1086_v57  ;;  %1166 = vst.msk [vmem:[%s3645_s24 + $0x30] sm:$0xf] %vm1153_vm1, %v3011_v14 }
 0x27e   : > { %1636 = vrot.lane.b32.xlu0 %v3678_v28, %s3207_s26  ;;  %1169 = vst.msk [vmem:[%s3645_s24 + $0x3c] sm:$0xf] %vm1153_vm1, %v3014_v17 }
 0x27f   : > { %1167 = vst.msk [vmem:[%s3645_s24 + $0x34] sm:$0xf] %vm1153_vm1, %v3012_v26 }
 0x280   : > { %1650 = vrot.lane.b32.xlu1 %v3780_v6, %s3207_s26 }
 0x282   : > { %1652 = vrot.lane.b32.xlu0 %v3789_v45, %s3207_s26 }
 0x284   : > { %1258 = vrot.lane.b32.xlu1 %v3675_v47, %s3206_s21 }
 0x286   : > { %1260 = vrot.lane.b32.xlu0 %v3681_v25, %s3206_s21 }
 0x288   : > { %1274 = vrot.lane.b32.xlu1 %v3782_v2, %s3206_s21 }
 0x28a   : > { %1276 = vrot.lane.b32.xlu0 %v3792_v8, %s3206_s21 }
 0x28c   : > { %1630 = vrot.lane.b32.xlu1 %v3675_v47, %s3207_s26 }
 0x28e   : > { %1632 = vrot.lane.b32.xlu0 %v3681_v25, %s3207_s26 }
 0x290   : > { %1646 = vrot.lane.b32.xlu1 %v3782_v2, %s3207_s26 }
 0x292   : > { %1648 = vrot.lane.b32.xlu0 %v3792_v8, %s3207_s26 }
 0x294   : > { %1182 = vrot.lane.b32.xlu1 %v3683_v42, %s3208_s27  ;;  %v3867_v42 = vpop.permute.xlu1 %2194 }
 0x295   : > { %4511 = vst [vmem:[#allocation11_spill] sm:$0xff] %v3867_v42 }
 0x296   : > { %1184 = vrot.lane.b32.xlu0 %v3692_v44, %s3208_s27  ;;  %v3870_v44 = vpop.permute.xlu0 %2198 }
 0x297   : > { %4512 = vst [vmem:[#allocation12_spill] sm:$0xff] %v3870_v44 }
 0x298   : > { %1198 = vrot.lane.b32.xlu1 %v3013_v22, %s3208_s27  ;;  %v3872_v46 = vpop.permute.xlu1 %2209 }
 0x299   : > { %4513 = vst [vmem:[#allocation13_spill] sm:$0xff] %v3872_v46 }
 0x29a   : > { %1200 = vrot.lane.b32.xlu0 %v3014_v17, %s3208_s27  ;;  %v3874_v49 = vpop.permute.xlu0 %2205 }
 0x29b   : > { %4514 = vst [vmem:[#allocation14_spill] sm:$0xff] %v3874_v49 }
 0x29c   : > { %1178 = vrot.lane.b32.xlu1 %v3687_v10, %s3208_s27 }
 0x29d   : > { %v1255_v51 = vpop.permute.xlu1 %1254 }
 0x29e   : > { %1180 = vrot.lane.b32.xlu0 %v3694_v58, %s3208_s27  ;;  %v1305_v60 = vsel %vm1298_vm2, %v1255_v51, 0.0 }
 0x29f   : > { %v1257_v52 = vpop.permute.xlu0 %1256 }
 0x2a0   : > { %1194 = vrot.lane.b32.xlu1 %v3011_v14, %s3208_s27  ;;  %v1308_v17 = vsel %vm1298_vm2, %v1257_v52, 0.0 }
 0x2a2   : > { %1196 = vrot.lane.b32.xlu0 %v3012_v26, %s3208_s27 }
 0x2b2   : > { %v1271_v10 = vpop.permute.xlu1 %1270 }
 0x2b3   : > { %v1329_v18 = vsel %vm1298_vm2, %v1271_v10, 0.0 }
 0x2b4   : > { %v1273_v30 = vpop.permute.xlu0 %1272 }
 0x2b5   : > { %v1332_v52 = vsel %vm1298_vm2, %v1273_v30, 0.0 }
 0x2b6   : > { %v1627_v53 = vpop.permute.xlu1 %1626 }
 0x2b7   : > { %v1676_v57 = vsel %vm1298_vm2, %v1627_v53, 0.0 }
 0x2b8   : > { %v1629_v56 = vpop.permute.xlu0 %1628 }
 0x2ba   : > { %v1643_v59 = vpop.permute.xlu1 %1642 }
 0x2bb   : > { %v1700_v51 = vsel %vm1298_vm2, %v1643_v59, 0.0  ;;  %v1679_v59 = vsel %vm1298_vm2, %v1629_v56, 0.0 }
 0x2bc   : > { %v1645_v58 = vpop.permute.xlu0 %1644 }
 0x2be   : > { %v1251_v34 = vpop.permute.xlu1 %1250 }
 0x2bf   : > { %v1299_v29 = vsel %vm1298_vm2, %v1251_v34, 0.0 }
 0x2c0   : > { %v1253_v35 = vpop.permute.xlu0 %1252 }
 0x2c1   : > { %1306 = vadd.xlane.f32.xlu0 %v1305_v60 }
 0x2c2   : > { %v1267_v40 = vpop.permute.xlu1 %1266 }
 0x2c3   : > { %v1323_v34 = vsel %vm1298_vm2, %v1267_v40, 0.0  ;;  %v1703_v40 = vsel %vm1298_vm2, %v1645_v58, 0.0 }
 0x2c4   : > { %v1269_v61 = vpop.permute.xlu0 %1268  ;;  %1300 = vadd.xlane.f32.xlu1 %v1299_v29 }
 0x2c5   : > { %1330 = vadd.xlane.f32.xlu0 %v1329_v18 }
 0x2c6   : > { %v1623_v19 = vpop.permute.xlu1 %1622 }
 0x2c7   : > { %v1670_v22 = vsel %vm1298_vm2, %v1623_v19, 0.0 }
 0x2c8   : > { %v1625_v41 = vpop.permute.xlu0 %1624  ;;  %1671 = vadd.xlane.f32.xlu1 %v1670_v22  ;;  %v1302_v22 = vsel %vm1298_vm2, %v1253_v35, 0.0 }
 0x2c9   : > { %1677 = vadd.xlane.f32.xlu0 %v1676_v57  ;;  %v1326_v57 = vsel %vm1298_vm2, %v1269_v61, 0.0 }
 0x2ca   : > { %v1639_v14 = vpop.permute.xlu1 %1638 }
 0x2cb   : > { %v1694_v18 = vsel %vm1298_vm2, %v1639_v14, 0.0 }
 0x2cc   : > { %v1641_v26 = vpop.permute.xlu0 %1640  ;;  %1309 = vadd.xlane.f32.xlu1 %v1308_v17  ;;  %v1673_v17 = vsel %vm1298_vm2, %v1625_v41, 0.0 }
 0x2cd   : > { %1701 = vadd.xlane.f32.xlu0 %v1700_v51  ;;  %v1697_v51 = vsel %vm1298_vm2, %v1641_v26, 0.0 }
 0x2ce   : > { %v1175_v10 = vpop.permute.xlu1 %1174 }
 0x2cf   : > { %1220 = vst.msk [vmem:[%s3887_s30 + $0x8] sm:$0xf] %vm1153_vm1, %v1175_v10 }
 0x2d0   : > { %v1177_v53 = vpop.permute.xlu0 %1176  ;;  %1333 = vadd.xlane.f32.xlu1 %v1332_v52 }
 0x2d1   : > { %1221 = vst.msk [vmem:[%s3887_s30 + $0xc] sm:$0xf] %vm1153_vm1, %v1177_v53  ;;  %1324 = vadd.xlane.f32.xlu0 %v1323_v34 }
 0x2d2   : > { %v1191_v60 = vpop.permute.xlu1 %1190 }
 0x2d3   : > { %1228 = vst.msk [vmem:[%s3887_s30 + $0x28] sm:$0xf] %vm1153_vm1, %v1191_v60 }
 0x2d4   : > { %v1193_v29 = vpop.permute.xlu0 %1192  ;;  %1680 = vadd.xlane.f32.xlu1 %v1679_v59 }
 0x2d5   : > { %1229 = vst.msk [vmem:[%s3887_s30 + $0x2c] sm:$0xf] %vm1153_vm1, %v1193_v29  ;;  %1695 = vadd.xlane.f32.xlu0 %v1694_v18 }
 0x2d6   : > { %v1171_v30 = vpop.permute.xlu1 %1170 }
 0x2d7   : > { %1218 = vst.msk [vmem:[%s3887_s30] sm:$0xf] %vm1153_vm1, %v1171_v30 }
 0x2d8   : > { %v1173_v19 = vpop.permute.xlu0 %1172  ;;  %1704 = vadd.xlane.f32.xlu1 %v1703_v40 }
 0x2d9   : > { %1219 = vst.msk [vmem:[%s3887_s30 + $0x4] sm:$0xf] %vm1153_vm1, %v1173_v19  ;;  %1303 = vadd.xlane.f32.xlu0 %v1302_v22 }
 0x2da   : > { %v1187_v56 = vpop.permute.xlu1 %1186 }
 0x2db   : > { %1226 = vst.msk [vmem:[%s3887_s30 + $0x20] sm:$0xf] %vm1153_vm1, %v1187_v56 }
 0x2dc   : > { %v1189_v14 = vpop.permute.xlu0 %1188  ;;  %1327 = vadd.xlane.f32.xlu1 %v1326_v57 }
 0x2dd   : > { %1227 = vst.msk [vmem:[%s3887_s30 + $0x24] sm:$0xf] %vm1153_vm1, %v1189_v14  ;;  %1674 = vadd.xlane.f32.xlu0 %v1673_v17 }
 0x2de   : > { %v1263_v58 = vpop.permute.xlu1 %1262 }
 0x2df   : > { %v1317_v35 = vsel %vm1298_vm2, %v1263_v58, 0.0 }
 0x2e0   : > { %v1265_v10 = vpop.permute.xlu0 %1264  ;;  %1698 = vadd.xlane.f32.xlu1 %v1697_v51 }
 0x2e1   : > { %1318 = vadd.xlane.f32.xlu0 %v1317_v35  ;;  %v1320_v52 = vsel %vm1298_vm2, %v1265_v10, 0.0 }
 0x2e4   : > { %1321 = vadd.xlane.f32.xlu1 %v1320_v52 }
 0x2ea   : > { %v1279_v53 = vpop.permute.xlu1 %1278 }
 0x2eb   : > { %v1341_v61 = vsel %vm1298_vm2, %v1279_v53, 0.0 }
 0x2ec   : > { %1342 = vadd.xlane.f32.xlu0 %v1341_v61  ;;  %v1281_v34 = vpop.permute.xlu0 %1280 }
 0x2ed   : > { %v1344_v41 = vsel %vm1298_vm2, %v1281_v34, 0.0 }
 0x2ee   : > { %v1635_v60 = vpop.permute.xlu1 %1634  ;;  %1345 = vadd.xlane.f32.xlu1 %v1344_v41 }
 0x2ef   : > { %v1688_v59 = vsel %vm1298_vm2, %v1635_v60, 0.0 }
 0x2f0   : > { %1689 = vadd.xlane.f32.xlu0 %v1688_v59  ;;  %v1637_v26 = vpop.permute.xlu0 %1636 }
 0x2f1   : > { %v1691_v29 = vsel %vm1298_vm2, %v1637_v26, 0.0 }
 0x2f2   : > { %v1651_v18 = vpop.permute.xlu1 %1650  ;;  %1692 = vadd.xlane.f32.xlu1 %v1691_v29 }
 0x2f3   : > { %v1712_v30 = vsel %vm1298_vm2, %v1651_v18, 0.0 }
 0x2f4   : > { %1713 = vadd.xlane.f32.xlu0 %v1712_v30  ;;  %v1653_v40 = vpop.permute.xlu0 %1652 }
 0x2f5   : > { %v1715_v19 = vsel %vm1298_vm2, %v1653_v40, 0.0 }
 0x2f6   : > { %v1259_v22 = vpop.permute.xlu1 %1258  ;;  %1716 = vadd.xlane.f32.xlu1 %v1715_v19 }
 0x2f7   : > { %v1311_v56 = vsel %vm1298_vm2, %v1259_v22, 0.0 }
 0x2f8   : > { %1312 = vadd.xlane.f32.xlu0 %v1311_v56  ;;  %v1261_v57 = vpop.permute.xlu0 %1260 }
 0x2f9   : > { %v1314_v14 = vsel %vm1298_vm2, %v1261_v57, 0.0 }
 0x2fa   : > { %v1275_v17 = vpop.permute.xlu1 %1274  ;;  %1315 = vadd.xlane.f32.xlu1 %v1314_v14 }
 0x2fb   : > { %v1335_v58 = vsel %vm1298_vm2, %v1275_v17, 0.0 }
 0x2fc   : > { %1336 = vadd.xlane.f32.xlu0 %v1335_v58  ;;  %v1277_v51 = vpop.permute.xlu0 %1276 }
 0x2fd   : > { %v1338_v10 = vsel %vm1298_vm2, %v1277_v51, 0.0 }
 0x2fe   : > { %v1631_v35 = vpop.permute.xlu1 %1630  ;;  %1339 = vadd.xlane.f32.xlu1 %v1338_v10 }
 0x2ff   : > { %v1682_v52 = vsel %vm1298_vm2, %v1631_v35, 0.0 }
 0x300   : > { %1683 = vadd.xlane.f32.xlu0 %v1682_v52  ;;  %v1633_v53 = vpop.permute.xlu0 %1632 }
 0x301   : > { %v1685_v61 = vsel %vm1298_vm2, %v1633_v53, 0.0 }
 0x302   : > { %v1647_v34 = vpop.permute.xlu1 %1646  ;;  %1686 = vadd.xlane.f32.xlu1 %v1685_v61 }
 0x303   : > { %v1706_v41 = vsel %vm1298_vm2, %v1647_v34, 0.0 }
 0x304   : > { %1707 = vadd.xlane.f32.xlu0 %v1706_v41  ;;  %v1649_v60 = vpop.permute.xlu0 %1648 }
 0x305   : > { %v1709_v59 = vsel %vm1298_vm2, %v1649_v60, 0.0 }
 0x306   : > { %v1183_v26 = vpop.permute.xlu1 %1182  ;;  %1710 = vadd.xlane.f32.xlu1 %v1709_v59 }
 0x307   : > { %1224 = vst.msk [vmem:[%s3887_s30 + $0x18] sm:$0xf] %vm1153_vm1, %v1183_v26 }
 0x308   : > { %v1185_v29 = vpop.permute.xlu0 %1184 }
 0x309   : > { %1225 = vst.msk [vmem:[%s3887_s30 + $0x1c] sm:$0xf] %vm1153_vm1, %v1185_v29 }
 0x30a   : > { %v1199_v18 = vpop.permute.xlu1 %1198 }
 0x30b   : > { %1232 = vst.msk [vmem:[%s3887_s30 + $0x38] sm:$0xf] %vm1153_vm1, %v1199_v18 }
 0x30c   : > { %v1201_v30 = vpop.permute.xlu0 %1200 }
 0x30d   : > { %1233 = vst.msk [vmem:[%s3887_s30 + $0x3c] sm:$0xf] %vm1153_vm1, %v1201_v30 }
 0x30e   : > { %v1179_v40 = vpop.permute.xlu1 %1178 }
 0x30f   : > { %1222 = vst.msk [vmem:[%s3887_s30 + $0x10] sm:$0xf] %vm1153_vm1, %v1179_v40 }
 0x310   : > { %v1181_v19 = vpop.permute.xlu0 %1180 }
 0x311   : > { %1223 = vst.msk [vmem:[%s3887_s30 + $0x14] sm:$0xf] %vm1153_vm1, %v1181_v19 }
 0x312   : > { %v1195_v22 = vpop.permute.xlu1 %1194 }
 0x313   : > { %1230 = vst.msk [vmem:[%s3887_s30 + $0x30] sm:$0xf] %vm1153_vm1, %v1195_v22 }
 0x314   : > { %v1197_v56 = vpop.permute.xlu0 %1196 }
 0x315   : > { %1231 = vst.msk [vmem:[%s3887_s30 + $0x34] sm:$0xf] %vm1153_vm1, %v1197_v56 }
 0x34e   : > { %v1307_v57 = vpop.xlane.xlu0 %1306 }
 0x34f   : > { %v1350_v14 = vmul.f32 0.125, %v1307_v57 }
 0x351   : > { %v3948_v17 = vsub.f32 %v3633_v23, %v1350_v14  ;;  %v1301_v58 = vpop.xlane.xlu1 %1300 }
 0x352   : > { %v1348_v51 = vmul.f32 0.125, %v1301_v58  ;;  %v1331_v10 = vpop.xlane.xlu0 %1330 }
 0x353   : > { %v1382_v35 = vmul.f32 %v3948_v17, %v3948_v17  ;;  %v1358_v52 = vmul.f32 0.125, %v1331_v10 }
 0x354   : > { %v3953_v53 = vsub.f32 %v3637_v54, %v1348_v51 }
 0x355   : > { %v3956_v61 = vsub.f32 %v3705_v48, %v1358_v52  ;;  %v1672_v34 = vpop.xlane.xlu1 %1671  ;;  %1416 = vrot.lane.b32.xlu1 %v1382_v35, %s3206_s21 }
 0x356   : > { %v1380_v41 = vmul.f32 %v3953_v53, %v3953_v53  ;;  %v1718_v60 = vmul.f32 0.125, %v1672_v34  ;;  %v1678_v59 = vpop.xlane.xlu0 %1677 }
 0x357   : > { %v1390_v26 = vmul.f32 %v3956_v61, %v3956_v61  ;;  %v1720_v29 = vmul.f32 0.125, %v1678_v59 }
 0x358   : > { %v3964_v18 = vsub.f32 %v3637_v54, %v1718_v60  ;;  %1412 = vrot.lane.b32.xlu0 %v1380_v41, %s3206_s21 }
 0x359   : > { %v3968_v30 = vsub.f32 %v3633_v23, %v1720_v29  ;;  %v1310_v40 = vpop.xlane.xlu1 %1309  ;;  %1432 = vrot.lane.b32.xlu1 %v1390_v26, %s3206_s21 }
 0x35a   : > { %v1750_v19 = vmul.f32 %v3964_v18, %v3964_v18  ;;  %v1351_v22 = vmul.f32 0.125, %v1310_v40  ;;  %v1702_v56 = vpop.xlane.xlu0 %1701 }
 0x35b   : > { %v1752_v57 = vmul.f32 %v3968_v30, %v3968_v30  ;;  %v1728_v14 = vmul.f32 0.125, %v1702_v56 }
 0x35c   : > { %v3976_v54 = vsub.f32 %v3648_v20, %v1351_v22  ;;  %1782 = vrot.lane.b32.xlu0 %v1750_v19, %s3207_s26 }
 0x35d   : > { %v3980_v23 = vsub.f32 %v3705_v48, %v1728_v14  ;;  %v1334_v58 = vpop.xlane.xlu1 %1333  ;;  %1786 = vrot.lane.b32.xlu1 %v1752_v57, %s3207_s26 }
 0x35e   : > { %v1383_v51 = vmul.f32 %v3976_v54, %v3976_v54  ;;  %v1359_v10 = vmul.f32 0.125, %v1334_v58  ;;  %v1325_v35 = vpop.xlane.xlu0 %1324 }
 0x35f   : > { %v1760_v52 = vmul.f32 %v3980_v23, %v3980_v23  ;;  %v1356_v34 = vmul.f32 0.125, %v1325_v35 }
 0x360   : > { %v3988_v41 = vsub.f32 %v3712_v27, %v1359_v10  ;;  %1418 = vrot.lane.b32.xlu0 %v1383_v51, %s3206_s21 }
 0x361   : > { %v3992_v48 = vsub.f32 %v3709_v50, %v1356_v34  ;;  %v1681_v60 = vpop.xlane.xlu1 %1680  ;;  %1802 = vrot.lane.b32.xlu1 %v1760_v52, %s3207_s26 }
 0x362   : > { %v1391_v59 = vmul.f32 %v3988_v41, %v3988_v41  ;;  %v1721_v26 = vmul.f32 0.125, %v1681_v60  ;;  %v1696_v29 = vpop.xlane.xlu0 %1695 }
 0x363   : > { %v1388_v40 = vmul.f32 %v3992_v48, %v3992_v48  ;;  %v1726_v19 = vmul.f32 0.125, %v1696_v29 }
 0x364   : > { %v4000_v22 = vsub.f32 %v3648_v20, %v1721_v26  ;;  %1434 = vrot.lane.b32.xlu0 %v1391_v59, %s3206_s21 }
 0x365   : > { %v4004_v56 = vsub.f32 %v3709_v50, %v1726_v19  ;;  %v1705_v57 = vpop.xlane.xlu1 %1704  ;;  %1428 = vrot.lane.b32.xlu1 %v1388_v40, %s3206_s21 }
 0x366   : > { %v1753_v14 = vmul.f32 %v4000_v22, %v4000_v22  ;;  %v1729_v58 = vmul.f32 0.125, %v1705_v57  ;;  %v1304_v51 = vpop.xlane.xlu0 %1303 }
 0x367   : > { %v1758_v10 = vmul.f32 %v4004_v56, %v4004_v56  ;;  %v1349_v35 = vmul.f32 0.125, %v1304_v51 }
 0x368   : > { %v4012_v20 = vsub.f32 %v3712_v27, %v1729_v58  ;;  %1788 = vrot.lane.b32.xlu0 %v1753_v14, %s3207_s26 }
 0x369   : > { %v4016_v50 = vsub.f32 %v3652_v0, %v1349_v35  ;;  %v1328_v52 = vpop.xlane.xlu1 %1327  ;;  %1798 = vrot.lane.b32.xlu1 %v1758_v10, %s3207_s26 }
 0x36a   : > { %v1761_v34 = vmul.f32 %v4012_v20, %v4012_v20  ;;  %v1357_v60 = vmul.f32 0.125, %v1328_v52  ;;  %v1675_v59 = vpop.xlane.xlu0 %1674 }
 0x36b   : > { %v1381_v26 = vmul.f32 %v4016_v50, %v4016_v50  ;;  %v1719_v29 = vmul.f32 0.125, %v1675_v59 }
 0x36c   : > { %v4024_v27 = vsub.f32 %v3718_v4, %v1357_v60  ;;  %1804 = vrot.lane.b32.xlu0 %v1761_v34, %s3207_s26 }
 0x36d   : > { %v4028_v40 = vsub.f32 %v3652_v0, %v1719_v29  ;;  %v1699_v19 = vpop.xlane.xlu1 %1698  ;;  %1414 = vrot.lane.b32.xlu1 %v1381_v26, %s3206_s21 }
 0x36e   : > { %v1389_v57 = vmul.f32 %v4024_v27, %v4024_v27  ;;  %v1727_v14 = vmul.f32 0.125, %v1699_v19  ;;  %v1319_v58 = vpop.xlane.xlu0 %1318 }
 0x36f   : > { %v1751_v51 = vmul.f32 %v4028_v40, %v4028_v40  ;;  %v1354_v10 = vmul.f32 0.125, %v1319_v58 }
 0x370   : > { %v4036_v35 = vsub.f32 %v3718_v4, %v1727_v14  ;;  %1430 = vrot.lane.b32.xlu0 %v1389_v57, %s3206_s21 }
 0x371   : > { %v4040_v0 = vsub.f32 %v3673_v12, %v1354_v10  ;;  %v1322_v52 = vpop.xlane.xlu1 %1321  ;;  %1784 = vrot.lane.b32.xlu1 %v1751_v51, %s3207_s26 }
 0x372   : > { %v1759_v34 = vmul.f32 %v4036_v35, %v4036_v35  ;;  %v1355_v60 = vmul.f32 0.125, %v1322_v52 }
 0x373   : > { %v1386_v59 = vmul.f32 %v4040_v0, %v4040_v0 }
 0x374   : > { %v4048_v26 = vsub.f32 %v3678_v28, %v1355_v60  ;;  %1800 = vrot.lane.b32.xlu0 %v1759_v34, %s3207_s26 }
 0x375   : > { %1424 = vrot.lane.b32.xlu1 %v1386_v59, %s3206_s21 }
 0x376   : > { %v1387_v4 = vmul.f32 %v4048_v26, %v4048_v26 }
 0x378   : > { %1426 = vrot.lane.b32.xlu0 %v1387_v4, %s3206_s21 }
 0x379   : > { %v1343_v29 = vpop.xlane.xlu0 %1342 }
 0x37a   : > { %v1362_v19 = vmul.f32 0.125, %v1343_v29 }
 0x37b   : > { %v1346_v57 = vpop.xlane.xlu1 %1345 }
 0x37c   : > { %v4056_v14 = vsub.f32 %v3780_v6, %v1362_v19  ;;  %v1363_v58 = vmul.f32 0.125, %v1346_v57 }
 0x37d   : > { %v1690_v51 = vpop.xlane.xlu0 %1689 }
 0x37e   : > { %v1394_v10 = vmul.f32 %v4056_v14, %v4056_v14  ;;  %v4061_v52 = vsub.f32 %v3789_v45, %v1363_v58  ;;  %v1724_v34 = vmul.f32 0.125, %v1690_v51 }
 0x37f   : > { %v1693_v60 = vpop.xlane.xlu1 %1692 }
 0x380   : > { %v1395_v59 = vmul.f32 %v4061_v52, %v4061_v52  ;;  %v4066_v4 = vsub.f32 %v3673_v12, %v1724_v34  ;;  %v1725_v29 = vmul.f32 0.125, %v1693_v60  ;;  %1440 = vrot.lane.b32.xlu1 %v1394_v10, %s3206_s21 }
 0x381   : > { %v1714_v19 = vpop.xlane.xlu0 %1713 }
 0x382   : > { %v1756_v57 = vmul.f32 %v4066_v4, %v4066_v4  ;;  %v4072_v21 = vsub.f32 %v3678_v28, %v1725_v29  ;;  %v1732_v58 = vmul.f32 0.125, %v1714_v19  ;;  %1442 = vrot.lane.b32.xlu0 %v1395_v59, %s3206_s21 }
 0x383   : > { %v1717_v51 = vpop.xlane.xlu1 %1716 }
 0x384   : > { %v1757_v9 = vmul.f32 %v4072_v21, %v4072_v21  ;;  %v4078_v12 = vsub.f32 %v3780_v6, %v1732_v58  ;;  %v1733_v34 = vmul.f32 0.125, %v1717_v51  ;;  %1794 = vrot.lane.b32.xlu1 %v1756_v57, %s3207_s26 }
 0x385   : > { %v1313_v10 = vpop.xlane.xlu0 %1312 }
 0x386   : > { %v1764_v60 = vmul.f32 %v4078_v12, %v4078_v12  ;;  %v4084_v28 = vsub.f32 %v3789_v45, %v1733_v34  ;;  %v1352_v29 = vmul.f32 0.125, %v1313_v10  ;;  %1796 = vrot.lane.b32.xlu0 %v1757_v9, %s3207_s26 }
 0x387   : > { %v1316_v59 = vpop.xlane.xlu1 %1315 }
 0x388   : > { %v1765_v19 = vmul.f32 %v4084_v28, %v4084_v28  ;;  %v4090_v6 = vsub.f32 %v3675_v47, %v1352_v29  ;;  %v1353_v58 = vmul.f32 0.125, %v1316_v59  ;;  %1810 = vrot.lane.b32.xlu1 %v1764_v60, %s3207_s26 }
 0x389   : > { %v1337_v57 = vpop.xlane.xlu0 %1336 }
 0x38a   : > { %v1384_v51 = vmul.f32 %v4090_v6, %v4090_v6  ;;  %v4096_v45 = vsub.f32 %v3681_v25, %v1353_v58  ;;  %v1360_v34 = vmul.f32 0.125, %v1337_v57  ;;  %1812 = vrot.lane.b32.xlu0 %v1765_v19, %s3207_s26 }
 0x38b   : > { %v1340_v9 = vpop.xlane.xlu1 %1339 }
 0x38c   : > { %v1385_v10 = vmul.f32 %v4096_v45, %v4096_v45  ;;  %v4102_v29 = vsub.f32 %v3782_v2, %v1360_v34  ;;  %v1361_v59 = vmul.f32 0.125, %v1340_v9  ;;  %1420 = vrot.lane.b32.xlu1 %v1384_v51, %s3206_s21 }
 0x38d   : > { %v1684_v60 = vpop.xlane.xlu0 %1683 }
 0x38e   : > { %v1392_v44 = vmul.f32 %v4102_v29, %v4102_v29  ;;  %v4108_v58 = vsub.f32 %v3792_v8, %v1361_v59  ;;  %v1722_v57 = vmul.f32 0.125, %v1684_v60  ;;  %1422 = vrot.lane.b32.xlu0 %v1385_v10, %s3206_s21 }
 0x38f   : > { %v1687_v19 = vpop.xlane.xlu1 %1686 }
 0x390   : > { %v1393_v15 = vmul.f32 %v4108_v58, %v4108_v58  ;;  %v4114_v34 = vsub.f32 %v3675_v47, %v1722_v57  ;;  %v1723_v9 = vmul.f32 0.125, %v1687_v19  ;;  %1436 = vrot.lane.b32.xlu1 %v1392_v44, %s3206_s21 }
 0x391   : > { %v1708_v51 = vpop.xlane.xlu0 %1707 }
 0x392   : > { %v1754_v46 = vmul.f32 %v4114_v34, %v4114_v34  ;;  %v4120_v59 = vsub.f32 %v3681_v25, %v1723_v9  ;;  %v1730_v60 = vmul.f32 0.125, %v1708_v51  ;;  %1438 = vrot.lane.b32.xlu0 %v1393_v15, %s3206_s21 }
 0x393   : > { %v1711_v10 = vpop.xlane.xlu1 %1710 }
 0x394   : > { %v1755_v39 = vmul.f32 %v4120_v59, %v4120_v59  ;;  %v4126_v47 = vsub.f32 %v3782_v2, %v1730_v60  ;;  %v1731_v57 = vmul.f32 0.125, %v1711_v10  ;;  %1790 = vrot.lane.b32.xlu1 %v1754_v46, %s3207_s26 }
 0x396   : > { %v1762_v44 = vmul.f32 %v4126_v47, %v4126_v47  ;;  %v4132_v19 = vsub.f32 %v3792_v8, %v1731_v57  ;;  %1792 = vrot.lane.b32.xlu0 %v1755_v39, %s3207_s26 }
 0x398   : > { %v1763_v25 = vmul.f32 %v4132_v19, %v4132_v19  ;;  %1806 = vrot.lane.b32.xlu1 %v1762_v44, %s3207_s26 }
 0x39a   : > { %1808 = vrot.lane.b32.xlu0 %v1763_v25, %s3207_s26 }
 0x3c7   : > { %v1417_v2 = vpop.permute.xlu1 %1416 }
 0x3c8   : > { %v1466_v15 = vsel %vm1298_vm2, %v1417_v2, 0.0 }
 0x3c9   : > { %1467 = vadd.xlane.f32.xlu0 %v1466_v15 }
 0x3ca   : > { %v1413_v46 = vpop.permute.xlu0 %1412 }
 0x3cb   : > { %v1433_v9 = vpop.permute.xlu1 %1432  ;;  %v1460_v51 = vsel %vm1298_vm2, %v1413_v46, 0.0 }
 0x3cc   : > { %1461 = vadd.xlane.f32.xlu1 %v1460_v51  ;;  %v1490_v8 = vsel %vm1298_vm2, %v1433_v9, 0.0 }
 0x3cd   : > { %1491 = vadd.xlane.f32.xlu0 %v1490_v8 }
 0x3ce   : > { %v1783_v39 = vpop.permute.xlu0 %1782 }
 0x3cf   : > { %v1787_v60 = vpop.permute.xlu1 %1786  ;;  %v1830_v10 = vsel %vm1298_vm2, %v1783_v39, 0.0 }
 0x3d0   : > { %1831 = vadd.xlane.f32.xlu1 %v1830_v10  ;;  %v1836_v57 = vsel %vm1298_vm2, %v1787_v60, 0.0 }
 0x3d1   : > { %1837 = vadd.xlane.f32.xlu0 %v1836_v57 }
 0x3d2   : > { %v1419_v44 = vpop.permute.xlu0 %1418 }
 0x3d3   : > { %v1803_v25 = vpop.permute.xlu1 %1802  ;;  %v1469_v2 = vsel %vm1298_vm2, %v1419_v44, 0.0 }
 0x3d4   : > { %1470 = vadd.xlane.f32.xlu1 %v1469_v2  ;;  %v1860_v15 = vsel %vm1298_vm2, %v1803_v25, 0.0 }
 0x3d5   : > { %1861 = vadd.xlane.f32.xlu0 %v1860_v15 }
 0x3d6   : > { %v1435_v46 = vpop.permute.xlu0 %1434 }
 0x3d7   : > { %v1429_v51 = vpop.permute.xlu1 %1428  ;;  %v1493_v9 = vsel %vm1298_vm2, %v1435_v46, 0.0 }
 0x3d8   : > { %1494 = vadd.xlane.f32.xlu1 %v1493_v9  ;;  %v1484_v8 = vsel %vm1298_vm2, %v1429_v51, 0.0 }
 0x3d9   : > { %1485 = vadd.xlane.f32.xlu0 %v1484_v8 }
 0x3da   : > { %v1789_v39 = vpop.permute.xlu0 %1788 }
 0x3db   : > { %v1799_v10 = vpop.permute.xlu1 %1798  ;;  %v1839_v60 = vsel %vm1298_vm2, %v1789_v39, 0.0 }
 0x3dc   : > { %1840 = vadd.xlane.f32.xlu1 %v1839_v60  ;;  %v1854_v57 = vsel %vm1298_vm2, %v1799_v10, 0.0 }
 0x3dd   : > { %1855 = vadd.xlane.f32.xlu0 %v1854_v57 }
 0x3de   : > { %v1805_v44 = vpop.permute.xlu0 %1804 }
 0x3df   : > { %v1415_v2 = vpop.permute.xlu1 %1414  ;;  %v1863_v25 = vsel %vm1298_vm2, %v1805_v44, 0.0 }
 0x3e0   : > { %1864 = vadd.xlane.f32.xlu1 %v1863_v25  ;;  %v1463_v15 = vsel %vm1298_vm2, %v1415_v2, 0.0 }
 0x3e1   : > { %1464 = vadd.xlane.f32.xlu0 %v1463_v15 }
 0x3e2   : > { %v1431_v46 = vpop.permute.xlu0 %1430 }
 0x3e3   : > { %v1785_v9 = vpop.permute.xlu1 %1784  ;;  %v1487_v51 = vsel %vm1298_vm2, %v1431_v46, 0.0 }
 0x3e4   : > { %1488 = vadd.xlane.f32.xlu1 %v1487_v51  ;;  %v1833_v8 = vsel %vm1298_vm2, %v1785_v9, 0.0 }
 0x3e5   : > { %1834 = vadd.xlane.f32.xlu0 %v1833_v8 }
 0x3e6   : > { %v1801_v39 = vpop.permute.xlu0 %1800 }
 0x3e7   : > { %v1425_v60 = vpop.permute.xlu1 %1424  ;;  %v1857_v10 = vsel %vm1298_vm2, %v1801_v39, 0.0 }
 0x3e8   : > { %1858 = vadd.xlane.f32.xlu1 %v1857_v10  ;;  %v1478_v57 = vsel %vm1298_vm2, %v1425_v60, 0.0 }
 0x3e9   : > { %1479 = vadd.xlane.f32.xlu0 %v1478_v57 }
 0x3ea   : > { %v1427_v44 = vpop.permute.xlu0 %1426 }
 0x3eb   : > { %v1481_v2 = vsel %vm1298_vm2, %v1427_v44, 0.0 }
 0x3ec   : > { %1482 = vadd.xlane.f32.xlu1 %v1481_v2 }
 0x3f2   : > { %v1441_v25 = vpop.permute.xlu1 %1440 }
 0x3f3   : > { %v1502_v15 = vsel %vm1298_vm2, %v1441_v25, 0.0 }
 0x3f4   : > { %1503 = vadd.xlane.f32.xlu0 %v1502_v15  ;;  %v1443_v46 = vpop.permute.xlu0 %1442 }
 0x3f5   : > { %v1505_v9 = vsel %vm1298_vm2, %v1443_v46, 0.0 }
 0x3f6   : > { %v1795_v51 = vpop.permute.xlu1 %1794  ;;  %1506 = vadd.xlane.f32.xlu1 %v1505_v9 }
 0x3f7   : > { %v1848_v8 = vsel %vm1298_vm2, %v1795_v51, 0.0 }
 0x3f8   : > { %1849 = vadd.xlane.f32.xlu0 %v1848_v8  ;;  %v1797_v39 = vpop.permute.xlu0 %1796 }
 0x3f9   : > { %v1851_v60 = vsel %vm1298_vm2, %v1797_v39, 0.0 }
 0x3fa   : > { %v1811_v10 = vpop.permute.xlu1 %1810  ;;  %1852 = vadd.xlane.f32.xlu1 %v1851_v60 }
 0x3fb   : > { %v1872_v57 = vsel %vm1298_vm2, %v1811_v10, 0.0 }
 0x3fc   : > { %1873 = vadd.xlane.f32.xlu0 %v1872_v57  ;;  %v1813_v44 = vpop.permute.xlu0 %1812 }
 0x3fd   : > { %v1875_v2 = vsel %vm1298_vm2, %v1813_v44, 0.0 }
 0x3fe   : > { %v1421_v25 = vpop.permute.xlu1 %1420  ;;  %1876 = vadd.xlane.f32.xlu1 %v1875_v2 }
 0x3ff   : > { %v1472_v15 = vsel %vm1298_vm2, %v1421_v25, 0.0 }
 0x400   : > { %1473 = vadd.xlane.f32.xlu0 %v1472_v15  ;;  %v1423_v46 = vpop.permute.xlu0 %1422 }
 0x401   : > { %v1475_v9 = vsel %vm1298_vm2, %v1423_v46, 0.0 }
 0x402   : > { %v1437_v51 = vpop.permute.xlu1 %1436  ;;  %1476 = vadd.xlane.f32.xlu1 %v1475_v9 }
 0x403   : > { %v1496_v8 = vsel %vm1298_vm2, %v1437_v51, 0.0 }
 0x404   : > { %1497 = vadd.xlane.f32.xlu0 %v1496_v8  ;;  %v1439_v39 = vpop.permute.xlu0 %1438 }
 0x405   : > { %v1499_v60 = vsel %vm1298_vm2, %v1439_v39, 0.0 }
 0x406   : > { %v1791_v10 = vpop.permute.xlu1 %1790  ;;  %1500 = vadd.xlane.f32.xlu1 %v1499_v60 }
 0x407   : > { %v1842_v57 = vsel %vm1298_vm2, %v1791_v10, 0.0 }
 0x408   : > { %1843 = vadd.xlane.f32.xlu0 %v1842_v57  ;;  %v1793_v44 = vpop.permute.xlu0 %1792 }
 0x409   : > { %v1845_v2 = vsel %vm1298_vm2, %v1793_v44, 0.0 }
 0x40a   : > { %v1807_v25 = vpop.permute.xlu1 %1806  ;;  %1846 = vadd.xlane.f32.xlu1 %v1845_v2 }
 0x40b   : > { %v1866_v15 = vsel %vm1298_vm2, %v1807_v25, 0.0 }
 0x40c   : > { %1867 = vadd.xlane.f32.xlu0 %v1866_v15  ;;  %v1809_v46 = vpop.permute.xlu0 %1808 }
 0x40d   : > { %v1869_v9 = vsel %vm1298_vm2, %v1809_v46, 0.0 }
 0x40e   : > { %1870 = vadd.xlane.f32.xlu1 %v1869_v9 }
 0x456   : > { %v1468_v51 = vpop.xlane.xlu0 %1467 }
 0x457   : > { %v1510_v8 = vmul.f32 0.125, %v1468_v51 }
 0x459   : > { %v1526_v39 = vadd.f32 1e-05, %v1510_v8  ;;  %v1462_v42 = vpop.xlane.xlu1 %1461 }
 0x45a   : > { %v1508_v60 = vmul.f32 0.125, %v1462_v42  ;;  %v1492_v36 = vpop.xlane.xlu0 %1491 }
 0x45b   : > { %3115 = vrsqrt.f32 %v1526_v39  ;;  %v1518_v10 = vmul.f32 0.125, %v1492_v36 }
 0x45c   : > { %v1524_v57 = vadd.f32 1e-05, %v1508_v60 }
 0x45d   : > { %v1534_v49 = vadd.f32 1e-05, %v1518_v10  ;;  %v1832_v44 = vpop.xlane.xlu1 %1831 }
 0x45e   : > { %3117 = vrsqrt.f32 %v1524_v57  ;;  %v1878_v2 = vmul.f32 0.125, %v1832_v44  ;;  %v1838_v24 = vpop.xlane.xlu0 %1837 }
 0x45f   : > { %3119 = vrsqrt.f32 %v1534_v49  ;;  %v1880_v25 = vmul.f32 0.125, %v1838_v24 }
 0x460   : > { %v1894_v46 = vadd.f32 1e-05, %v1878_v2 }
 0x461   : > { %v1896_v15 = vadd.f32 1e-05, %v1880_v25  ;;  %v1471_v32 = vpop.xlane.xlu1 %1470 }
 0x462   : > { %v1511_v9 = vmul.f32 0.125, %v1471_v32  ;;  %v1862_v16 = vpop.xlane.xlu0 %1861 }
 0x463   : > { %3121 = vrsqrt.f32 %v1896_v15  ;;  %v1888_v51 = vmul.f32 0.125, %v1862_v16 }
 0x464   : > { %3123 = vrsqrt.f32 %v1894_v46  ;;  %v1527_v36 = vadd.f32 1e-05, %v1511_v9 }
 0x465   : > { %v3116_v8 = vpop.eup %3115  ;;  %v1904_v42 = vadd.f32 1e-05, %v1888_v51  ;;  %v1495_v43 = vpop.xlane.xlu1 %1494 }
 0x466   : > { %v1519_v39 = vmul.f32 0.125, %v1495_v43  ;;  %v1486_v60 = vpop.xlane.xlu0 %1485  ;;  %v1558_v10 = vmul.f32 %v3116_v8, %v3948_v17 }
 0x467   : > { %3125 = vrsqrt.f32 %v1904_v42  ;;  %v1516_v57 = vmul.f32 0.125, %v1486_v60 }
 0x468   : > { %v3118_v49 = vpop.eup %3117  ;;  %v1583_v24 = vmul.f32 %v3758_v38, %v1558_v10  ;;  %v1535_v2 = vadd.f32 1e-05, %v1519_v39  ;;  %3127 = vrsqrt.f32 %v1527_v36 }
 0x469   : > { %v3120_v44 = vpop.eup %3119  ;;  %v1532_v32 = vadd.f32 1e-05, %v1516_v57  ;;  %v1841_v25 = vpop.xlane.xlu1 %1840  ;;  %v1556_v16 = vmul.f32 %v3118_v49, %v3953_v53 }
 0x46a   : > { %v1881_v15 = vmul.f32 0.125, %v1841_v25  ;;  %v1856_v51 = vpop.xlane.xlu0 %1855  ;;  %v1608_v46 = vadd.f32 %v3770_v1, %v1583_v24  ;;  %v1566_v43 = vmul.f32 %v3120_v44, %v3956_v61 }
 0x46b   : > { %3129 = vrsqrt.f32 %v1532_v32  ;;  %v1886_v17 = vmul.f32 0.125, %v1856_v51  ;;  %v1581_v39 = vmul.f32 %v3758_v38, %v1556_v16 }
 0x46c   : > { %v1897_v9 = vadd.f32 1e-05, %v1881_v15  ;;  %v1996_v8 = vmul.f32 %v3786_v11, %v1608_v46  ;;  %v1591_v42 = vmul.f32 %v3758_v38, %v1566_v43  ;;  %3131 = vrsqrt.f32 %v1535_v2 }
 0x46d   : > { %v3122_v60 = vpop.eup %3121  ;;  %v1902_v10 = vadd.f32 1e-05, %v1886_v17  ;;  %v1865_v53 = vpop.xlane.xlu1 %1864  ;;  %v1606_v16 = vadd.f32 %v3770_v1, %v1581_v39 }
 0x46e   : > { %3133 = vrsqrt.f32 %v1897_v9  ;;  %v1889_v36 = vmul.f32 0.125, %v1865_v53  ;;  %2030 = vrot.lane.b32.xlu1 %v1996_v8, %s3206_s21  ;;  %v1465_v57 = vpop.xlane.xlu0 %1464  ;;  %v1616_v61 = vadd.f32 %v3770_v1, %v1591_v42  ;;  %v1928_v49 = vmul.f32 %v3122_v60, %v3968_v30  ;;  %v3124_v44 = vpop.eup %3123 }
 0x46f   : > { %3135 = vrsqrt.f32 %v1902_v10  ;;  %v1509_v24 = vmul.f32 0.125, %v1465_v57  ;;  %v1926_v42 = vmul.f32 %v3124_v44, %v3964_v18  ;;  %v1994_v10 = vmul.f32 %v3786_v11, %v1606_v16 }
 0x470   : > { %v1905_v32 = vadd.f32 1e-05, %v1889_v36  ;;  %v2004_v25 = vmul.f32 %v3786_v11, %v1616_v61  ;;  %v1947_v2 = vmul.f32 %v3765_v62, %v1928_v49 }
 0x471   : > { %v3126_v15 = vpop.eup %3125  ;;  %v1525_v51 = vadd.f32 1e-05, %v1509_v24  ;;  %v1489_v46 = vpop.xlane.xlu1 %1488  ;;  %v1945_v16 = vmul.f32 %v3765_v62, %v1926_v42 }
 0x472   : > { %3137 = vrsqrt.f32 %v1905_v32  ;;  %v1517_v43 = vmul.f32 0.125, %v1489_v46  ;;  %2046 = vrot.lane.b32.xlu1 %v2004_v25, %s3206_s21  ;;  %v1835_v17 = vpop.xlane.xlu0 %1834  ;;  %v1966_v30 = vadd.f32 %v3776_v55, %v1947_v2  ;;  %v1936_v9 = vmul.f32 %v3126_v15, %v3980_v23  ;;  %v3128_v60 = vpop.eup %3127 }
 0x473   : > { %3139 = vrsqrt.f32 %v1525_v51  ;;  %v1879_v8 = vmul.f32 0.125, %v1835_v17  ;;  %v1964_v42 = vadd.f32 %v3776_v55, %v1945_v16 }
 0x474   : > { %v1533_v39 = vadd.f32 1e-05, %v1517_v43  ;;  %v2253_v53 = vmul.f32 %v3806_v31, %v1966_v30  ;;  %v1955_v36 = vmul.f32 %v3765_v62, %v1936_v9  ;;  %v1559_v43 = vmul.f32 %v3128_v60, %v3976_v54 }
 0x475   : > { %v3130_v57 = vpop.eup %3129  ;;  %v1895_v61 = vadd.f32 1e-05, %v1879_v8  ;;  %v1859_v49 = vpop.xlane.xlu1 %1858 }
 0x476   : > { %3141 = vrsqrt.f32 %v1533_v39  ;;  %v1887_v24 = vmul.f32 0.125, %v1859_v49  ;;  %2026 = vrot.lane.b32.xlu1 %v1994_v10, %s3206_s21  ;;  %2287 = vrot.lane.b32.xlu0 %v2253_v53, %s3207_s26  ;;  %v1480_v23 = vpop.xlane.xlu0 %1479  ;;  %v1974_v18 = vadd.f32 %v3776_v55, %v1955_v36  ;;  %v1564_v44 = vmul.f32 %v3130_v57, %v3992_v48  ;;  %v3132_v32 = vpop.eup %3131 }
 0x477   : > { %3143 = vrsqrt.f32 %v1895_v61  ;;  %v1514_v25 = vmul.f32 0.125, %v1480_v23  ;;  %v1567_v39 = vmul.f32 %v3132_v32, %v3988_v41 }
 0x478   : > { %v3134_v2 = vpop.eup %3133  ;;  %v1903_v15 = vadd.f32 1e-05, %v1887_v24  ;;  %v2261_v51 = vmul.f32 %v3806_v31, %v1974_v18  ;;  %v1589_v46 = vmul.f32 %v3758_v38, %v1564_v44  ;;  %v2251_v18 = vmul.f32 %v3806_v31, %v1964_v42 }
 0x479   : > { %v3136_v17 = vpop.eup %3135  ;;  %v1530_v30 = vadd.f32 1e-05, %v1514_v25  ;;  %v1929_v9 = vmul.f32 %v3134_v2, %v4000_v22  ;;  %v1584_v22 = vmul.f32 %v3758_v38, %v1559_v43  ;;  %v1483_v61 = vpop.xlane.xlu1 %1482  ;;  %v1592_v41 = vmul.f32 %v3758_v38, %v1567_v39 }
 0x47a   : > { %3145 = vrsqrt.f32 %v1903_v15  ;;  %2303 = vrot.lane.b32.xlu0 %v2261_v51, %s3207_s26  ;;  %v1614_v48 = vadd.f32 %v3770_v1, %v1589_v46  ;;  %v1934_v8 = vmul.f32 %v3136_v17, %v4004_v56 }
 0x47b   : > { %3147 = vrsqrt.f32 %v1530_v30  ;;  %v1948_v60 = vmul.f32 %v3765_v62, %v1929_v9  ;;  %v1617_v46 = vadd.f32 %v3770_v1, %v1592_v41 }
 0x47c   : > { %v3138_v10 = vpop.eup %3137  ;;  %v2002_v53 = vmul.f32 %v3786_v11, %v1614_v48  ;;  %v1953_v54 = vmul.f32 %v3765_v62, %v1934_v8 }
 0x47d   : > { %v3140_v36 = vpop.eup %3139  ;;  %v1937_v57 = vmul.f32 %v3138_v10, %v4012_v20  ;;  %v1967_v32 = vadd.f32 %v3776_v55, %v1948_v60  ;;  %v1609_v20 = vadd.f32 %v3770_v1, %v1584_v22  ;;  %v2005_v60 = vmul.f32 %v3774_v3, %v1617_v46 }
 0x47e   : > { %2042 = vrot.lane.b32.xlu1 %v2002_v53, %s3206_s21  ;;  %v1972_v56 = vadd.f32 %v3776_v55, %v1953_v54  ;;  %v1557_v24 = vmul.f32 %v3140_v36, %v4016_v50 }
 0x47f   : > { %v1956_v49 = vmul.f32 %v3765_v62, %v1937_v57  ;;  %v2254_v48 = vmul.f32 %v3778_v5, %v1967_v32  ;;  %v1997_v8 = vmul.f32 %v3774_v3, %v1609_v20 }
 0x480   : > { %v3142_v23 = vpop.eup %3141  ;;  %v2259_v44 = vmul.f32 %v3806_v31, %v1972_v56  ;;  %v1582_v43 = vmul.f32 %v3758_v38, %v1557_v24 }
 0x481   : > { %v3144_v25 = vpop.eup %3143  ;;  %v1504_v16 = vpop.xlane.xlu0 %1503  ;;  %v1975_v50 = vadd.f32 %v3776_v55, %v1956_v49  ;;  %v1565_v17 = vmul.f32 %v3142_v23, %v4024_v27 }
 0x482   : > { %v1522_v2 = vmul.f32 0.125, %v1504_v16  ;;  %2283 = vrot.lane.b32.xlu1 %v2251_v18, %s3207_s26  ;;  %2299 = vrot.lane.b32.xlu0 %v2259_v44, %s3207_s26  ;;  %v1927_v15 = vmul.f32 %v3144_v25, %v4028_v40  ;;  %v1607_v22 = vadd.f32 %v3770_v1, %v1582_v43  ;;  %v1515_v43 = vmul.f32 0.125, %v1483_v61 }
 0x483   : > { %v4223_v51 = vpop.xlane.xlu1 %1506  ;;  %v2262_v27 = vmul.f32 %v3778_v5, %v1975_v50  ;;  %v1590_v36 = vmul.f32 %v3758_v38, %v1565_v17 }
 0x484   : > { %v3146_v30 = vpop.eup %3145  ;;  %v1538_v9 = vadd.f32 1e-05, %v1522_v2  ;;  %v1946_v42 = vmul.f32 %v3765_v62, %v1927_v15  ;;  %v1995_v44 = vmul.f32 %v3774_v3, %v1607_v22 }
 0x485   : > { %v3148_v39 = vpop.eup %3147  ;;  %v1850_v40 = vpop.xlane.xlu0 %1849  ;;  %v1935_v10 = vmul.f32 %v3146_v30, %v4036_v35  ;;  %v1615_v32 = vadd.f32 %v3770_v1, %v1590_v36 }
 0x486   : > { %3149 = vrsqrt.f32 %v1538_v9  ;;  %v1884_v53 = vmul.f32 0.125, %v1850_v40  ;;  %2289 = vrot.lane.b32.xlu1 %v2254_v48, %s3207_s26  ;;  %2032 = vrot.lane.b32.xlu0 %v1997_v8, %s3206_s21  ;;  %v1965_v56 = vadd.f32 %v3776_v55, %v1946_v42  ;;  %v1562_v49 = vmul.f32 %v3148_v39, %v4040_v0 }
 0x487   : > { %v1853_v54 = vpop.xlane.xlu1 %1852  ;;  %v1954_v35 = vmul.f32 %v3765_v62, %v1935_v10  ;;  %v2003_v48 = vmul.f32 %v3774_v3, %v1615_v32 }
 0x488   : > { %v1900_v57 = vadd.f32 1e-05, %v1884_v53  ;;  %v1885_v41 = vmul.f32 0.125, %v1853_v54  ;;  %v2252_v25 = vmul.f32 %v3778_v5, %v1965_v56  ;;  %v1587_v0 = vmul.f32 %v3758_v38, %v1562_v49 }
 0x489   : > { %v1874_v24 = vpop.xlane.xlu0 %1873  ;;  %v1973_v16 = vadd.f32 %v3776_v55, %v1954_v35 }
 0x48a   : > { %3151 = vrsqrt.f32 %v1900_v57  ;;  %v1892_v23 = vmul.f32 0.125, %v1874_v24  ;;  %2305 = vrot.lane.b32.xlu1 %v2262_v27, %s3207_s26  ;;  %2048 = vrot.lane.b32.xlu0 %v2005_v60, %s3206_s21  ;;  %v1901_v2 = vadd.f32 1e-05, %v1885_v41  ;;  %v1612_v42 = vadd.f32 %v3770_v1, %v1587_v0 }
 0x48b   : > { %v1877_v18 = vpop.xlane.xlu1 %1876  ;;  %v2260_v8 = vmul.f32 %v3778_v5, %v1973_v16  ;;  %v1531_v60 = vadd.f32 1e-05, %v1515_v43  ;;  %v1523_v57 = vmul.f32 0.125, %v4223_v51 }
 0x48c   : > { %v1908_v20 = vadd.f32 1e-05, %v1892_v23  ;;  %v1893_v15 = vmul.f32 0.125, %v1877_v18  ;;  %v2000_v36 = vmul.f32 %v3786_v11, %v1612_v42 }
 0x48d   : > { %v1474_v50 = vpop.xlane.xlu0 %1473  ;;  %v1539_v51 = vadd.f32 1e-05, %v1523_v57 }
 0x48e   : > { %3153 = vrsqrt.f32 %v1908_v20  ;;  %v1512_v46 = vmul.f32 0.125, %v1474_v50  ;;  %2028 = vrot.lane.b32.xlu0 %v1995_v44, %s3206_s21  ;;  %2285 = vrot.lane.b32.xlu1 %v2252_v25, %s3207_s26  ;;  %v1909_v39 = vadd.f32 1e-05, %v1893_v15 }
 0x48f   : > { %v1477_v17 = vpop.xlane.xlu1 %1476  ;;  %3155 = vrsqrt.f32 %v1901_v2 }
 0x490   : > { %v3150_v30 = vpop.eup %3149  ;;  %v1528_v9 = vadd.f32 1e-05, %v1512_v46  ;;  %v1513_v20 = vmul.f32 0.125, %v1477_v17 }
 0x491   : > { %v1498_v40 = vpop.xlane.xlu0 %1497  ;;  %v1570_v10 = vmul.f32 %v3150_v30, %v4056_v14 }
 0x492   : > { %3157 = vrsqrt.f32 %v1528_v9  ;;  %v1520_v53 = vmul.f32 0.125, %v1498_v40  ;;  %2044 = vrot.lane.b32.xlu0 %v2003_v48, %s3206_s21  ;;  %2301 = vrot.lane.b32.xlu1 %v2260_v8, %s3207_s26  ;;  %v1529_v48 = vadd.f32 1e-05, %v1513_v20 }
 0x493   : > { %v1501_v61 = vpop.xlane.xlu1 %1500  ;;  %v1595_v54 = vmul.f32 %v3758_v38, %v1570_v10  ;;  %3159 = vrsqrt.f32 %v1909_v39 }
 0x494   : > { %v3152_v27 = vpop.eup %3151  ;;  %v1536_v22 = vadd.f32 1e-05, %v1520_v53  ;;  %v1521_v42 = vmul.f32 0.125, %v1501_v61 }
 0x495   : > { %v1844_v56 = vpop.xlane.xlu0 %1843  ;;  %v1620_v14 = vadd.f32 %v3770_v1, %v1595_v54  ;;  %v1932_v35 = vmul.f32 %v3152_v27, %v4066_v4 }
 0x496   : > { %3161 = vrsqrt.f32 %v1536_v22  ;;  %v1882_v49 = vmul.f32 0.125, %v1844_v56  ;;  %2038 = vrot.lane.b32.xlu1 %v2000_v36, %s3206_s21  ;;  %v1537_v61 = vadd.f32 1e-05, %v1521_v42 }
 0x497   : > { %v1847_v41 = vpop.xlane.xlu1 %1846  ;;  %v2008_v24 = vmul.f32 %v3786_v11, %v1620_v14  ;;  %v1951_v23 = vmul.f32 %v3765_v62, %v1932_v35  ;;  %3163 = vrsqrt.f32 %v1531_v60 }
 0x498   : > { %v3154_v18 = vpop.eup %3153  ;;  %v1898_v44 = vadd.f32 1e-05, %v1882_v49  ;;  %v1883_v32 = vmul.f32 0.125, %v1847_v41 }
 0x499   : > { %v1868_v25 = vpop.xlane.xlu0 %1867  ;;  %v1970_v16 = vadd.f32 %v3776_v55, %v1951_v23  ;;  %v1940_v4 = vmul.f32 %v3154_v18, %v4078_v12  ;;  %v3156_v15 = vpop.eup %3155 }
 0x49a   : > { %3165 = vrsqrt.f32 %v1898_v44  ;;  %v1899_v0 = vadd.f32 1e-05, %v1883_v32  ;;  %v1890_v2 = vmul.f32 0.125, %v1868_v25  ;;  %2054 = vrot.lane.b32.xlu1 %v2008_v24, %s3206_s21  ;;  %v1933_v40 = vmul.f32 %v3156_v15, %v4072_v21 }
 0x49b   : > { %v1871_v50 = vpop.xlane.xlu1 %1870  ;;  %v2257_v46 = vmul.f32 %v3806_v31, %v1970_v16  ;;  %v1959_v43 = vmul.f32 %v3765_v62, %v1940_v4 }
 0x49c   : > { %v3158_v30 = vpop.eup %3157  ;;  %3167 = vrsqrt.f32 %v1899_v0  ;;  %v1906_v9 = vadd.f32 1e-05, %v1890_v2  ;;  %v1891_v17 = vmul.f32 0.125, %v1871_v50  ;;  %v1952_v36 = vmul.f32 %v3765_v62, %v1933_v40 }
 0x49d   : > { %3169 = vrsqrt.f32 %v1539_v51  ;;  %2295 = vrot.lane.b32.xlu0 %v2257_v46, %s3207_s26  ;;  %v1978_v12 = vadd.f32 %v3776_v55, %v1959_v43  ;;  %v1560_v8 = vmul.f32 %v3158_v30, %v4090_v6  ;;  %v3160_v10 = vpop.eup %3159 }
 0x49e   : > { %3171 = vrsqrt.f32 %v1906_v9  ;;  %v1907_v39 = vadd.f32 1e-05, %v1891_v17  ;;  %v1941_v21 = vmul.f32 %v3160_v10, %v4084_v28 }
 0x49f   : > { %v2265_v53 = vmul.f32 %v3806_v31, %v1978_v12  ;;  %v1585_v54 = vmul.f32 %v3758_v38, %v1560_v8 }
 0x4a0   : > { %v3162_v27 = vpop.eup %3161  ;;  %3173 = vrsqrt.f32 %v1907_v39  ;;  %v1960_v24 = vmul.f32 %v3765_v62, %v1941_v21 }
 0x4a1   : > { %3175 = vrsqrt.f32 %v1529_v48  ;;  %2311 = vrot.lane.b32.xlu0 %v2265_v53, %s3207_s26  ;;  %v1610_v60 = vadd.f32 %v3770_v1, %v1585_v54  ;;  %v1568_v22 = vmul.f32 %v3162_v27, %v4102_v29  ;;  %v3164_v6 = vpop.eup %3163  ;;  %v1971_v29 = vadd.f32 %v3776_v55, %v1952_v36 }
 0x4a2   : > { %3177 = vrsqrt.f32 %v1537_v61  ;;  %v1563_v23 = vmul.f32 %v3164_v6, %v4048_v26  ;;  %v1979_v4 = vadd.f32 %v3776_v55, %v1960_v24 }
 0x4a3   : > { %v1998_v57 = vmul.f32 %v3786_v11, %v1610_v60  ;;  %v1593_v56 = vmul.f32 %v3758_v38, %v1568_v22  ;;  %v2258_v16 = vmul.f32 %v3778_v5, %v1971_v29 }
 0x4a4   : > { %v3166_v14 = vpop.eup %3165  ;;  %v1588_v26 = vmul.f32 %v3758_v38, %v1563_v23  ;;  %v2266_v30 = vmul.f32 %v3778_v5, %v1979_v4 }
 0x4a5   : > { %2034 = vrot.lane.b32.xlu1 %v1998_v57, %s3206_s21  ;;  %v1618_v35 = vadd.f32 %v3770_v1, %v1593_v56  ;;  %v1930_v49 = vmul.f32 %v3166_v14, %v4114_v34 }
 0x4a6   : > { %v3168_v41 = vpop.eup %3167  ;;  %v1613_v46 = vadd.f32 %v3770_v1, %v1588_v26 }
 0x4a7   : > { %v3170_v28 = vpop.eup %3169  ;;  %v2006_v18 = vmul.f32 %v3786_v11, %v1618_v35  ;;  %v1949_v44 = vmul.f32 %v3765_v62, %v1930_v49  ;;  %v1931_v32 = vmul.f32 %v3168_v41, %v4120_v59 }
 0x4a8   : > { %v3172_v51 = vpop.eup %3171  ;;  %v1571_v11 = vmul.f32 %v3170_v28, %v4061_v52  ;;  %v2001_v12 = vmul.f32 %v3774_v3, %v1613_v46 }
 0x4a9   : > { %v1938_v20 = vmul.f32 %v3172_v51, %v4126_v47  ;;  %2050 = vrot.lane.b32.xlu1 %v2006_v18, %s3206_s21  ;;  %v1968_v34 = vadd.f32 %v3776_v55, %v1949_v44  ;;  %v1950_v47 = vmul.f32 %v3765_v62, %v1931_v32 }
 0x4aa   : > { %v3174_v25 = vpop.eup %3173  ;;  %v1596_v43 = vmul.f32 %v3758_v38, %v1571_v11 }
 0x4ab   : > { %v3176_v0 = vpop.eup %3175  ;;  %v2255_v2 = vmul.f32 %v3806_v31, %v1968_v34  ;;  %v1957_v59 = vmul.f32 %v3765_v62, %v1938_v20  ;;  %v1939_v15 = vmul.f32 %v3174_v25, %v4132_v19  ;;  %v1969_v17 = vadd.f32 %v3776_v55, %v1950_v47 }
 0x4ac   : > { %v1561_v52 = vmul.f32 %v3176_v0, %v4096_v45  ;;  %v3178_v48 = vpop.eup %3177  ;;  %v1621_v8 = vadd.f32 %v3770_v1, %v1596_v43 }
 0x4ad   : > { %2297 = vrot.lane.b32.xlu1 %v2258_v16, %s3207_s26  ;;  %2291 = vrot.lane.b32.xlu0 %v2255_v2, %s3207_s26  ;;  %v1976_v50 = vadd.f32 %v3776_v55, %v1957_v59  ;;  %v1958_v19 = vmul.f32 %v3765_v62, %v1939_v15  ;;  %v2256_v42 = vmul.f32 %v3778_v5, %v1969_v17 }
 0x4ae   : > { %v1586_v39 = vmul.f32 %v3758_v38, %v1561_v52  ;;  %v2009_v40 = vmul.f32 %v3774_v3, %v1621_v8 }
 0x4af   : > { %v2263_v9 = vmul.f32 %v3806_v31, %v1976_v50  ;;  %v1977_v45 = vadd.f32 %v3776_v55, %v1958_v19  ;;  %v1569_v31 = vmul.f32 %v3178_v48, %v4108_v58 }
 0x4b0   : > { %v1611_v10 = vadd.f32 %v3770_v1, %v1586_v39 }
 0x4b1   : > { %2313 = vrot.lane.b32.xlu1 %v2266_v30, %s3207_s26  ;;  %2307 = vrot.lane.b32.xlu0 %v2263_v9, %s3207_s26  ;;  %v2264_v62 = vmul.f32 %v3778_v5, %v1977_v45  ;;  %v1594_v53 = vmul.f32 %v3758_v38, %v1569_v31 }
 0x4b2   : > { %v1999_v55 = vmul.f32 %v3774_v3, %v1611_v10 }
 0x4b3   : > { %v1619_v58 = vadd.f32 %v3770_v1, %v1594_v53 }
 0x4b5   : > { %2293 = vrot.lane.b32.xlu1 %v2256_v42, %s3207_s26  ;;  %2040 = vrot.lane.b32.xlu0 %v2001_v12, %s3206_s21  ;;  %v2007_v54 = vmul.f32 %v3774_v3, %v1619_v58 }
 0x4b9   : > { %2309 = vrot.lane.b32.xlu1 %v2264_v62, %s3207_s26  ;;  %2056 = vrot.lane.b32.xlu0 %v2009_v40, %s3206_s21 }
 0x4bd   : > { %2036 = vrot.lane.b32.xlu0 %v1999_v55, %s3206_s21 }
 0x4c1   : > { %2052 = vrot.lane.b32.xlu0 %v2007_v54, %s3206_s21 }
 0x4e0   : > { %v2031_v5 = vpop.permute.xlu1 %2030 }
 0x4e1   : > { %v2080_v27 = vsel %vm1298_vm2, %v2031_v5, 0.0 }
 0x4e2   : > { %2081 = vadd.xlane.f32.xlu0 %v2080_v27 }
 0x4e4   : > { %v2047_v60 = vpop.permute.xlu1 %2046 }
 0x4e5   : > { %v2104_v38 = vsel %vm1298_vm2, %v2047_v60, 0.0 }
 0x4e6   : > { %2105 = vadd.xlane.f32.xlu0 %v2104_v38 }
 0x4e8   : > { %v2027_v22 = vpop.permute.xlu1 %2026  ;;  %v2288_v6 = vpop.permute.xlu0 %2287 }
 0x4e9   : > { %v2074_v61 = vsel %vm1298_vm2, %v2027_v22, 0.0  ;;  %v2337_v1 = vsel %vm1298_vm2, %v2288_v6, 0.0 }
 0x4ea   : > { %2075 = vadd.xlane.f32.xlu1 %v2074_v61  ;;  %2338 = vadd.xlane.f32.xlu0 %v2337_v1 }
 0x4ec   : > { %v2304_v36 = vpop.permute.xlu0 %2303 }
 0x4ed   : > { %v2361_v3 = vsel %vm1298_vm2, %v2304_v36, 0.0 }
 0x4ee   : > { %2362 = vadd.xlane.f32.xlu0 %v2361_v3 }
 0x4f0   : > { %v2043_v21 = vpop.permute.xlu1 %2042 }
 0x4f1   : > { %v2098_v57 = vsel %vm1298_vm2, %v2043_v21, 0.0 }
 0x4f2   : > { %2099 = vadd.xlane.f32.xlu0 %v2098_v57 }
 0x4f4   : > { %v2284_v56 = vpop.permute.xlu1 %2283  ;;  %v2300_v14 = vpop.permute.xlu0 %2299 }
 0x4f5   : > { %v2331_v35 = vsel %vm1298_vm2, %v2284_v56, 0.0  ;;  %v2355_v49 = vsel %vm1298_vm2, %v2300_v14, 0.0 }
 0x4f6   : > { %2332 = vadd.xlane.f32.xlu1 %v2331_v35  ;;  %2356 = vadd.xlane.f32.xlu0 %v2355_v49 }
 0x4f8   : > { %v2290_v41 = vpop.permute.xlu1 %2289  ;;  %v2033_v29 = vpop.permute.xlu0 %2032 }
 0x4f9   : > { %v2083_v24 = vsel %vm1298_vm2, %v2033_v29, 0.0  ;;  %v2340_v51 = vsel %vm1298_vm2, %v2290_v41, 0.0 }
 0x4fa   : > { %2084 = vadd.xlane.f32.xlu1 %v2083_v24 }
 0x4fc   : > { %v2306_v23 = vpop.permute.xlu1 %2305  ;;  %v2049_v28 = vpop.permute.xlu0 %2048 }
 0x4fd   : > { %v2107_v18 = vsel %vm1298_vm2, %v2049_v28, 0.0  ;;  %v2364_v25 = vsel %vm1298_vm2, %v2306_v23, 0.0 }
 0x4fe   : > { %2108 = vadd.xlane.f32.xlu1 %v2107_v18 }
 0x500   : > { %v2286_v44 = vpop.permute.xlu1 %2285  ;;  %v2029_v32 = vpop.permute.xlu0 %2028 }
 0x501   : > { %v2077_v20 = vsel %vm1298_vm2, %v2029_v32, 0.0  ;;  %v2334_v16 = vsel %vm1298_vm2, %v2286_v44, 0.0 }
 0x502   : > { %2341 = vadd.xlane.f32.xlu1 %v2340_v51  ;;  %2078 = vadd.xlane.f32.xlu0 %v2077_v20 }
 0x504   : > { %v2302_v34 = vpop.permute.xlu1 %2301  ;;  %v2045_v4 = vpop.permute.xlu0 %2044 }
 0x505   : > { %v2101_v11 = vsel %vm1298_vm2, %v2045_v4, 0.0  ;;  %v2358_v59 = vsel %vm1298_vm2, %v2302_v34, 0.0  ;;  %v4515_v34 = vld [vmem:[#allocation10_spill] sm:$0xff] }
 0x506   : > { %2365 = vadd.xlane.f32.xlu1 %v2364_v25  ;;  %2335 = vadd.xlane.f32.xlu0 %v2334_v16 }
 0x508   : > { %v2039_v26 = vpop.permute.xlu1 %2038 }
 0x509   : > { %v2092_v0 = vsel %vm1298_vm2, %v2039_v26, 0.0  ;;  %v4516_v26 = vld [vmem:[#allocation7_spill] sm:$0xff] }
 0x50a   : > { %2093 = vadd.xlane.f32.xlu0 %v2092_v0  ;;  %2102 = vadd.xlane.f32.xlu1 %v2101_v11 }
 0x50c   : > { %v2055_v2 = vpop.permute.xlu1 %2054 }
 0x50d   : > { %v2116_v47 = vsel %vm1298_vm2, %v2055_v2, 0.0  ;;  %v4517_v2 = vld [vmem:[#allocation4_spill] sm:$0xff] }
 0x50e   : > { %2117 = vadd.xlane.f32.xlu0 %v2116_v47  ;;  %2359 = vadd.xlane.f32.xlu1 %v2358_v59 }
 0x50f   : > { %v2296_v15 = vpop.permute.xlu0 %2295 }
 0x510   : > { %v2349_v50 = vsel %vm1298_vm2, %v2296_v15, 0.0 }
 0x512   : > { %2350 = vadd.xlane.f32.xlu0 %v2349_v50 }
 0x513   : > { %v2312_v46 = vpop.permute.xlu0 %2311 }
 0x514   : > { %v2373_v43 = vsel %vm1298_vm2, %v2312_v46, 0.0  ;;  %v4518_v46 = vld [vmem:[#allocation9_spill] sm:$0xff] }
 0x516   : > { %2374 = vadd.xlane.f32.xlu0 %v2373_v43 }
 0x517   : > { %v2035_v52 = vpop.permute.xlu1 %2034 }
 0x518   : > { %v2086_v30 = vsel %vm1298_vm2, %v2035_v52, 0.0  ;;  %v4519_v52 = vld [vmem:[#allocation14_spill] sm:$0xff] }
 0x51a   : > { %2087 = vadd.xlane.f32.xlu0 %v2086_v30 }
 0x51b   : > { %v2051_v9 = vpop.permute.xlu1 %2050 }
 0x51c   : > { %v2110_v17 = vsel %vm1298_vm2, %v2051_v9, 0.0 }
 0x51e   : > { %2111 = vadd.xlane.f32.xlu0 %v2110_v17 }
 0x51f   : > { %v2292_v19 = vpop.permute.xlu0 %2291  ;;  %v2298_v39 = vpop.permute.xlu1 %2297 }
 0x520   : > { %v2343_v48 = vsel %vm1298_vm2, %v2292_v19, 0.0  ;;  %v2352_v40 = vsel %vm1298_vm2, %v2298_v39, 0.0  ;;  %v4521_v39 = vld [vmem:[#allocation11_spill] sm:$0xff] }
 0x522   : > { %2344 = vadd.xlane.f32.xlu0 %v2343_v48  ;;  %v4520_v48 = vld [vmem:[#allocation5_spill] sm:$0xff] }
 0x523   : > { %v2308_v12 = vpop.permute.xlu0 %2307  ;;  %v2314_v10 = vpop.permute.xlu1 %2313 }
 0x524   : > { %v2367_v8 = vsel %vm1298_vm2, %v2308_v12, 0.0  ;;  %v2376_v55 = vsel %vm1298_vm2, %v2314_v10, 0.0  ;;  %v4522_v10 = vld [vmem:[#allocation8_spill] sm:$0xff] }
 0x526   : > { %2368 = vadd.xlane.f32.xlu0 %v2367_v8 }
 0x527   : > { %v2041_v42 = vpop.permute.xlu0 %2040  ;;  %v2294_v5 = vpop.permute.xlu1 %2293 }
 0x528   : > { %v2095_v45 = vsel %vm1298_vm2, %v2041_v42, 0.0  ;;  %v2346_v60 = vsel %vm1298_vm2, %v2294_v5, 0.0 }
 0x529   : > { %2096 = vadd.xlane.f32.xlu1 %v2095_v45 }
 0x52b   : > { %v2057_v31 = vpop.permute.xlu0 %2056  ;;  %v2310_v38 = vpop.permute.xlu1 %2309 }
 0x52c   : > { %v2119_v62 = vsel %vm1298_vm2, %v2057_v31, 0.0  ;;  %v2370_v22 = vsel %vm1298_vm2, %v2310_v38, 0.0  ;;  %v4523_v38 = vld [vmem:[#allocation13_spill] sm:$0xff] }
 0x52d   : > { %2120 = vadd.xlane.f32.xlu1 %v2119_v62 }
 0x52f   : > { %v2037_v53 = vpop.permute.xlu0 %2036 }
 0x530   : > { %v2089_v58 = vsel %vm1298_vm2, %v2037_v53, 0.0 }
 0x531   : > { %2353 = vadd.xlane.f32.xlu1 %v2352_v40 }
 0x533   : > { %v2053_v54 = vpop.permute.xlu0 %2052 }
 0x534   : > { %v2113_v27 = vsel %vm1298_vm2, %v2053_v54, 0.0 }
 0x535   : > { %2377 = vadd.xlane.f32.xlu1 %v2376_v55 }
 0x539   : > { %2090 = vadd.xlane.f32.xlu1 %v2089_v58 }
 0x53d   : > { %2114 = vadd.xlane.f32.xlu1 %v2113_v27 }
 0x541   : > { %2347 = vadd.xlane.f32.xlu1 %v2346_v60 }
 0x545   : > { %2371 = vadd.xlane.f32.xlu1 %v2370_v22 }
 0x56f   : > { %v2082_v6 = vpop.xlane.xlu0 %2081 }
 0x570   : > { %v2229_v61 = vmul.f32 %v3820_v33, %v2082_v6 }
 0x572   : > { %2418 = vperm.xlu1 %3080, %v2229_v61   ;;  %v4524_v61 = vld [vmem:[#allocation6_spill] sm:$0xff] }
 0x573   : > { %v2106_v1 = vpop.xlane.xlu0 %2105 }
 0x574   : > { %v2237_v21 = vmul.f32 %v3858_v7, %v2106_v1 }
 0x577   : > { %v2339_v36 = vpop.xlane.xlu0 %2338  ;;  %v2076_v56 = vpop.xlane.xlu1 %2075 }
 0x578   : > { %v2381_v3 = vmul.f32 %v2339_v36, %v3820_v33  ;;  %v2227_v49 = vmul.f32 %v3796_v63, %v2076_v56 }
 0x57a   : > { %2577 = vperm.xlu1 %3080, %v2381_v3  }
 0x57b   : > { %v2363_v57 = vpop.xlane.xlu0 %2362 }
 0x57c   : > { %v2389_v14 = vmul.f32 %v2363_v57, %v3858_v7  ;;  %v4525_v57 = vld [vmem:[#allocation12_spill] sm:$0xff] }
 0x57e   : > { %2442 = vperm.xlu1 %3080, %v2237_v21  }
 0x57f   : > { %v2100_v41 = vpop.xlane.xlu0 %2099 }
 0x580   : > { %v2235_v18 = vmul.f32 %v3850_v13, %v2100_v41 }
 0x582   : > { %2601 = vperm.xlu1 %3080, %v2389_v14  }
 0x583   : > { %v2333_v35 = vpop.xlane.xlu1 %2332  ;;  %v2357_v33 = vpop.xlane.xlu0 %2356 }
 0x584   : > { %v2379_v24 = vmul.f32 %v2333_v35, %v3796_v63  ;;  %v2387_v32 = vmul.f32 %v2357_v33, %v3850_v13  ;;  %v4526_v33 = vld [vmem:[#allocation2_spill] sm:$0xff] }
 0x586   : > { %2412 = vperm.xlu1 %3080, %v2227_v49  }
 0x587   : > { %v2085_v29 = vpop.xlane.xlu1 %2084 }
 0x588   : > { %v2230_v23 = vmul.f32 %v3824_v37, %v2085_v29 }
 0x58a   : > { %2421 = vperm.xlu0 %3079, %v2230_v23   ;;  %2571 = vperm.xlu1 %3080, %v2379_v24  }
 0x58b   : > { %v2109_v28 = vpop.xlane.xlu1 %2108 }
 0x58c   : > { %v2238_v63 = vmul.f32 %v4515_v34, %v2109_v28 }
 0x58e   : > { %2436 = vperm.xlu1 %3080, %v2235_v18   ;;  %v4527_v18 = vld [vmem:[#allocation3_spill] sm:$0xff] }
 0x58f   : > { %v2342_v44 = vpop.xlane.xlu1 %2341  ;;  %v2079_v7 = vpop.xlane.xlu0 %2078 }
 0x590   : > { %v2382_v51 = vmul.f32 %v2342_v44, %v3824_v37  ;;  %v2228_v59 = vmul.f32 %v4517_v2, %v2079_v7 }
 0x592   : > { %2580 = vperm.xlu0 %3079, %v2382_v51   ;;  %2595 = vperm.xlu1 %3080, %v2387_v32  }
 0x593   : > { %v2336_v20 = vpop.xlane.xlu0 %2335  ;;  %v2366_v25 = vpop.xlane.xlu1 %2365 }
 0x594   : > { %v2390_v4 = vmul.f32 %v2366_v25, %v4515_v34  ;;  %v2380_v47 = vmul.f32 %v2336_v20, %v4517_v2 }
 0x596   : > { %2445 = vperm.xlu0 %3079, %v2238_v63  }
 0x597   : > { %v2094_v16 = vpop.xlane.xlu0 %2093  ;;  %v2103_v13 = vpop.xlane.xlu1 %2102 }
 0x598   : > { %v2233_v11 = vmul.f32 %v4516_v26, %v2094_v16  ;;  %v2236_v43 = vmul.f32 %v4518_v46, %v2103_v13 }
 0x59a   : > { %2604 = vperm.xlu0 %3079, %v2390_v4   ;;  %2430 = vperm.xlu1 %3080, %v2233_v11  }
 0x59b   : > { %v2118_v0 = vpop.xlane.xlu0 %2117  ;;  %v2360_v9 = vpop.xlane.xlu1 %2359 }
 0x59c   : > { %v2241_v30 = vmul.f32 %v4519_v52, %v2118_v0  ;;  %v2388_v19 = vmul.f32 %v2360_v9, %v4518_v46 }
 0x59e   : > { %2415 = vperm.xlu0 %3079, %v2228_v59  }
 0x59f   : > { %v2351_v37 = vpop.xlane.xlu0 %2350 }
 0x5a0   : > { %v2385_v15 = vmul.f32 %v2351_v37, %v4516_v26 }
 0x5a2   : > { %2574 = vperm.xlu0 %3079, %v2380_v47   ;;  %2589 = vperm.xlu1 %3080, %v2385_v15  }
 0x5a3   : > { %v2375_v50 = vpop.xlane.xlu0 %2374 }
 0x5a4   : > { %v2393_v54 = vmul.f32 %v2375_v50, %v4519_v52 }
 0x5a6   : > { %2439 = vperm.xlu0 %3079, %v2236_v43   ;;  %2454 = vperm.xlu1 %3080, %v2241_v30  }
 0x5a7   : > { %v2088_v17 = vpop.xlane.xlu0 %2087 }
 0x5a8   : > { %v2231_v12 = vmul.f32 %v4520_v48, %v2088_v17 }
 0x5aa   : > { %2598 = vperm.xlu0 %3079, %v2388_v19   ;;  %2424 = vperm.xlu1 %3080, %v2231_v12  }
 0x5ab   : > { %v2112_v8 = vpop.xlane.xlu0 %2111 }
 0x5ac   : > { %v2239_v31 = vmul.f32 %v4521_v39, %v2112_v8 }
 0x5af   : > { %v2345_v42 = vpop.xlane.xlu0 %2344 }
 0x5b0   : > { %v2383_v45 = vmul.f32 %v2345_v42, %v4520_v48 }
 0x5b2   : > { %2583 = vperm.xlu1 %3080, %v2383_v45  }
 0x5b3   : > { %v2369_v62 = vpop.xlane.xlu0 %2368 }
 0x5b4   : > { %v2391_v55 = vmul.f32 %v2369_v62, %v4521_v39 }
 0x5b6   : > { %v2097_v40 = vpop.xlane.xlu1 %2096  ;;  %2448 = vperm.xlu1 %3080, %v2239_v31  }
 0x5b7   : > { %v2234_v53 = vmul.f32 %v4522_v10, %v2097_v40 }
 0x5b9   : > { %2433 = vperm.xlu0 %3079, %v2234_v53  }
 0x5ba   : > { %v2121_v58 = vpop.xlane.xlu1 %2120  ;;  %2607 = vperm.xlu1 %3080, %v2391_v55  }
 0x5bb   : > { %v2242_v22 = vmul.f32 %v4523_v38, %v2121_v58 }
 0x5be   : > { %v2354_v5 = vpop.xlane.xlu1 %2353  ;;  %2613 = vperm.xlu1 %3080, %v2393_v54  }
 0x5bf   : > { %v2386_v27 = vmul.f32 %v2354_v5, %v4522_v10 }
 0x5c1   : > { %2592 = vperm.xlu0 %3079, %v2386_v27  }
 0x5c2   : > { %v2378_v60 = vpop.xlane.xlu1 %2377 }
 0x5c3   : > { %v2394_v49 = vmul.f32 %v2378_v60, %v4523_v38 }
 0x5c5   : > { %2457 = vperm.xlu0 %3079, %v2242_v22  }
 0x5c6   : > { %v2091_v6 = vpop.xlane.xlu1 %2090 }
 0x5c7   : > { %v2232_v1 = vmul.f32 %v4524_v61, %v2091_v6 }
 0x5c9   : > { %2427 = vperm.xlu0 %3079, %v2232_v1  }
 0x5ca   : > { %v2115_v36 = vpop.xlane.xlu1 %2114 }
 0x5cb   : > { %v2240_v56 = vmul.f32 %v4525_v57, %v2115_v36 }
 0x5ce   : > { %v2348_v3 = vpop.xlane.xlu1 %2347 }
 0x5cf   : > { %v2384_v21 = vmul.f32 %v2348_v3, %v4524_v61 }
 0x5d1   : > { %2586 = vperm.xlu0 %3079, %v2384_v21  }
 0x5d2   : > { %v2372_v14 = vpop.xlane.xlu1 %2371 }
 0x5d3   : > { %v2392_v35 = vmul.f32 %v2372_v14, %v4525_v57 }
 0x5d5   : > { %2451 = vperm.xlu0 %3079, %v2240_v56  }
 0x5d9   : > { %2610 = vperm.xlu0 %3079, %v2392_v35  }
 0x5dd   : > { %2616 = vperm.xlu0 %3079, %v2394_v49  }
 0x5f1   : > { %v2419_v41 = vpop.permute.xlu1 %2418 }
 0x5f2   : > { %v2475_v28 = vrot.slane %v2419_v41, %v4526_v33 }
 0x5f9   : > { %v2578_v29 = vpop.permute.xlu1 %2577 }
 0x5fa   : > { %v2630_v20 = vrot.slane %v2578_v29, %v4526_v33 }
 0x5fd   : > { %v2443_v24 = vpop.permute.xlu1 %2442 }
 0x5fe   : > { %v2511_v4 = vrot.slane %v2443_v24, %v4526_v33 }
 0x601   : > { %v2602_v32 = vpop.permute.xlu1 %2601 }
 0x602   : > { %v2666_v2 = vrot.slane %v2602_v32, %v4526_v33 }
 0x605   : > { %v2413_v25 = vpop.permute.xlu1 %2412 }
 0x606   : > { %v2464_v15 = vrot.slane %v2413_v25, %v4526_v33 }
 0x609   : > { %v2422_v23 = vpop.permute.xlu0 %2421  ;;  %v2572_v13 = vpop.permute.xlu1 %2571 }
 0x60a   : > { %v2479_v44 = vrot.slane %v2422_v23, %v4527_v18  ;;  %v2621_v9 = vrot.slane %v2572_v13, %v4526_v33 }
 0x60c   : > { %v2480_v7 = vsel %vm2470_vm3, %v2479_v44, %v2475_v28 }
 0x60d   : > { %v2437_v43 = vpop.permute.xlu1 %2436 }
 0x60e   : > { %v2502_v8 = vrot.slane %v2437_v43, %v4526_v33 }
 0x611   : > { %v2581_v51 = vpop.permute.xlu0 %2580  ;;  %v2596_v45 = vpop.permute.xlu1 %2595 }
 0x612   : > { %v2634_v34 = vrot.slane %v2581_v51, %v4527_v18  ;;  %v2657_v62 = vrot.slane %v2596_v45, %v4526_v33 }
 0x614   : > { %v2635_v63 = vsel %vm2470_vm3, %v2634_v34, %v2630_v20 }
 0x615   : > { %v2446_v16 = vpop.permute.xlu0 %2445 }
 0x616   : > { %v2515_v26 = vrot.slane %v2446_v16, %v4527_v18 }
 0x618   : > { %v2516_v11 = vsel %vm2470_vm3, %v2515_v26, %v2511_v4 }
 0x619   : > { %v2605_v0 = vpop.permute.xlu0 %2604  ;;  %v2431_v53 = vpop.permute.xlu1 %2430 }
 0x61a   : > { %v2670_v59 = vrot.slane %v2605_v0, %v4527_v18  ;;  %v2493_v54 = vrot.slane %v2431_v53, %v4526_v33 }
 0x61c   : > { %v4410_v37 = vsel %vm2470_vm3, %v2670_v59, %v2666_v2 }
 0x61d   : > { %v2416_v47 = vpop.permute.xlu0 %2415 }
 0x61e   : > { %v2469_v50 = vrot.slane %v2416_v47, %v4527_v18 }
 0x620   : > { %v2471_v46 = vsel %vm2470_vm3, %v2469_v50, %v2464_v15 }
 0x621   : > { %v2536_v52 = vsel %vm2535_vm4, %v2480_v7, %v2471_v46  ;;  %v2575_v30 = vpop.permute.xlu0 %2574  ;;  %v2590_v55 = vpop.permute.xlu1 %2589 }
 0x622   : > { %v2625_v17 = vrot.slane %v2575_v30, %v4527_v18  ;;  %v2648_v22 = vrot.slane %v2590_v55, %v4526_v33 }
 0x624   : > { %v2626_v19 = vsel %vm2470_vm3, %v2625_v17, %v2621_v9 }
 0x625   : > { %v2690_v48 = vsel %vm2535_vm4, %v2635_v63, %v2626_v19  ;;  %v2440_v12 = vpop.permute.xlu0 %2439  ;;  %v2455_v60 = vpop.permute.xlu1 %2454 }
 0x626   : > { %v2506_v42 = vrot.slane %v2440_v12, %v4527_v18  ;;  %v2529_v3 = vrot.slane %v2455_v60, %v4526_v33 }
 0x628   : > { %v2507_v39 = vsel %vm2470_vm3, %v2506_v42, %v2502_v8 }
 0x629   : > { %v2599_v31 = vpop.permute.xlu0 %2598  ;;  %v2425_v1 = vpop.permute.xlu1 %2424 }
 0x62a   : > { %v2661_v40 = vrot.slane %v2599_v31, %v4527_v18  ;;  %v2484_v35 = vrot.slane %v2425_v1, %v4526_v33 }
 0x62c   : > { %v2662_v10 = vsel %vm2470_vm3, %v2661_v40, %v2657_v62 }
 0x631   : > { %v2584_v56 = vpop.permute.xlu1 %2583 }
 0x632   : > { %v2639_v32 = vrot.slane %v2584_v56, %v4526_v33 }
 0x635   : > { %v2449_v23 = vpop.permute.xlu1 %2448 }
 0x636   : > { %v2520_v16 = vrot.slane %v2449_v23, %v4526_v33 }
 0x638   : > { %v2434_v58 = vpop.permute.xlu0 %2433 }
 0x639   : > { %v2497_v5 = vrot.slane %v2434_v58, %v4527_v18  ;;  %v2608_v34 = vpop.permute.xlu1 %2607 }
 0x63a   : > { %v2675_v47 = vrot.slane %v2608_v34, %v4526_v33 }
 0x63b   : > { %v2498_v27 = vsel %vm2470_vm3, %v2497_v5, %v2493_v54 }
 0x63d   : > { %v2614_v46 = vpop.permute.xlu1 %2613 }
 0x640   : > { %v2593_v38 = vpop.permute.xlu0 %2592 }
 0x641   : > { %v2652_v6 = vrot.slane %v2593_v38, %v4527_v18 }
 0x643   : > { %v2653_v61 = vsel %vm2470_vm3, %v2652_v6, %v2648_v22 }
 0x644   : > { %v2458_v36 = vpop.permute.xlu0 %2457 }
 0x645   : > { %v2533_v21 = vrot.slane %v2458_v36, %v4527_v18 }
 0x647   : > { %v2534_v57 = vsel %vm2470_vm3, %v2533_v21, %v2529_v3 }
 0x648   : > { %v2428_v14 = vpop.permute.xlu0 %2427 }
 0x649   : > { %v2488_v49 = vrot.slane %v2428_v14, %v4527_v18 }
 0x64b   : > { %v2489_v41 = vsel %vm2470_vm3, %v2488_v49, %v2484_v35 }
 0x64c   : > { %v2538_v29 = vsel %vm2537_vm5, %v2489_v41, %v2536_v52 }
 0x64d   : > { %v2540_v24 = vsel %vm2539_vm6, %v2498_v27, %v2538_v29 }
 0x64e   : > { %v2542_v28 = vsel %vm2541_vm7, %v2507_v39, %v2540_v24 }
 0x64f   : > { %v2544_v44 = vsel %vm2543_vm8, %v2516_v11, %v2542_v28 }
 0x650   : > { %v2587_v7 = vpop.permute.xlu0 %2586 }
 0x651   : > { %v2643_v51 = vrot.slane %v2587_v7, %v4527_v18 }
 0x653   : > { %v2644_v20 = vsel %vm2470_vm3, %v2643_v51, %v2639_v32 }
 0x654   : > { %v2691_v63 = vsel %vm2537_vm5, %v2644_v20, %v2690_v48  ;;  %v2452_v25 = vpop.permute.xlu0 %2451 }
 0x655   : > { %v2692_v4 = vsel %vm2539_vm6, %v2653_v61, %v2691_v63  ;;  %v2524_v26 = vrot.slane %v2452_v25, %v4527_v18 }
 0x656   : > { %v2693_v11 = vsel %vm2541_vm7, %v2662_v10, %v2692_v4 }
 0x657   : > { %v2525_v0 = vsel %vm2470_vm3, %v2524_v26, %v2520_v16  ;;  %v2694_v2 = vsel %vm2543_vm8, %v4410_v37, %v2693_v11  ;;  %v2684_v37 = vrot.slane %v2614_v46, %v4526_v33 }
 0x658   : > { %v2611_v59 = vpop.permute.xlu0 %2610  ;;  %v2546_v13 = vsel %vm2545_vm9, %v2525_v0, %v2544_v44 }
 0x659   : > { %v2679_v15 = vrot.slane %v2611_v59, %v4527_v18  ;;  %v2548_v50 = vsel %vm2547_vm10, %v2534_v57, %v2546_v13 }
 0x65a   : > { %v2551_v43 = vsel %vm2550_vm11, %v2548_v50, 0.0 }
 0x65b   : > { %v2680_v52 = vsel %vm2470_vm3, %v2679_v15, %v2675_v47  ;;  %2552 = vadd.xlane.f32.xlu1 %v2551_v43 }
 0x65c   : > { %v2617_v30 = vpop.permute.xlu0 %2616  ;;  %v2695_v9 = vsel %vm2545_vm9, %v2680_v52, %v2694_v2 }
 0x65d   : > { %v2688_v17 = vrot.slane %v2617_v30, %v4527_v18 }
 0x65f   : > { %v2689_v19 = vsel %vm2470_vm3, %v2688_v17, %v2684_v37 }
 0x660   : > { %v2696_v48 = vsel %vm2547_vm10, %v2689_v19, %v2695_v9 }
 0x661   : > { %v2698_v12 = vsel %vm2550_vm11, %v2696_v48, 0.0 }
 0x662   : > { %2699 = vadd.xlane.f32.xlu0 %v2698_v12 }
 0x6e8   : > { %v2553_v8 = vpop.xlane.xlu1 %2552 }
 0x6ef   : > { %v2700_v42 = vpop.xlane.xlu0 %2699 }
 0x6f0   : > { %v2702_v45 = vsel %vm2701_vm12, %v2553_v8, %v2700_v42 }
 0x6f1   : > { %2704 = vst.msk [vmem:[%s558_s14] sm:$0xff] %vm2703_vm13, %v2702_v45 }
 0x6f2 PF: > { %s22_s19 = sadd.s32 1, %s3201_s19   ;;  %s4528_s17 = smov %s3197_s18 }
 0x6f3   : > { %p19_p5 = scmp.ge.s32.totalorder %s22_s19, 4   ;;  %s4529_s18 = smov %s4531_s20 }
 0x6f5   :  { %21 = sbr.rel (!%p19_p5) target bundleno = 2 (0x2), region = 120 }

</bundles_post_ra>
